<compile_context>
chip_gen: v7x
topology: tpu7x:2x2x1
jax: 0.10.0
libtpu: 0.0.40
codegen_flags: <defaults>
</compile_context>

<pallas_src>
import functools
import math

import jax
import jax.numpy as jnp
from jax import lax
from jax.experimental import pallas as pl
from jax.experimental.pallas import tpu as pltpu


def _local_decoder_kernel(num_heads, n_layer_refs,
                          ids_ref, mem_ref, mpad_ref, emb_ref, wmp_ref, bmp_ref,
                          *rest):
  """One grid step == (one block of BB batch elements, one decoder layer)."""
  layer_refs = rest[:n_layer_refs]
  wbp_ref, bbp_ref, out_ref, x_sc, memp_sc, ctx_sc = rest[n_layer_refs:]

  (w_sa_in_ref, b_sa_in_ref, w_sa_out_ref, b_sa_out_ref, ln1_g_ref, ln1_b_ref,
   w_ca_q_ref, b_ca_q_ref, w_ca_kv_ref, b_ca_kv_ref, w_ca_out_ref, b_ca_out_ref,
   ln2_g_ref, ln2_b_ref, w_ff1_ref, b_ff1_ref, w_ff2_ref, b_ff2_ref,
   ln3_g_ref, ln3_b_ref) = layer_refs

  layer = pl.program_id(1)
  BB, Tp, H = ctx_sc.shape
  Mp = memp_sc.shape[0] // BB
  hd = H // num_heads
  scale = 1.0 / math.sqrt(hd)
  f32 = jnp.float32
  neg_inf = f32(-jnp.inf)

  # ---- per-block prologue (layer 0): byte embedding + memory projection ----
  @pl.when(layer == 0)
  def _prologue():
    ids = ids_ref[0]                                            # [BB*Tp, 1]
    onehot = (lax.broadcasted_iota(jnp.int32, (BB * Tp, 256), 1)
              == ids).astype(f32)
    x_sc[...] = jnp.dot(onehot, emb_ref[...], preferred_element_type=f32)
    memp_sc[...] = (jnp.dot(mem_ref[0], wmp_ref[...],
                            preferred_element_type=f32) + bmp_ref[...])

  def lin(a, w, b):
    return jnp.dot(a, w, preferred_element_type=f32) + b

  def layer_norm(y, g_ref, b_ref):
    mu = jnp.mean(y, axis=-1, keepdims=True)
    c = y - mu
    var = jnp.mean(c * c, axis=-1, keepdims=True)
    return c * lax.rsqrt(var + 1e-5) * g_ref[0] + b_ref[0]

  def mha(q3, k3, v3, mask, w_out, b_out):
    # q3: [BB, Tp, H]; k3/v3: [BB, S, H]; mask broadcastable to [BB, Tp, S].
    # Per-head context goes into a lane-contiguous scratch; one dense
    # out-projection matmul afterwards (no concatenate, no partial HBM stores).
    for h in range(num_heads):
      sl = slice(h * hd, (h + 1) * hd)
      s = jnp.einsum('btd,bsd->bts', q3[:, :, sl], k3[:, :, sl],
                     preferred_element_type=f32) * scale
      s = jnp.where(mask, neg_inf, s)
      m = jnp.max(s, axis=-1, keepdims=True)
      e = jnp.exp(s - m)
      p = e * pl.reciprocal(jnp.sum(e, axis=-1, keepdims=True), approx=True)
      ctx_sc[:, :, sl] = jnp.einsum('bts,bsd->btd', p, v3[:, :, sl],
                                    preferred_element_type=f32)
    return lin(ctx_sc[...].reshape(BB * Tp, H), w_out, b_out)

  x = x_sc[...]                                                 # [BB*Tp, H]

  # ---- self-attention (fused QKV projection, causal mask) ----
  qkv = lin(x, w_sa_in_ref[0], b_sa_in_ref[0]).reshape(BB, Tp, 3 * H)
  row = lax.broadcasted_iota(jnp.int32, (Tp, Tp), 0)
  col = lax.broadcasted_iota(jnp.int32, (Tp, Tp), 1)
  causal = (col > row)[None]                                    # True == masked
  sa = mha(qkv[:, :, :H], qkv[:, :, H:2 * H], qkv[:, :, 2 * H:], causal,
           w_sa_out_ref[0], b_sa_out_ref[0])
  x = layer_norm(x + sa, ln1_g_ref, ln1_b_ref)

  # ---- cross-attention on the shared projected memory (fused KV proj) ----
  q3 = lin(x, w_ca_q_ref[0], b_ca_q_ref[0]).reshape(BB, Tp, H)
  kv = lin(memp_sc[...], w_ca_kv_ref[0],
           b_ca_kv_ref[0]).reshape(BB, Mp, 2 * H)
  kpad = (mpad_ref[0] != 0)[:, None, :]                         # [BB, 1, Mp]
  # NOTE: a fully-masked memory row would give NaN, matching PyTorch.
  ca = mha(q3, kv[:, :, :H], kv[:, :, H:], kpad,
           w_ca_out_ref[0], b_ca_out_ref[0])
  x = layer_norm(x + ca, ln2_g_ref, ln2_b_ref)

  # ---- feed-forward ----
  h1 = lin(x, w_ff1_ref[0], b_ff1_ref[0])                       # [BB*Tp, 4H]
  # TODO(synk): PyTorch F.gelu defaults to the exact erf form; the tanh
  # approximation is used in-kernel (erf has no guaranteed Mosaic lowering).
  h1 = 0.5 * h1 * (1.0 + jnp.tanh(0.7978845608028654
                                  * (h1 + 0.044715 * h1 * h1 * h1)))
  ff = lin(h1, w_ff2_ref[0], b_ff2_ref[0])                      # [BB*Tp, H]
  x = layer_norm(x + ff, ln3_g_ref, ln3_b_ref)

  x_sc[...] = x                                                 # carry to next layer

  # ---- per-block epilogue (last layer): lane-dense [BB*Tp, 256] logits ----
  @pl.when(layer == pl.num_programs(1) - 1)
  def _epilogue():
    out_ref[0] = lin(x, wbp_ref[...], bbp_ref[...])


def _largest_divisor_at_most(n, cap):
  best = 1
  for d in range(1, min(n, cap) + 1):
    if n % d == 0:
      best = d
  return best


def local_decoder_forward(params, tgt_byte_seq, memory, memory_key_padding_mask,
                          batch_block=None):
  """Pallas LocalDecoder forward (eval mode). Returns [B, T, 256] logits."""
  B, T = tgt_byte_seq.shape
  _, M, G = memory.shape
  emb = params['emb']
  H = emb.shape[1]
  nh = params['num_heads']
  lp = params['layers']
  L = lp['w_sa_in'].shape[0]

  # Number of batch elements fused per grid step (amortizes layer-weight DMA).
  BB = batch_block if batch_block is not None else _largest_divisor_at_most(B, 8)
  assert B % BB == 0
  NB = B // BB

  # Pad T / M to sublane multiples so in-kernel head-split reshapes are
  # layout no-ops.  Padded target rows are discarded; padded memory rows are
  # key-padding masked.
  Tp = ((T + 7) // 8) * 8
  Mp = ((M + 7) // 8) * 8

  ids = jnp.pad(tgt_byte_seq.astype(jnp.int32),
                ((0, 0), (0, Tp - T))).reshape(NB, BB * Tp, 1)
  mem = jnp.pad(memory.astype(jnp.float32),
                ((0, 0), (0, Mp - M), (0, 0))).reshape(NB, BB * Mp, G)
  mpad = jnp.pad(memory_key_padding_mask.astype(jnp.int32),
                 ((0, 0), (0, Mp - M)),
                 constant_values=1).reshape(NB, BB, Mp)

  wmp = params['w_mp']
  bmp = params['b_mp'].reshape(1, H)
  wbp = params['w_bp']
  bbp = params['b_bp'].reshape(1, 256)

  def r2(a):  # [L, d] -> [L, 1, d]
    return a.reshape(L, 1, a.shape[-1])

  layer_arrays = [
      lp['w_sa_in'], r2(lp['b_sa_in']), lp['w_sa_out'], r2(lp['b_sa_out']),
      r2(lp['ln1_g']), r2(lp['ln1_b']),
      lp['w_ca_q'], r2(lp['b_ca_q']), lp['w_ca_kv'], r2(lp['b_ca_kv']),
      lp['w_ca_out'], r2(lp['b_ca_out']), r2(lp['ln2_g']), r2(lp['ln2_b']),
      lp['w_ff1'], r2(lp['b_ff1']), lp['w_ff2'], r2(lp['b_ff2']),
      r2(lp['ln3_g']), r2(lp['ln3_b']),
  ]

  def const_spec(a):
    nd = a.ndim
    return pl.BlockSpec(a.shape, lambda b, l, _nd=nd: (0,) * _nd)

  def layer_spec(a):
    return pl.BlockSpec((1,) + a.shape[1:], lambda b, l: (l, 0, 0))

  in_specs = ([
      pl.BlockSpec((1, BB * Tp, 1), lambda b, l: (b, 0, 0)),    # byte ids
      pl.BlockSpec((1, BB * Mp, G), lambda b, l: (b, 0, 0)),    # memory
      pl.BlockSpec((1, BB, Mp), lambda b, l: (b, 0, 0)),        # memory pad mask
      const_spec(emb), const_spec(wmp), const_spec(bmp),
  ] + [layer_spec(a) for a in layer_arrays]
    + [const_spec(wbp), const_spec(bbp)])

  out_specs = pl.BlockSpec((1, BB * Tp, 256), lambda b, l: (b, 0, 0))

  kernel = functools.partial(_local_decoder_kernel, nh, len(layer_arrays))

  # Rough cost so XLA schedules neighbouring ops sensibly.
  flops_per_layer = BB * (
      2 * Tp * H * 3 * H          # fused QKV projection
      + 4 * Tp * Tp * H           # self-attn scores + PV (all heads)
      + 2 * Tp * H * H            # self-attn out-proj
      + 2 * Tp * H * H            # cross-attn Q projection
      + 2 * Mp * H * 2 * H        # cross-attn fused KV projection
      + 4 * Tp * Mp * H           # cross-attn scores + PV
      + 2 * Tp * H * H            # cross-attn out-proj
      + 2 * Tp * H * 4 * H        # FFN up
      + 2 * Tp * 4 * H * H)       # FFN down
  flops = NB * (BB * (2 * Tp * 256 * H + 2 * Mp * G * H + 2 * Tp * H * 256)
                + L * flops_per_layer)
  transcendentals = NB * BB * L * (Tp * Tp + Tp * Mp + Tp * 4 * H)
  bytes_accessed = int(
      ids.size * 4 + mem.size * 4 + mpad.size * 4 + emb.size * 4
      + wmp.size * 4 + bmp.size * 4 + wbp.size * 4 + bbp.size * 4
      + NB * sum(int(a.size) * 4 for a in layer_arrays)   # weights refetched / block
      + NB * BB * Tp * 256 * 4)
  cost = pl.CostEstimate(flops=int(flops),
                         transcendentals=int(transcendentals),
                         bytes_accessed=bytes_accessed)

  # Raise the scoped VMEM limit (defaults are 16/32 MiB) but stay well under
  # physical capacity (64 MiB on v7x).
  vmem_limit = 64 * 1024 * 1024
  try:
    cap = int(pltpu.get_tpu_info().vmem_capacity_bytes)
    vmem_limit = min(vmem_limit, (cap * 3) // 4)
  except Exception:
    pass

  out = pl.pallas_call(
      kernel,
      out_shape=jax.ShapeDtypeStruct((NB, BB * Tp, 256), jnp.float32),
      grid=(NB, L),
      in_specs=in_specs,
      out_specs=out_specs,
      scratch_shapes=[
          pltpu.VMEM((BB * Tp, H), jnp.float32),  # carried decoder state x
          pltpu.VMEM((BB * Mp, H), jnp.float32),  # projected memory (per block)
          pltpu.VMEM((BB, Tp, H), jnp.float32),   # multi-head context assembly
      ],
      compiler_params=pltpu.CompilerParams(
          dimension_semantics=("parallel", "arbitrary"),
          vmem_limit_bytes=int(vmem_limit)),
      cost_estimate=cost,
  )(ids, mem, mpad, emb, wmp, bmp, *layer_arrays, wbp, bbp)

  return out.reshape(B, Tp, 256)[:, :T, :]


def reference_forward(params, tgt_ids, memory, mem_pad_mask):
  """Plain-JAX mirror of the PyTorch LocalDecoder forward (eval mode)."""
  lp = params['layers']
  nh = params['num_heads']
  B, T = tgt_ids.shape
  H = params['emb'].shape[1]
  L = lp['w_sa_in'].shape[0]
  hd = H // nh
  scale = 1.0 / math.sqrt(hd)

  def ln(x, g, b):
    mu = jnp.mean(x, -1, keepdims=True)
    var = jnp.mean((x - mu) ** 2, -1, keepdims=True)
    return (x - mu) / jnp.sqrt(var + 1e-5) * g + b

  def split_heads(t):
    b, s, _ = t.shape
    return t.reshape(b, s, nh, hd).transpose(0, 2, 1, 3)

  def merge_heads(t):
    b, _, s, _ = t.shape
    return t.transpose(0, 2, 1, 3).reshape(b, s, H)

  def attn(q, k, v, mask):
    s = jnp.einsum('bhqd,bhkd->bhqk', q, k) * scale
    s = jnp.where(mask, -jnp.inf, s)
    a = jax.nn.softmax(s, axis=-1)
    return jnp.einsum('bhqk,bhkd->bhqd', a, v)

  x = params['emb'][tgt_ids]                                   # [B, T, H]
  memp = memory @ params['w_mp'] + params['b_mp']              # [B, M, H]
  causal = jnp.triu(jnp.ones((T, T), bool), 1)[None, None]
  kpad = mem_pad_mask.astype(bool)[:, None, None, :]

  for l in range(L):
    qkv = x @ lp['w_sa_in'][l] + lp['b_sa_in'][l]
    q, k, v = jnp.split(qkv, 3, axis=-1)
    o = merge_heads(attn(split_heads(q), split_heads(k), split_heads(v), causal))
    x = ln(x + o @ lp['w_sa_out'][l] + lp['b_sa_out'][l],
           lp['ln1_g'][l], lp['ln1_b'][l])

    q = x @ lp['w_ca_q'][l] + lp['b_ca_q'][l]
    kv = memp @ lp['w_ca_kv'][l] + lp['b_ca_kv'][l]
    k, v = jnp.split(kv, 2, axis=-1)
    o = merge_heads(attn(split_heads(q), split_heads(k), split_heads(v), kpad))
    x = ln(x + o @ lp['w_ca_out'][l] + lp['b_ca_out'][l],
           lp['ln2_g'][l], lp['ln2_b'][l])

    h1 = jax.nn.gelu(x @ lp['w_ff1'][l] + lp['b_ff1'][l], approximate=False)
    x = ln(x + h1 @ lp['w_ff2'][l] + lp['b_ff2'][l],
           lp['ln3_g'][l], lp['ln3_b'][l])

  return x @ params['w_bp'] + params['b_bp']


if __name__ == "__main__":
  B, T, M = 2, 8, 4
  H, G, L, NH = 32, 64, 2, 4

  key = jax.random.PRNGKey(0)
  kiter = iter(jax.random.split(key, 256))
  def nk(): return next(kiter)
  def unif(shape, lim): return jax.random.uniform(nk(), shape, jnp.float32, -lim, lim)

  lim_h = 1.0 / math.sqrt(H)
  lim_4h = 1.0 / math.sqrt(4 * H)

  def per_layer(fn):
    return jnp.stack([fn() for _ in range(L)], axis=0)

  params = {
      'num_heads': NH,
      'emb': jax.random.normal(nk(), (256, H), jnp.float32) / math.sqrt(H),
      'w_mp': 0.02 * jax.random.normal(nk(), (G, H), jnp.float32),
      'b_mp': jnp.zeros((H,), jnp.float32),
      'w_bp': 0.02 * jax.random.normal(nk(), (H, 256), jnp.float32),
      'b_bp': jnp.zeros((256,), jnp.float32),
      'layers': {
          'w_sa_in':  per_layer(lambda: unif((H, 3 * H), lim_h)),
          'b_sa_in':  per_layer(lambda: unif((3 * H,), lim_h)),
          'w_sa_out': per_layer(lambda: unif((H, H), lim_h)),
          'b_sa_out': per_layer(lambda: unif((H,), lim_h)),
          'ln1_g':    jnp.ones((L, H), jnp.float32),
          'ln1_b':    jnp.zeros((L, H), jnp.float32),
          'w_ca_q':   per_layer(lambda: unif((H, H), lim_h)),
          'b_ca_q':   per_layer(lambda: unif((H,), lim_h)),
          'w_ca_kv':  per_layer(lambda: unif((H, 2 * H), lim_h)),
          'b_ca_kv':  per_layer(lambda: unif((2 * H,), lim_h)),
          'w_ca_out': per_layer(lambda: unif((H, H), lim_h)),
          'b_ca_out': per_layer(lambda: unif((H,), lim_h)),
          'ln2_g':    jnp.ones((L, H), jnp.float32),
          'ln2_b':    jnp.zeros((L, H), jnp.float32),
          'w_ff1':    per_layer(lambda: unif((H, 4 * H), lim_h)),
          'b_ff1':    per_layer(lambda: unif((4 * H,), lim_h)),
          'w_ff2':    per_layer(lambda: unif((4 * H, H), lim_4h)),
          'b_ff2':    per_layer(lambda: unif((H,), lim_4h)),
          'ln3_g':    jnp.ones((L, H), jnp.float32),
          'ln3_b':    jnp.zeros((L, H), jnp.float32),
      },
  }

  tgt_ids = jax.random.randint(nk(), (B, T), 0, 256, dtype=jnp.int32)
  memory = jax.random.normal(nk(), (B, M, G), jnp.float32)
  # memory padding: 1 == ignore.  batch 0 unpadded, batch 1 masks the last slot.
  mem_pad_mask = jnp.zeros((B, M), jnp.int32).at[1, M - 1:].set(1)

  logits = local_decoder_forward(params, tgt_ids, memory, mem_pad_mask)
  jax.block_until_ready(logits)

  ref = reference_forward(params, tgt_ids, memory, mem_pad_mask)
  assert logits.shape == (B, T, 256)
  max_err = float(jnp.max(jnp.abs(logits - ref)))
  assert jnp.allclose(logits, ref, atol=5e-3, rtol=5e-3), f"mismatch {max_err}"

  print("KERNEL_OK")
</pallas_src>

<mosaic_0001>
module attributes {stable_mosaic.version = 11 : i64} {
  func.func @_local_decoder_kernel(%arg0: i32, %arg1: i32, %arg2: memref<1x16x1xi32, #tpu.memory_space<vmem>>, %arg3: memref<1x16x64xf32, #tpu.memory_space<vmem>>, %arg4: memref<1x2x8xi32, #tpu.memory_space<vmem>>, %arg5: memref<256x32xf32, #tpu.memory_space<vmem>>, %arg6: memref<64x32xf32, #tpu.memory_space<vmem>>, %arg7: memref<1x32xf32, #tpu.memory_space<vmem>>, %arg8: memref<1x32x96xf32, #tpu.memory_space<vmem>>, %arg9: memref<1x1x96xf32, #tpu.memory_space<vmem>>, %arg10: memref<1x32x32xf32, #tpu.memory_space<vmem>>, %arg11: memref<1x1x32xf32, #tpu.memory_space<vmem>>, %arg12: memref<1x1x32xf32, #tpu.memory_space<vmem>>, %arg13: memref<1x1x32xf32, #tpu.memory_space<vmem>>, %arg14: memref<1x32x32xf32, #tpu.memory_space<vmem>>, %arg15: memref<1x1x32xf32, #tpu.memory_space<vmem>>, %arg16: memref<1x32x64xf32, #tpu.memory_space<vmem>>, %arg17: memref<1x1x64xf32, #tpu.memory_space<vmem>>, %arg18: memref<1x32x32xf32, #tpu.memory_space<vmem>>, %arg19: memref<1x1x32xf32, #tpu.memory_space<vmem>>, %arg20: memref<1x1x32xf32, #tpu.memory_space<vmem>>, %arg21: memref<1x1x32xf32, #tpu.memory_space<vmem>>, %arg22: memref<1x32x128xf32, #tpu.memory_space<vmem>>, %arg23: memref<1x1x128xf32, #tpu.memory_space<vmem>>, %arg24: memref<1x128x32xf32, #tpu.memory_space<vmem>>, %arg25: memref<1x1x32xf32, #tpu.memory_space<vmem>>, %arg26: memref<1x1x32xf32, #tpu.memory_space<vmem>>, %arg27: memref<1x1x32xf32, #tpu.memory_space<vmem>>, %arg28: memref<32x256xf32, #tpu.memory_space<vmem>>, %arg29: memref<1x256xf32, #tpu.memory_space<vmem>>, %arg30: memref<1x16x256xf32, #tpu.memory_space<vmem>>, %arg31: memref<16x32xf32, #tpu.memory_space<vmem>>, %arg32: memref<16x32xf32, #tpu.memory_space<vmem>>, %arg33: memref<2x8x32xf32, #tpu.memory_space<vmem>>) attributes {dimension_semantics = [#tpu.dimension_semantics<parallel>, #tpu.dimension_semantics<arbitrary>], iteration_bounds = array<i64: 1, 2>, scalar_prefetch = 0 : i64, scratch_operands = 3 : i64, tpu.core_type = #tpu.core_type<tc>, window_params = [{transform_indices = @transform_0, window_bounds = array<i64: 1, 16, 1>}, {transform_indices = @transform_1, window_bounds = array<i64: 1, 16, 64>}, {transform_indices = @transform_2, window_bounds = array<i64: 1, 2, 8>}, {pipeline_mode = #tpu.pipeline_mode<synchronous>, transform_indices = @transform_3, window_bounds = array<i64: 256, 32>}, {pipeline_mode = #tpu.pipeline_mode<synchronous>, transform_indices = @transform_4, window_bounds = array<i64: 64, 32>}, {pipeline_mode = #tpu.pipeline_mode<synchronous>, transform_indices = @transform_5, window_bounds = array<i64: 1, 32>}, {transform_indices = @transform_6, window_bounds = array<i64: 1, 32, 96>}, {transform_indices = @transform_7, window_bounds = array<i64: 1, 1, 96>}, {transform_indices = @transform_8, window_bounds = array<i64: 1, 32, 32>}, {transform_indices = @transform_9, window_bounds = array<i64: 1, 1, 32>}, {transform_indices = @transform_10, window_bounds = array<i64: 1, 1, 32>}, {transform_indices = @transform_11, window_bounds = array<i64: 1, 1, 32>}, {transform_indices = @transform_12, window_bounds = array<i64: 1, 32, 32>}, {transform_indices = @transform_13, window_bounds = array<i64: 1, 1, 32>}, {transform_indices = @transform_14, window_bounds = array<i64: 1, 32, 64>}, {transform_indices = @transform_15, window_bounds = array<i64: 1, 1, 64>}, {transform_indices = @transform_16, window_bounds = array<i64: 1, 32, 32>}, {transform_indices = @transform_17, window_bounds = array<i64: 1, 1, 32>}, {transform_indices = @transform_18, window_bounds = array<i64: 1, 1, 32>}, {transform_indices = @transform_19, window_bounds = array<i64: 1, 1, 32>}, {transform_indices = @transform_20, window_bounds = array<i64: 1, 32, 128>}, {transform_indices = @transform_21, window_bounds = array<i64: 1, 1, 128>}, {transform_indices = @transform_22, window_bounds = array<i64: 1, 128, 32>}, {transform_indices = @transform_23, window_bounds = array<i64: 1, 1, 32>}, {transform_indices = @transform_24, window_bounds = array<i64: 1, 1, 32>}, {transform_indices = @transform_25, window_bounds = array<i64: 1, 1, 32>}, {pipeline_mode = #tpu.pipeline_mode<synchronous>, transform_indices = @transform_26, window_bounds = array<i64: 32, 256>}, {pipeline_mode = #tpu.pipeline_mode<synchronous>, transform_indices = @transform_27, window_bounds = array<i64: 1, 256>}, {transform_indices = @transform_28, window_bounds = array<i64: 1, 16, 256>}]} {
    %c0_i32 = arith.constant 0 : i32
    %0 = arith.cmpi eq, %arg1, %c0_i32 : i32
    %1 = arith.extui %0 : i1 to i32
    %c0_i32_0 = arith.constant 0 : i32
    %2 = arith.cmpi ne, %1, %c0_i32_0 : i32
    scf.if %2 {
      %c0_171 = arith.constant 0 : index
      %c0_172 = arith.constant 0 : index
      %c0_173 = arith.constant 0 : index
      %343 = vector.load %arg2[%c0_171, %c0_172, %c0_173] : memref<1x16x1xi32, #tpu.memory_space<vmem>>, vector<1x16x1xi32>
      %344 = vector.shape_cast %343 : vector<1x16x1xi32> to vector<16x1xi32>
      %345 = tpu.iota {dimensions = array<i32: 1>} : vector<16x256xi32>
      %346 = vector.broadcast %344 : vector<16x1xi32> to vector<16x256xi32>
      %347 = arith.cmpi eq, %345, %346 : vector<16x256xi32>
      %348 = arith.extui %347 : vector<16x256xi1> to vector<16x256xi32>
      %349 = arith.sitofp %348 : vector<16x256xi32> to vector<16x256xf32>
      %c0_174 = arith.constant 0 : index
      %c0_175 = arith.constant 0 : index
      %350 = vector.load %arg5[%c0_174, %c0_175] : memref<256x32xf32, #tpu.memory_space<vmem>>, vector<256x32xf32>
      %cst_176 = arith.constant dense<0.000000e+00> : vector<16x32xf32>
      %351 = tpu.matmul %349, %350, %cst_176 {dimension_numbers = #tpu.dot_dimension_numbers<[1], [0], [0], [1], [0, 0, 1, 1], [], []>} : vector<16x256xf32>, vector<256x32xf32>, vector<16x32xf32> -> vector<16x32xf32>
      %c0_177 = arith.constant 0 : index
      %c0_178 = arith.constant 0 : index
      %352 = vector.load %arg31[%c0_177, %c0_178] : memref<16x32xf32, #tpu.memory_space<vmem>>, vector<16x32xf32>
      tpu.vector_store %arg31[%c0_177, %c0_178], %351 {strides = array<i32>} : memref<16x32xf32, #tpu.memory_space<vmem>>, vector<16x32xf32>,
      %c0_179 = arith.constant 0 : index
      %c0_180 = arith.constant 0 : index
      %c0_181 = arith.constant 0 : index
      %353 = vector.load %arg3[%c0_179, %c0_180, %c0_181] : memref<1x16x64xf32, #tpu.memory_space<vmem>>, vector<1x16x64xf32>
      %354 = vector.shape_cast %353 : vector<1x16x64xf32> to vector<16x64xf32>
      %c0_182 = arith.constant 0 : index
      %c0_183 = arith.constant 0 : index
      %355 = vector.load %arg6[%c0_182, %c0_183] : memref<64x32xf32, #tpu.memory_space<vmem>>, vector<64x32xf32>
      %cst_184 = arith.constant dense<0.000000e+00> : vector<16x32xf32>
      %356 = tpu.matmul %354, %355, %cst_184 {dimension_numbers = #tpu.dot_dimension_numbers<[1], [0], [0], [1], [0, 0, 1, 1], [], []>} : vector<16x64xf32>, vector<64x32xf32>, vector<16x32xf32> -> vector<16x32xf32>
      %c0_185 = arith.constant 0 : index
      %c0_186 = arith.constant 0 : index
      %357 = vector.load %arg7[%c0_185, %c0_186] : memref<1x32xf32, #tpu.memory_space<vmem>>, vector<1x32xf32>
      %358 = vector.broadcast %357 : vector<1x32xf32> to vector<16x32xf32>
      %359 = arith.addf %356, %358 : vector<16x32xf32>
      %c0_187 = arith.constant 0 : index
      %c0_188 = arith.constant 0 : index
      %360 = vector.load %arg32[%c0_187, %c0_188] : memref<16x32xf32, #tpu.memory_space<vmem>>, vector<16x32xf32>
      tpu.vector_store %arg32[%c0_187, %c0_188], %359 {strides = array<i32>} : memref<16x32xf32, #tpu.memory_space<vmem>>, vector<16x32xf32>,
    } else {
    }
    %c0 = arith.constant 0 : index
    %c0_1 = arith.constant 0 : index
    %3 = vector.load %arg31[%c0, %c0_1] : memref<16x32xf32, #tpu.memory_space<vmem>>, vector<16x32xf32>
    %c0_2 = arith.constant 0 : index
    %c0_3 = arith.constant 0 : index
    %c0_4 = arith.constant 0 : index
    %4 = vector.load %arg8[%c0_2, %c0_3, %c0_4] : memref<1x32x96xf32, #tpu.memory_space<vmem>>, vector<1x32x96xf32>
    %5 = vector.shape_cast %4 : vector<1x32x96xf32> to vector<32x96xf32>
    %c0_5 = arith.constant 0 : index
    %c0_6 = arith.constant 0 : index
    %c0_7 = arith.constant 0 : index
    %6 = vector.load %arg9[%c0_5, %c0_6, %c0_7] : memref<1x1x96xf32, #tpu.memory_space<vmem>>, vector<1x1x96xf32>
    %7 = vector.shape_cast %6 : vector<1x1x96xf32> to vector<1x96xf32>
    %cst = arith.constant dense<0.000000e+00> : vector<16x96xf32>
    %8 = tpu.matmul %3, %5, %cst {dimension_numbers = #tpu.dot_dimension_numbers<[1], [0], [0], [1], [0, 0, 1, 1], [], []>} : vector<16x32xf32>, vector<32x96xf32>, vector<16x96xf32> -> vector<16x96xf32>
    %9 = vector.broadcast %7 : vector<1x96xf32> to vector<16x96xf32>
    %10 = arith.addf %8, %9 : vector<16x96xf32>
    %11 = vector.shape_cast %10 : vector<16x96xf32> to vector<2x8x96xf32>
    %12 = tpu.iota {dimensions = array<i32: 0>} : vector<8x8xi32>
    %13 = tpu.iota {dimensions = array<i32: 1>} : vector<8x8xi32>
    %14 = arith.cmpi sgt, %13, %12 : vector<8x8xi32>
    %15 = vector.shape_cast %14 : vector<8x8xi1> to vector<1x8x8xi1>
    %16 = vector.extract_strided_slice %11 {offsets = [0, 0, 0], sizes = [2, 8, 32], strides = [1, 1, 1]} : vector<2x8x96xf32> to vector<2x8x32xf32>
    %17 = vector.extract_strided_slice %11 {offsets = [0, 0, 32], sizes = [2, 8, 32], strides = [1, 1, 1]} : vector<2x8x96xf32> to vector<2x8x32xf32>
    %18 = vector.extract_strided_slice %11 {offsets = [0, 0, 64], sizes = [2, 8, 32], strides = [1, 1, 1]} : vector<2x8x96xf32> to vector<2x8x32xf32>
    %c0_8 = arith.constant 0 : index
    %c0_9 = arith.constant 0 : index
    %c0_10 = arith.constant 0 : index
    %19 = vector.load %arg10[%c0_8, %c0_9, %c0_10] : memref<1x32x32xf32, #tpu.memory_space<vmem>>, vector<1x32x32xf32>
    %20 = vector.shape_cast %19 : vector<1x32x32xf32> to vector<32x32xf32>
    %c0_11 = arith.constant 0 : index
    %c0_12 = arith.constant 0 : index
    %c0_13 = arith.constant 0 : index
    %21 = vector.load %arg11[%c0_11, %c0_12, %c0_13] : memref<1x1x32xf32, #tpu.memory_space<vmem>>, vector<1x1x32xf32>
    %22 = vector.shape_cast %21 : vector<1x1x32xf32> to vector<1x32xf32>
    %23 = vector.extract_strided_slice %16 {offsets = [0, 0, 0], sizes = [2, 8, 8], strides = [1, 1, 1]} : vector<2x8x32xf32> to vector<2x8x8xf32>
    %24 = vector.extract_strided_slice %17 {offsets = [0, 0, 0], sizes = [2, 8, 8], strides = [1, 1, 1]} : vector<2x8x32xf32> to vector<2x8x8xf32>
    "tpu.trace_start"() <{level = 10 : i32, message = "btd,bsd->bts"}> : () -> ()
    %cst_14 = arith.constant dense<0.000000e+00> : vector<2x8x8xf32>
    %25 = tpu.matmul %23, %24, %cst_14 {dimension_numbers = #tpu.dot_dimension_numbers<[2], [2], [1], [1], [0, 0, 0, 1, 1, 1], [0], [0]>} : vector<2x8x8xf32>, vector<2x8x8xf32>, vector<2x8x8xf32> -> vector<2x8x8xf32>
    "tpu.trace_stop"() : () -> ()
    %cst_15 = arith.constant 0.353553385 : f32
    %26 = vector.broadcast %cst_15 : f32 to vector<2x8x8xf32>
    %27 = arith.mulf %25, %26 : vector<2x8x8xf32>
    %cst_16 = arith.constant 0xFF800000 : f32
    %28 = vector.shape_cast %15 : vector<1x8x8xi1> to vector<1x8x8xi1>
    %29 = vector.broadcast %28 : vector<1x8x8xi1> to vector<2x8x8xi1>
    %30 = vector.broadcast %cst_16 : f32 to vector<2x8x8xf32>
    %31 = arith.select %29, %30, %27 : vector<2x8x8xi1>, vector<2x8x8xf32>
    %cst_17 = arith.constant dense<0xFF800000> : vector<2x8xf32>
    %32 = vector.multi_reduction <maximumf>, %31, %cst_17 [2] : vector<2x8x8xf32> to vector<2x8xf32>
    %33 = vector.shape_cast %32 : vector<2x8xf32> to vector<2x8x1xf32>
    %34 = vector.broadcast %33 : vector<2x8x1xf32> to vector<2x8x8xf32>
    %35 = arith.subf %31, %34 : vector<2x8x8xf32>
    %36 = math.exp %35 : vector<2x8x8xf32>
    %cst_18 = arith.constant dense<0.000000e+00> : vector<2x8xf32>
    %37 = vector.multi_reduction <add>, %36, %cst_18 [2] : vector<2x8x8xf32> to vector<2x8xf32>
    %38 = vector.shape_cast %37 : vector<2x8xf32> to vector<2x8x1xf32>
    %39 = tpu.reciprocal %38 {approx = true} : vector<2x8x1xf32> -> vector<2x8x1xf32>
    %40 = vector.broadcast %39 : vector<2x8x1xf32> to vector<2x8x8xf32>
    %41 = arith.mulf %36, %40 : vector<2x8x8xf32>
    %42 = vector.extract_strided_slice %18 {offsets = [0, 0, 0], sizes = [2, 8, 8], strides = [1, 1, 1]} : vector<2x8x32xf32> to vector<2x8x8xf32>
    "tpu.trace_start"() <{level = 10 : i32, message = "bts,bsd->btd"}> : () -> ()
    %cst_19 = arith.constant dense<0.000000e+00> : vector<2x8x8xf32>
    %43 = tpu.matmul %41, %42, %cst_19 {dimension_numbers = #tpu.dot_dimension_numbers<[2], [1], [1], [2], [0, 0, 0, 1, 1, 2], [0], [0]>} : vector<2x8x8xf32>, vector<2x8x8xf32>, vector<2x8x8xf32> -> vector<2x8x8xf32>
    "tpu.trace_stop"() : () -> ()
    %c0_20 = arith.constant 0 : index
    %c0_21 = arith.constant 0 : index
    %c0_22 = arith.constant 0 : index
    %44 = vector.load %arg33[%c0_20, %c0_21, %c0_22] : memref<2x8x32xf32, #tpu.memory_space<vmem>>, vector<2x8x8xf32>
    tpu.vector_store %arg33[%c0_20, %c0_21, %c0_22], %43 {strides = array<i32>} : memref<2x8x32xf32, #tpu.memory_space<vmem>>, vector<2x8x8xf32>,
    %45 = vector.extract_strided_slice %16 {offsets = [0, 0, 8], sizes = [2, 8, 8], strides = [1, 1, 1]} : vector<2x8x32xf32> to vector<2x8x8xf32>
    %46 = vector.extract_strided_slice %17 {offsets = [0, 0, 8], sizes = [2, 8, 8], strides = [1, 1, 1]} : vector<2x8x32xf32> to vector<2x8x8xf32>
    "tpu.trace_start"() <{level = 10 : i32, message = "btd,bsd->bts"}> : () -> ()
    %cst_23 = arith.constant dense<0.000000e+00> : vector<2x8x8xf32>
    %47 = tpu.matmul %45, %46, %cst_23 {dimension_numbers = #tpu.dot_dimension_numbers<[2], [2], [1], [1], [0, 0, 0, 1, 1, 1], [0], [0]>} : vector<2x8x8xf32>, vector<2x8x8xf32>, vector<2x8x8xf32> -> vector<2x8x8xf32>
    "tpu.trace_stop"() : () -> ()
    %cst_24 = arith.constant 0.353553385 : f32
    %48 = vector.broadcast %cst_24 : f32 to vector<2x8x8xf32>
    %49 = arith.mulf %47, %48 : vector<2x8x8xf32>
    %cst_25 = arith.constant 0xFF800000 : f32
    %50 = vector.shape_cast %15 : vector<1x8x8xi1> to vector<1x8x8xi1>
    %51 = vector.broadcast %50 : vector<1x8x8xi1> to vector<2x8x8xi1>
    %52 = vector.broadcast %cst_25 : f32 to vector<2x8x8xf32>
    %53 = arith.select %51, %52, %49 : vector<2x8x8xi1>, vector<2x8x8xf32>
    %cst_26 = arith.constant dense<0xFF800000> : vector<2x8xf32>
    %54 = vector.multi_reduction <maximumf>, %53, %cst_26 [2] : vector<2x8x8xf32> to vector<2x8xf32>
    %55 = vector.shape_cast %54 : vector<2x8xf32> to vector<2x8x1xf32>
    %56 = vector.broadcast %55 : vector<2x8x1xf32> to vector<2x8x8xf32>
    %57 = arith.subf %53, %56 : vector<2x8x8xf32>
    %58 = math.exp %57 : vector<2x8x8xf32>
    %cst_27 = arith.constant dense<0.000000e+00> : vector<2x8xf32>
    %59 = vector.multi_reduction <add>, %58, %cst_27 [2] : vector<2x8x8xf32> to vector<2x8xf32>
    %60 = vector.shape_cast %59 : vector<2x8xf32> to vector<2x8x1xf32>
    %61 = tpu.reciprocal %60 {approx = true} : vector<2x8x1xf32> -> vector<2x8x1xf32>
    %62 = vector.broadcast %61 : vector<2x8x1xf32> to vector<2x8x8xf32>
    %63 = arith.mulf %58, %62 : vector<2x8x8xf32>
    %64 = vector.extract_strided_slice %18 {offsets = [0, 0, 8], sizes = [2, 8, 8], strides = [1, 1, 1]} : vector<2x8x32xf32> to vector<2x8x8xf32>
    "tpu.trace_start"() <{level = 10 : i32, message = "bts,bsd->btd"}> : () -> ()
    %cst_28 = arith.constant dense<0.000000e+00> : vector<2x8x8xf32>
    %65 = tpu.matmul %63, %64, %cst_28 {dimension_numbers = #tpu.dot_dimension_numbers<[2], [1], [1], [2], [0, 0, 0, 1, 1, 2], [0], [0]>} : vector<2x8x8xf32>, vector<2x8x8xf32>, vector<2x8x8xf32> -> vector<2x8x8xf32>
    "tpu.trace_stop"() : () -> ()
    %c0_29 = arith.constant 0 : index
    %c0_30 = arith.constant 0 : index
    %c8 = arith.constant 8 : index
    %66 = vector.load %arg33[%c0_29, %c0_30, %c8] : memref<2x8x32xf32, #tpu.memory_space<vmem>>, vector<2x8x8xf32>
    tpu.vector_store %arg33[%c0_29, %c0_30, %c8], %65 {strides = array<i32>} : memref<2x8x32xf32, #tpu.memory_space<vmem>>, vector<2x8x8xf32>,
    %67 = vector.extract_strided_slice %16 {offsets = [0, 0, 16], sizes = [2, 8, 8], strides = [1, 1, 1]} : vector<2x8x32xf32> to vector<2x8x8xf32>
    %68 = vector.extract_strided_slice %17 {offsets = [0, 0, 16], sizes = [2, 8, 8], strides = [1, 1, 1]} : vector<2x8x32xf32> to vector<2x8x8xf32>
    "tpu.trace_start"() <{level = 10 : i32, message = "btd,bsd->bts"}> : () -> ()
    %cst_31 = arith.constant dense<0.000000e+00> : vector<2x8x8xf32>
    %69 = tpu.matmul %67, %68, %cst_31 {dimension_numbers = #tpu.dot_dimension_numbers<[2], [2], [1], [1], [0, 0, 0, 1, 1, 1], [0], [0]>} : vector<2x8x8xf32>, vector<2x8x8xf32>, vector<2x8x8xf32> -> vector<2x8x8xf32>
    "tpu.trace_stop"() : () -> ()
    %cst_32 = arith.constant 0.353553385 : f32
    %70 = vector.broadcast %cst_32 : f32 to vector<2x8x8xf32>
    %71 = arith.mulf %69, %70 : vector<2x8x8xf32>
    %cst_33 = arith.constant 0xFF800000 : f32
    %72 = vector.shape_cast %15 : vector<1x8x8xi1> to vector<1x8x8xi1>
    %73 = vector.broadcast %72 : vector<1x8x8xi1> to vector<2x8x8xi1>
    %74 = vector.broadcast %cst_33 : f32 to vector<2x8x8xf32>
    %75 = arith.select %73, %74, %71 : vector<2x8x8xi1>, vector<2x8x8xf32>
    %cst_34 = arith.constant dense<0xFF800000> : vector<2x8xf32>
    %76 = vector.multi_reduction <maximumf>, %75, %cst_34 [2] : vector<2x8x8xf32> to vector<2x8xf32>
    %77 = vector.shape_cast %76 : vector<2x8xf32> to vector<2x8x1xf32>
    %78 = vector.broadcast %77 : vector<2x8x1xf32> to vector<2x8x8xf32>
    %79 = arith.subf %75, %78 : vector<2x8x8xf32>
    %80 = math.exp %79 : vector<2x8x8xf32>
    %cst_35 = arith.constant dense<0.000000e+00> : vector<2x8xf32>
    %81 = vector.multi_reduction <add>, %80, %cst_35 [2] : vector<2x8x8xf32> to vector<2x8xf32>
    %82 = vector.shape_cast %81 : vector<2x8xf32> to vector<2x8x1xf32>
    %83 = tpu.reciprocal %82 {approx = true} : vector<2x8x1xf32> -> vector<2x8x1xf32>
    %84 = vector.broadcast %83 : vector<2x8x1xf32> to vector<2x8x8xf32>
    %85 = arith.mulf %80, %84 : vector<2x8x8xf32>
    %86 = vector.extract_strided_slice %18 {offsets = [0, 0, 16], sizes = [2, 8, 8], strides = [1, 1, 1]} : vector<2x8x32xf32> to vector<2x8x8xf32>
    "tpu.trace_start"() <{level = 10 : i32, message = "bts,bsd->btd"}> : () -> ()
    %cst_36 = arith.constant dense<0.000000e+00> : vector<2x8x8xf32>
    %87 = tpu.matmul %85, %86, %cst_36 {dimension_numbers = #tpu.dot_dimension_numbers<[2], [1], [1], [2], [0, 0, 0, 1, 1, 2], [0], [0]>} : vector<2x8x8xf32>, vector<2x8x8xf32>, vector<2x8x8xf32> -> vector<2x8x8xf32>
    "tpu.trace_stop"() : () -> ()
    %c0_37 = arith.constant 0 : index
    %c0_38 = arith.constant 0 : index
    %c16 = arith.constant 16 : index
    %88 = vector.load %arg33[%c0_37, %c0_38, %c16] : memref<2x8x32xf32, #tpu.memory_space<vmem>>, vector<2x8x8xf32>
    tpu.vector_store %arg33[%c0_37, %c0_38, %c16], %87 {strides = array<i32>} : memref<2x8x32xf32, #tpu.memory_space<vmem>>, vector<2x8x8xf32>,
    %89 = vector.extract_strided_slice %16 {offsets = [0, 0, 24], sizes = [2, 8, 8], strides = [1, 1, 1]} : vector<2x8x32xf32> to vector<2x8x8xf32>
    %90 = vector.extract_strided_slice %17 {offsets = [0, 0, 24], sizes = [2, 8, 8], strides = [1, 1, 1]} : vector<2x8x32xf32> to vector<2x8x8xf32>
    "tpu.trace_start"() <{level = 10 : i32, message = "btd,bsd->bts"}> : () -> ()
    %cst_39 = arith.constant dense<0.000000e+00> : vector<2x8x8xf32>
    %91 = tpu.matmul %89, %90, %cst_39 {dimension_numbers = #tpu.dot_dimension_numbers<[2], [2], [1], [1], [0, 0, 0, 1, 1, 1], [0], [0]>} : vector<2x8x8xf32>, vector<2x8x8xf32>, vector<2x8x8xf32> -> vector<2x8x8xf32>
    "tpu.trace_stop"() : () -> ()
    %cst_40 = arith.constant 0.353553385 : f32
    %92 = vector.broadcast %cst_40 : f32 to vector<2x8x8xf32>
    %93 = arith.mulf %91, %92 : vector<2x8x8xf32>
    %cst_41 = arith.constant 0xFF800000 : f32
    %94 = vector.shape_cast %15 : vector<1x8x8xi1> to vector<1x8x8xi1>
    %95 = vector.broadcast %94 : vector<1x8x8xi1> to vector<2x8x8xi1>
    %96 = vector.broadcast %cst_41 : f32 to vector<2x8x8xf32>
    %97 = arith.select %95, %96, %93 : vector<2x8x8xi1>, vector<2x8x8xf32>
    %cst_42 = arith.constant dense<0xFF800000> : vector<2x8xf32>
    %98 = vector.multi_reduction <maximumf>, %97, %cst_42 [2] : vector<2x8x8xf32> to vector<2x8xf32>
    %99 = vector.shape_cast %98 : vector<2x8xf32> to vector<2x8x1xf32>
    %100 = vector.broadcast %99 : vector<2x8x1xf32> to vector<2x8x8xf32>
    %101 = arith.subf %97, %100 : vector<2x8x8xf32>
    %102 = math.exp %101 : vector<2x8x8xf32>
    %cst_43 = arith.constant dense<0.000000e+00> : vector<2x8xf32>
    %103 = vector.multi_reduction <add>, %102, %cst_43 [2] : vector<2x8x8xf32> to vector<2x8xf32>
    %104 = vector.shape_cast %103 : vector<2x8xf32> to vector<2x8x1xf32>
    %105 = tpu.reciprocal %104 {approx = true} : vector<2x8x1xf32> -> vector<2x8x1xf32>
    %106 = vector.broadcast %105 : vector<2x8x1xf32> to vector<2x8x8xf32>
    %107 = arith.mulf %102, %106 : vector<2x8x8xf32>
    %108 = vector.extract_strided_slice %18 {offsets = [0, 0, 24], sizes = [2, 8, 8], strides = [1, 1, 1]} : vector<2x8x32xf32> to vector<2x8x8xf32>
    "tpu.trace_start"() <{level = 10 : i32, message = "bts,bsd->btd"}> : () -> ()
    %cst_44 = arith.constant dense<0.000000e+00> : vector<2x8x8xf32>
    %109 = tpu.matmul %107, %108, %cst_44 {dimension_numbers = #tpu.dot_dimension_numbers<[2], [1], [1], [2], [0, 0, 0, 1, 1, 2], [0], [0]>} : vector<2x8x8xf32>, vector<2x8x8xf32>, vector<2x8x8xf32> -> vector<2x8x8xf32>
    "tpu.trace_stop"() : () -> ()
    %c0_45 = arith.constant 0 : index
    %c0_46 = arith.constant 0 : index
    %c24 = arith.constant 24 : index
    %110 = vector.load %arg33[%c0_45, %c0_46, %c24] : memref<2x8x32xf32, #tpu.memory_space<vmem>>, vector<2x8x8xf32>
    tpu.vector_store %arg33[%c0_45, %c0_46, %c24], %109 {strides = array<i32>} : memref<2x8x32xf32, #tpu.memory_space<vmem>>, vector<2x8x8xf32>,
    %c0_47 = arith.constant 0 : index
    %c0_48 = arith.constant 0 : index
    %c0_49 = arith.constant 0 : index
    %111 = vector.load %arg33[%c0_47, %c0_48, %c0_49] : memref<2x8x32xf32, #tpu.memory_space<vmem>>, vector<2x8x32xf32>
    %112 = vector.shape_cast %111 : vector<2x8x32xf32> to vector<16x32xf32>
    %cst_50 = arith.constant dense<0.000000e+00> : vector<16x32xf32>
    %113 = tpu.matmul %112, %20, %cst_50 {dimension_numbers = #tpu.dot_dimension_numbers<[1], [0], [0], [1], [0, 0, 1, 1], [], []>} : vector<16x32xf32>, vector<32x32xf32>, vector<16x32xf32> -> vector<16x32xf32>
    %114 = vector.broadcast %22 : vector<1x32xf32> to vector<16x32xf32>
    %115 = arith.addf %113, %114 : vector<16x32xf32>
    %116 = arith.addf %3, %115 : vector<16x32xf32>
    %cst_51 = arith.constant dense<0.000000e+00> : vector<16xf32>
    %117 = vector.multi_reduction <add>, %116, %cst_51 [1] : vector<16x32xf32> to vector<16xf32>
    %118 = vector.shape_cast %117 : vector<16xf32> to vector<16x1xf32>
    %cst_52 = arith.constant 3.200000e+01 : f32
    %119 = vector.broadcast %cst_52 : f32 to vector<16x1xf32>
    %120 = arith.divf %118, %119 : vector<16x1xf32>
    %121 = vector.broadcast %120 : vector<16x1xf32> to vector<16x32xf32>
    %122 = arith.subf %116, %121 : vector<16x32xf32>
    %123 = arith.mulf %122, %122 : vector<16x32xf32>
    %cst_53 = arith.constant dense<0.000000e+00> : vector<16xf32>
    %124 = vector.multi_reduction <add>, %123, %cst_53 [1] : vector<16x32xf32> to vector<16xf32>
    %125 = vector.shape_cast %124 : vector<16xf32> to vector<16x1xf32>
    %cst_54 = arith.constant 3.200000e+01 : f32
    %126 = vector.broadcast %cst_54 : f32 to vector<16x1xf32>
    %127 = arith.divf %125, %126 : vector<16x1xf32>
    %cst_55 = arith.constant 9.99999974E-6 : f32
    %128 = vector.broadcast %cst_55 : f32 to vector<16x1xf32>
    %129 = arith.addf %127, %128 : vector<16x1xf32>
    %130 = math.rsqrt %129 : vector<16x1xf32>
    %131 = vector.broadcast %130 : vector<16x1xf32> to vector<16x32xf32>
    %132 = arith.mulf %122, %131 : vector<16x32xf32>
    %c0_56 = arith.constant 0 : index
    %c0_57 = arith.constant 0 : index
    %c0_58 = arith.constant 0 : index
    %133 = vector.load %arg12[%c0_56, %c0_57, %c0_58] : memref<1x1x32xf32, #tpu.memory_space<vmem>>, vector<1x1x32xf32>
    %134 = vector.shape_cast %133 : vector<1x1x32xf32> to vector<1x32xf32>
    %135 = vector.broadcast %134 : vector<1x32xf32> to vector<16x32xf32>
    %136 = arith.mulf %132, %135 : vector<16x32xf32>
    %c0_59 = arith.constant 0 : index
    %c0_60 = arith.constant 0 : index
    %c0_61 = arith.constant 0 : index
    %137 = vector.load %arg13[%c0_59, %c0_60, %c0_61] : memref<1x1x32xf32, #tpu.memory_space<vmem>>, vector<1x1x32xf32>
    %138 = vector.shape_cast %137 : vector<1x1x32xf32> to vector<1x32xf32>
    %139 = vector.broadcast %138 : vector<1x32xf32> to vector<16x32xf32>
    %140 = arith.addf %136, %139 : vector<16x32xf32>
    %c0_62 = arith.constant 0 : index
    %c0_63 = arith.constant 0 : index
    %c0_64 = arith.constant 0 : index
    %141 = vector.load %arg14[%c0_62, %c0_63, %c0_64] : memref<1x32x32xf32, #tpu.memory_space<vmem>>, vector<1x32x32xf32>
    %142 = vector.shape_cast %141 : vector<1x32x32xf32> to vector<32x32xf32>
    %c0_65 = arith.constant 0 : index
    %c0_66 = arith.constant 0 : index
    %c0_67 = arith.constant 0 : index
    %143 = vector.load %arg15[%c0_65, %c0_66, %c0_67] : memref<1x1x32xf32, #tpu.memory_space<vmem>>, vector<1x1x32xf32>
    %144 = vector.shape_cast %143 : vector<1x1x32xf32> to vector<1x32xf32>
    %cst_68 = arith.constant dense<0.000000e+00> : vector<16x32xf32>
    %145 = tpu.matmul %140, %142, %cst_68 {dimension_numbers = #tpu.dot_dimension_numbers<[1], [0], [0], [1], [0, 0, 1, 1], [], []>} : vector<16x32xf32>, vector<32x32xf32>, vector<16x32xf32> -> vector<16x32xf32>
    %146 = vector.broadcast %144 : vector<1x32xf32> to vector<16x32xf32>
    %147 = arith.addf %145, %146 : vector<16x32xf32>
    %148 = vector.shape_cast %147 : vector<16x32xf32> to vector<2x8x32xf32>
    %c0_69 = arith.constant 0 : index
    %c0_70 = arith.constant 0 : index
    %149 = vector.load %arg32[%c0_69, %c0_70] : memref<16x32xf32, #tpu.memory_space<vmem>>, vector<16x32xf32>
    %c0_71 = arith.constant 0 : index
    %c0_72 = arith.constant 0 : index
    %c0_73 = arith.constant 0 : index
    %150 = vector.load %arg16[%c0_71, %c0_72, %c0_73] : memref<1x32x64xf32, #tpu.memory_space<vmem>>, vector<1x32x64xf32>
    %151 = vector.shape_cast %150 : vector<1x32x64xf32> to vector<32x64xf32>
    %c0_74 = arith.constant 0 : index
    %c0_75 = arith.constant 0 : index
    %c0_76 = arith.constant 0 : index
    %152 = vector.load %arg17[%c0_74, %c0_75, %c0_76] : memref<1x1x64xf32, #tpu.memory_space<vmem>>, vector<1x1x64xf32>
    %153 = vector.shape_cast %152 : vector<1x1x64xf32> to vector<1x64xf32>
    %cst_77 = arith.constant dense<0.000000e+00> : vector<16x64xf32>
    %154 = tpu.matmul %149, %151, %cst_77 {dimension_numbers = #tpu.dot_dimension_numbers<[1], [0], [0], [1], [0, 0, 1, 1], [], []>} : vector<16x32xf32>, vector<32x64xf32>, vector<16x64xf32> -> vector<16x64xf32>
    %155 = vector.broadcast %153 : vector<1x64xf32> to vector<16x64xf32>
    %156 = arith.addf %154, %155 : vector<16x64xf32>
    %157 = vector.shape_cast %156 : vector<16x64xf32> to vector<2x8x64xf32>
    %c0_78 = arith.constant 0 : index
    %c0_79 = arith.constant 0 : index
    %c0_80 = arith.constant 0 : index
    %158 = vector.load %arg4[%c0_78, %c0_79, %c0_80] : memref<1x2x8xi32, #tpu.memory_space<vmem>>, vector<1x2x8xi32>
    %159 = vector.shape_cast %158 : vector<1x2x8xi32> to vector<2x8xi32>
    %c0_i32_81 = arith.constant 0 : i32
    %160 = vector.broadcast %c0_i32_81 : i32 to vector<2x8xi32>
    %161 = arith.cmpi ne, %159, %160 : vector<2x8xi32>
    %162 = vector.shape_cast %161 : vector<2x8xi1> to vector<2x1x8xi1>
    %163 = vector.extract_strided_slice %157 {offsets = [0, 0, 0], sizes = [2, 8, 32], strides = [1, 1, 1]} : vector<2x8x64xf32> to vector<2x8x32xf32>
    %164 = vector.extract_strided_slice %157 {offsets = [0, 0, 32], sizes = [2, 8, 32], strides = [1, 1, 1]} : vector<2x8x64xf32> to vector<2x8x32xf32>
    %c0_82 = arith.constant 0 : index
    %c0_83 = arith.constant 0 : index
    %c0_84 = arith.constant 0 : index
    %165 = vector.load %arg18[%c0_82, %c0_83, %c0_84] : memref<1x32x32xf32, #tpu.memory_space<vmem>>, vector<1x32x32xf32>
    %166 = vector.shape_cast %165 : vector<1x32x32xf32> to vector<32x32xf32>
    %c0_85 = arith.constant 0 : index
    %c0_86 = arith.constant 0 : index
    %c0_87 = arith.constant 0 : index
    %167 = vector.load %arg19[%c0_85, %c0_86, %c0_87] : memref<1x1x32xf32, #tpu.memory_space<vmem>>, vector<1x1x32xf32>
    %168 = vector.shape_cast %167 : vector<1x1x32xf32> to vector<1x32xf32>
    %169 = vector.extract_strided_slice %148 {offsets = [0, 0, 0], sizes = [2, 8, 8], strides = [1, 1, 1]} : vector<2x8x32xf32> to vector<2x8x8xf32>
    %170 = vector.extract_strided_slice %163 {offsets = [0, 0, 0], sizes = [2, 8, 8], strides = [1, 1, 1]} : vector<2x8x32xf32> to vector<2x8x8xf32>
    "tpu.trace_start"() <{level = 10 : i32, message = "btd,bsd->bts"}> : () -> ()
    %cst_88 = arith.constant dense<0.000000e+00> : vector<2x8x8xf32>
    %171 = tpu.matmul %169, %170, %cst_88 {dimension_numbers = #tpu.dot_dimension_numbers<[2], [2], [1], [1], [0, 0, 0, 1, 1, 1], [0], [0]>} : vector<2x8x8xf32>, vector<2x8x8xf32>, vector<2x8x8xf32> -> vector<2x8x8xf32>
    "tpu.trace_stop"() : () -> ()
    %cst_89 = arith.constant 0.353553385 : f32
    %172 = vector.broadcast %cst_89 : f32 to vector<2x8x8xf32>
    %173 = arith.mulf %171, %172 : vector<2x8x8xf32>
    %cst_90 = arith.constant 0xFF800000 : f32
    %174 = vector.shape_cast %162 : vector<2x1x8xi1> to vector<2x1x8xi1>
    %175 = vector.broadcast %174 : vector<2x1x8xi1> to vector<2x8x8xi1>
    %176 = vector.broadcast %cst_90 : f32 to vector<2x8x8xf32>
    %177 = arith.select %175, %176, %173 : vector<2x8x8xi1>, vector<2x8x8xf32>
    %cst_91 = arith.constant dense<0xFF800000> : vector<2x8xf32>
    %178 = vector.multi_reduction <maximumf>, %177, %cst_91 [2] : vector<2x8x8xf32> to vector<2x8xf32>
    %179 = vector.shape_cast %178 : vector<2x8xf32> to vector<2x8x1xf32>
    %180 = vector.broadcast %179 : vector<2x8x1xf32> to vector<2x8x8xf32>
    %181 = arith.subf %177, %180 : vector<2x8x8xf32>
    %182 = math.exp %181 : vector<2x8x8xf32>
    %cst_92 = arith.constant dense<0.000000e+00> : vector<2x8xf32>
    %183 = vector.multi_reduction <add>, %182, %cst_92 [2] : vector<2x8x8xf32> to vector<2x8xf32>
    %184 = vector.shape_cast %183 : vector<2x8xf32> to vector<2x8x1xf32>
    %185 = tpu.reciprocal %184 {approx = true} : vector<2x8x1xf32> -> vector<2x8x1xf32>
    %186 = vector.broadcast %185 : vector<2x8x1xf32> to vector<2x8x8xf32>
    %187 = arith.mulf %182, %186 : vector<2x8x8xf32>
    %188 = vector.extract_strided_slice %164 {offsets = [0, 0, 0], sizes = [2, 8, 8], strides = [1, 1, 1]} : vector<2x8x32xf32> to vector<2x8x8xf32>
    "tpu.trace_start"() <{level = 10 : i32, message = "bts,bsd->btd"}> : () -> ()
    %cst_93 = arith.constant dense<0.000000e+00> : vector<2x8x8xf32>
    %189 = tpu.matmul %187, %188, %cst_93 {dimension_numbers = #tpu.dot_dimension_numbers<[2], [1], [1], [2], [0, 0, 0, 1, 1, 2], [0], [0]>} : vector<2x8x8xf32>, vector<2x8x8xf32>, vector<2x8x8xf32> -> vector<2x8x8xf32>
    "tpu.trace_stop"() : () -> ()
    %c0_94 = arith.constant 0 : index
    %c0_95 = arith.constant 0 : index
    %c0_96 = arith.constant 0 : index
    %190 = vector.load %arg33[%c0_94, %c0_95, %c0_96] : memref<2x8x32xf32, #tpu.memory_space<vmem>>, vector<2x8x8xf32>
    tpu.vector_store %arg33[%c0_94, %c0_95, %c0_96], %189 {strides = array<i32>} : memref<2x8x32xf32, #tpu.memory_space<vmem>>, vector<2x8x8xf32>,
    %191 = vector.extract_strided_slice %148 {offsets = [0, 0, 8], sizes = [2, 8, 8], strides = [1, 1, 1]} : vector<2x8x32xf32> to vector<2x8x8xf32>
    %192 = vector.extract_strided_slice %163 {offsets = [0, 0, 8], sizes = [2, 8, 8], strides = [1, 1, 1]} : vector<2x8x32xf32> to vector<2x8x8xf32>
    "tpu.trace_start"() <{level = 10 : i32, message = "btd,bsd->bts"}> : () -> ()
    %cst_97 = arith.constant dense<0.000000e+00> : vector<2x8x8xf32>
    %193 = tpu.matmul %191, %192, %cst_97 {dimension_numbers = #tpu.dot_dimension_numbers<[2], [2], [1], [1], [0, 0, 0, 1, 1, 1], [0], [0]>} : vector<2x8x8xf32>, vector<2x8x8xf32>, vector<2x8x8xf32> -> vector<2x8x8xf32>
    "tpu.trace_stop"() : () -> ()
    %cst_98 = arith.constant 0.353553385 : f32
    %194 = vector.broadcast %cst_98 : f32 to vector<2x8x8xf32>
    %195 = arith.mulf %193, %194 : vector<2x8x8xf32>
    %cst_99 = arith.constant 0xFF800000 : f32
    %196 = vector.shape_cast %162 : vector<2x1x8xi1> to vector<2x1x8xi1>
    %197 = vector.broadcast %196 : vector<2x1x8xi1> to vector<2x8x8xi1>
    %198 = vector.broadcast %cst_99 : f32 to vector<2x8x8xf32>
    %199 = arith.select %197, %198, %195 : vector<2x8x8xi1>, vector<2x8x8xf32>
    %cst_100 = arith.constant dense<0xFF800000> : vector<2x8xf32>
    %200 = vector.multi_reduction <maximumf>, %199, %cst_100 [2] : vector<2x8x8xf32> to vector<2x8xf32>
    %201 = vector.shape_cast %200 : vector<2x8xf32> to vector<2x8x1xf32>
    %202 = vector.broadcast %201 : vector<2x8x1xf32> to vector<2x8x8xf32>
    %203 = arith.subf %199, %202 : vector<2x8x8xf32>
    %204 = math.exp %203 : vector<2x8x8xf32>
    %cst_101 = arith.constant dense<0.000000e+00> : vector<2x8xf32>
    %205 = vector.multi_reduction <add>, %204, %cst_101 [2] : vector<2x8x8xf32> to vector<2x8xf32>
    %206 = vector.shape_cast %205 : vector<2x8xf32> to vector<2x8x1xf32>
    %207 = tpu.reciprocal %206 {approx = true} : vector<2x8x1xf32> -> vector<2x8x1xf32>
    %208 = vector.broadcast %207 : vector<2x8x1xf32> to vector<2x8x8xf32>
    %209 = arith.mulf %204, %208 : vector<2x8x8xf32>
    %210 = vector.extract_strided_slice %164 {offsets = [0, 0, 8], sizes = [2, 8, 8], strides = [1, 1, 1]} : vector<2x8x32xf32> to vector<2x8x8xf32>
    "tpu.trace_start"() <{level = 10 : i32, message = "bts,bsd->btd"}> : () -> ()
    %cst_102 = arith.constant dense<0.000000e+00> : vector<2x8x8xf32>
    %211 = tpu.matmul %209, %210, %cst_102 {dimension_numbers = #tpu.dot_dimension_numbers<[2], [1], [1], [2], [0, 0, 0, 1, 1, 2], [0], [0]>} : vector<2x8x8xf32>, vector<2x8x8xf32>, vector<2x8x8xf32> -> vector<2x8x8xf32>
    "tpu.trace_stop"() : () -> ()
    %c0_103 = arith.constant 0 : index
    %c0_104 = arith.constant 0 : index
    %c8_105 = arith.constant 8 : index
    %212 = vector.load %arg33[%c0_103, %c0_104, %c8_105] : memref<2x8x32xf32, #tpu.memory_space<vmem>>, vector<2x8x8xf32>
    tpu.vector_store %arg33[%c0_103, %c0_104, %c8_105], %211 {strides = array<i32>} : memref<2x8x32xf32, #tpu.memory_space<vmem>>, vector<2x8x8xf32>,
    %213 = vector.extract_strided_slice %148 {offsets = [0, 0, 16], sizes = [2, 8, 8], strides = [1, 1, 1]} : vector<2x8x32xf32> to vector<2x8x8xf32>
    %214 = vector.extract_strided_slice %163 {offsets = [0, 0, 16], sizes = [2, 8, 8], strides = [1, 1, 1]} : vector<2x8x32xf32> to vector<2x8x8xf32>
    "tpu.trace_start"() <{level = 10 : i32, message = "btd,bsd->bts"}> : () -> ()
    %cst_106 = arith.constant dense<0.000000e+00> : vector<2x8x8xf32>
    %215 = tpu.matmul %213, %214, %cst_106 {dimension_numbers = #tpu.dot_dimension_numbers<[2], [2], [1], [1], [0, 0, 0, 1, 1, 1], [0], [0]>} : vector<2x8x8xf32>, vector<2x8x8xf32>, vector<2x8x8xf32> -> vector<2x8x8xf32>
    "tpu.trace_stop"() : () -> ()
    %cst_107 = arith.constant 0.353553385 : f32
    %216 = vector.broadcast %cst_107 : f32 to vector<2x8x8xf32>
    %217 = arith.mulf %215, %216 : vector<2x8x8xf32>
    %cst_108 = arith.constant 0xFF800000 : f32
    %218 = vector.shape_cast %162 : vector<2x1x8xi1> to vector<2x1x8xi1>
    %219 = vector.broadcast %218 : vector<2x1x8xi1> to vector<2x8x8xi1>
    %220 = vector.broadcast %cst_108 : f32 to vector<2x8x8xf32>
    %221 = arith.select %219, %220, %217 : vector<2x8x8xi1>, vector<2x8x8xf32>
    %cst_109 = arith.constant dense<0xFF800000> : vector<2x8xf32>
    %222 = vector.multi_reduction <maximumf>, %221, %cst_109 [2] : vector<2x8x8xf32> to vector<2x8xf32>
    %223 = vector.shape_cast %222 : vector<2x8xf32> to vector<2x8x1xf32>
    %224 = vector.broadcast %223 : vector<2x8x1xf32> to vector<2x8x8xf32>
    %225 = arith.subf %221, %224 : vector<2x8x8xf32>
    %226 = math.exp %225 : vector<2x8x8xf32>
    %cst_110 = arith.constant dense<0.000000e+00> : vector<2x8xf32>
    %227 = vector.multi_reduction <add>, %226, %cst_110 [2] : vector<2x8x8xf32> to vector<2x8xf32>
    %228 = vector.shape_cast %227 : vector<2x8xf32> to vector<2x8x1xf32>
    %229 = tpu.reciprocal %228 {approx = true} : vector<2x8x1xf32> -> vector<2x8x1xf32>
    %230 = vector.broadcast %229 : vector<2x8x1xf32> to vector<2x8x8xf32>
    %231 = arith.mulf %226, %230 : vector<2x8x8xf32>
    %232 = vector.extract_strided_slice %164 {offsets = [0, 0, 16], sizes = [2, 8, 8], strides = [1, 1, 1]} : vector<2x8x32xf32> to vector<2x8x8xf32>
    "tpu.trace_start"() <{level = 10 : i32, message = "bts,bsd->btd"}> : () -> ()
    %cst_111 = arith.constant dense<0.000000e+00> : vector<2x8x8xf32>
    %233 = tpu.matmul %231, %232, %cst_111 {dimension_numbers = #tpu.dot_dimension_numbers<[2], [1], [1], [2], [0, 0, 0, 1, 1, 2], [0], [0]>} : vector<2x8x8xf32>, vector<2x8x8xf32>, vector<2x8x8xf32> -> vector<2x8x8xf32>
    "tpu.trace_stop"() : () -> ()
    %c0_112 = arith.constant 0 : index
    %c0_113 = arith.constant 0 : index
    %c16_114 = arith.constant 16 : index
    %234 = vector.load %arg33[%c0_112, %c0_113, %c16_114] : memref<2x8x32xf32, #tpu.memory_space<vmem>>, vector<2x8x8xf32>
    tpu.vector_store %arg33[%c0_112, %c0_113, %c16_114], %233 {strides = array<i32>} : memref<2x8x32xf32, #tpu.memory_space<vmem>>, vector<2x8x8xf32>,
    %235 = vector.extract_strided_slice %148 {offsets = [0, 0, 24], sizes = [2, 8, 8], strides = [1, 1, 1]} : vector<2x8x32xf32> to vector<2x8x8xf32>
    %236 = vector.extract_strided_slice %163 {offsets = [0, 0, 24], sizes = [2, 8, 8], strides = [1, 1, 1]} : vector<2x8x32xf32> to vector<2x8x8xf32>
    "tpu.trace_start"() <{level = 10 : i32, message = "btd,bsd->bts"}> : () -> ()
    %cst_115 = arith.constant dense<0.000000e+00> : vector<2x8x8xf32>
    %237 = tpu.matmul %235, %236, %cst_115 {dimension_numbers = #tpu.dot_dimension_numbers<[2], [2], [1], [1], [0, 0, 0, 1, 1, 1], [0], [0]>} : vector<2x8x8xf32>, vector<2x8x8xf32>, vector<2x8x8xf32> -> vector<2x8x8xf32>
    "tpu.trace_stop"() : () -> ()
    %cst_116 = arith.constant 0.353553385 : f32
    %238 = vector.broadcast %cst_116 : f32 to vector<2x8x8xf32>
    %239 = arith.mulf %237, %238 : vector<2x8x8xf32>
    %cst_117 = arith.constant 0xFF800000 : f32
    %240 = vector.shape_cast %162 : vector<2x1x8xi1> to vector<2x1x8xi1>
    %241 = vector.broadcast %240 : vector<2x1x8xi1> to vector<2x8x8xi1>
    %242 = vector.broadcast %cst_117 : f32 to vector<2x8x8xf32>
    %243 = arith.select %241, %242, %239 : vector<2x8x8xi1>, vector<2x8x8xf32>
    %cst_118 = arith.constant dense<0xFF800000> : vector<2x8xf32>
    %244 = vector.multi_reduction <maximumf>, %243, %cst_118 [2] : vector<2x8x8xf32> to vector<2x8xf32>
    %245 = vector.shape_cast %244 : vector<2x8xf32> to vector<2x8x1xf32>
    %246 = vector.broadcast %245 : vector<2x8x1xf32> to vector<2x8x8xf32>
    %247 = arith.subf %243, %246 : vector<2x8x8xf32>
    %248 = math.exp %247 : vector<2x8x8xf32>
    %cst_119 = arith.constant dense<0.000000e+00> : vector<2x8xf32>
    %249 = vector.multi_reduction <add>, %248, %cst_119 [2] : vector<2x8x8xf32> to vector<2x8xf32>
    %250 = vector.shape_cast %249 : vector<2x8xf32> to vector<2x8x1xf32>
    %251 = tpu.reciprocal %250 {approx = true} : vector<2x8x1xf32> -> vector<2x8x1xf32>
    %252 = vector.broadcast %251 : vector<2x8x1xf32> to vector<2x8x8xf32>
    %253 = arith.mulf %248, %252 : vector<2x8x8xf32>
    %254 = vector.extract_strided_slice %164 {offsets = [0, 0, 24], sizes = [2, 8, 8], strides = [1, 1, 1]} : vector<2x8x32xf32> to vector<2x8x8xf32>
    "tpu.trace_start"() <{level = 10 : i32, message = "bts,bsd->btd"}> : () -> ()
    %cst_120 = arith.constant dense<0.000000e+00> : vector<2x8x8xf32>
    %255 = tpu.matmul %253, %254, %cst_120 {dimension_numbers = #tpu.dot_dimension_numbers<[2], [1], [1], [2], [0, 0, 0, 1, 1, 2], [0], [0]>} : vector<2x8x8xf32>, vector<2x8x8xf32>, vector<2x8x8xf32> -> vector<2x8x8xf32>
    "tpu.trace_stop"() : () -> ()
    %c0_121 = arith.constant 0 : index
    %c0_122 = arith.constant 0 : index
    %c24_123 = arith.constant 24 : index
    %256 = vector.load %arg33[%c0_121, %c0_122, %c24_123] : memref<2x8x32xf32, #tpu.memory_space<vmem>>, vector<2x8x8xf32>
    tpu.vector_store %arg33[%c0_121, %c0_122, %c24_123], %255 {strides = array<i32>} : memref<2x8x32xf32, #tpu.memory_space<vmem>>, vector<2x8x8xf32>,
    %c0_124 = arith.constant 0 : index
    %c0_125 = arith.constant 0 : index
    %c0_126 = arith.constant 0 : index
    %257 = vector.load %arg33[%c0_124, %c0_125, %c0_126] : memref<2x8x32xf32, #tpu.memory_space<vmem>>, vector<2x8x32xf32>
    %258 = vector.shape_cast %257 : vector<2x8x32xf32> to vector<16x32xf32>
    %cst_127 = arith.constant dense<0.000000e+00> : vector<16x32xf32>
    %259 = tpu.matmul %258, %166, %cst_127 {dimension_numbers = #tpu.dot_dimension_numbers<[1], [0], [0], [1], [0, 0, 1, 1], [], []>} : vector<16x32xf32>, vector<32x32xf32>, vector<16x32xf32> -> vector<16x32xf32>
    %260 = vector.broadcast %168 : vector<1x32xf32> to vector<16x32xf32>
    %261 = arith.addf %259, %260 : vector<16x32xf32>
    %262 = arith.addf %140, %261 : vector<16x32xf32>
    %cst_128 = arith.constant dense<0.000000e+00> : vector<16xf32>
    %263 = vector.multi_reduction <add>, %262, %cst_128 [1] : vector<16x32xf32> to vector<16xf32>
    %264 = vector.shape_cast %263 : vector<16xf32> to vector<16x1xf32>
    %cst_129 = arith.constant 3.200000e+01 : f32
    %265 = vector.broadcast %cst_129 : f32 to vector<16x1xf32>
    %266 = arith.divf %264, %265 : vector<16x1xf32>
    %267 = vector.broadcast %266 : vector<16x1xf32> to vector<16x32xf32>
    %268 = arith.subf %262, %267 : vector<16x32xf32>
    %269 = arith.mulf %268, %268 : vector<16x32xf32>
    %cst_130 = arith.constant dense<0.000000e+00> : vector<16xf32>
    %270 = vector.multi_reduction <add>, %269, %cst_130 [1] : vector<16x32xf32> to vector<16xf32>
    %271 = vector.shape_cast %270 : vector<16xf32> to vector<16x1xf32>
    %cst_131 = arith.constant 3.200000e+01 : f32
    %272 = vector.broadcast %cst_131 : f32 to vector<16x1xf32>
    %273 = arith.divf %271, %272 : vector<16x1xf32>
    %cst_132 = arith.constant 9.99999974E-6 : f32
    %274 = vector.broadcast %cst_132 : f32 to vector<16x1xf32>
    %275 = arith.addf %273, %274 : vector<16x1xf32>
    %276 = math.rsqrt %275 : vector<16x1xf32>
    %277 = vector.broadcast %276 : vector<16x1xf32> to vector<16x32xf32>
    %278 = arith.mulf %268, %277 : vector<16x32xf32>
    %c0_133 = arith.constant 0 : index
    %c0_134 = arith.constant 0 : index
    %c0_135 = arith.constant 0 : index
    %279 = vector.load %arg20[%c0_133, %c0_134, %c0_135] : memref<1x1x32xf32, #tpu.memory_space<vmem>>, vector<1x1x32xf32>
    %280 = vector.shape_cast %279 : vector<1x1x32xf32> to vector<1x32xf32>
    %281 = vector.broadcast %280 : vector<1x32xf32> to vector<16x32xf32>
    %282 = arith.mulf %278, %281 : vector<16x32xf32>
    %c0_136 = arith.constant 0 : index
    %c0_137 = arith.constant 0 : index
    %c0_138 = arith.constant 0 : index
    %283 = vector.load %arg21[%c0_136, %c0_137, %c0_138] : memref<1x1x32xf32, #tpu.memory_space<vmem>>, vector<1x1x32xf32>
    %284 = vector.shape_cast %283 : vector<1x1x32xf32> to vector<1x32xf32>
    %285 = vector.broadcast %284 : vector<1x32xf32> to vector<16x32xf32>
    %286 = arith.addf %282, %285 : vector<16x32xf32>
    %c0_139 = arith.constant 0 : index
    %c0_140 = arith.constant 0 : index
    %c0_141 = arith.constant 0 : index
    %287 = vector.load %arg22[%c0_139, %c0_140, %c0_141] : memref<1x32x128xf32, #tpu.memory_space<vmem>>, vector<1x32x128xf32>
    %288 = vector.shape_cast %287 : vector<1x32x128xf32> to vector<32x128xf32>
    %c0_142 = arith.constant 0 : index
    %c0_143 = arith.constant 0 : index
    %c0_144 = arith.constant 0 : index
    %289 = vector.load %arg23[%c0_142, %c0_143, %c0_144] : memref<1x1x128xf32, #tpu.memory_space<vmem>>, vector<1x1x128xf32>
    %290 = vector.shape_cast %289 : vector<1x1x128xf32> to vector<1x128xf32>
    %cst_145 = arith.constant dense<0.000000e+00> : vector<16x128xf32>
    %291 = tpu.matmul %286, %288, %cst_145 {dimension_numbers = #tpu.dot_dimension_numbers<[1], [0], [0], [1], [0, 0, 1, 1], [], []>} : vector<16x32xf32>, vector<32x128xf32>, vector<16x128xf32> -> vector<16x128xf32>
    %292 = vector.broadcast %290 : vector<1x128xf32> to vector<16x128xf32>
    %293 = arith.addf %291, %292 : vector<16x128xf32>
    %cst_146 = arith.constant 5.000000e-01 : f32
    %294 = vector.broadcast %cst_146 : f32 to vector<16x128xf32>
    %295 = arith.mulf %294, %293 : vector<16x128xf32>
    %cst_147 = arith.constant 4.471500e-02 : f32
    %296 = vector.broadcast %cst_147 : f32 to vector<16x128xf32>
    %297 = arith.mulf %296, %293 : vector<16x128xf32>
    %298 = arith.mulf %297, %293 : vector<16x128xf32>
    %299 = arith.mulf %298, %293 : vector<16x128xf32>
    %300 = arith.addf %293, %299 : vector<16x128xf32>
    %cst_148 = arith.constant 0.797884583 : f32
    %301 = vector.broadcast %cst_148 : f32 to vector<16x128xf32>
    %302 = arith.mulf %301, %300 : vector<16x128xf32>
    %303 = math.tanh %302 : vector<16x128xf32>
    %cst_149 = arith.constant 1.000000e+00 : f32
    %304 = vector.broadcast %cst_149 : f32 to vector<16x128xf32>
    %305 = arith.addf %304, %303 : vector<16x128xf32>
    %306 = arith.mulf %295, %305 : vector<16x128xf32>
    %c0_150 = arith.constant 0 : index
    %c0_151 = arith.constant 0 : index
    %c0_152 = arith.constant 0 : index
    %307 = vector.load %arg24[%c0_150, %c0_151, %c0_152] : memref<1x128x32xf32, #tpu.memory_space<vmem>>, vector<1x128x32xf32>
    %308 = vector.shape_cast %307 : vector<1x128x32xf32> to vector<128x32xf32>
    %c0_153 = arith.constant 0 : index
    %c0_154 = arith.constant 0 : index
    %c0_155 = arith.constant 0 : index
    %309 = vector.load %arg25[%c0_153, %c0_154, %c0_155] : memref<1x1x32xf32, #tpu.memory_space<vmem>>, vector<1x1x32xf32>
    %310 = vector.shape_cast %309 : vector<1x1x32xf32> to vector<1x32xf32>
    %cst_156 = arith.constant dense<0.000000e+00> : vector<16x32xf32>
    %311 = tpu.matmul %306, %308, %cst_156 {dimension_numbers = #tpu.dot_dimension_numbers<[1], [0], [0], [1], [0, 0, 1, 1], [], []>} : vector<16x128xf32>, vector<128x32xf32>, vector<16x32xf32> -> vector<16x32xf32>
    %312 = vector.broadcast %310 : vector<1x32xf32> to vector<16x32xf32>
    %313 = arith.addf %311, %312 : vector<16x32xf32>
    %314 = arith.addf %286, %313 : vector<16x32xf32>
    %cst_157 = arith.constant dense<0.000000e+00> : vector<16xf32>
    %315 = vector.multi_reduction <add>, %314, %cst_157 [1] : vector<16x32xf32> to vector<16xf32>
    %316 = vector.shape_cast %315 : vector<16xf32> to vector<16x1xf32>
    %cst_158 = arith.constant 3.200000e+01 : f32
    %317 = vector.broadcast %cst_158 : f32 to vector<16x1xf32>
    %318 = arith.divf %316, %317 : vector<16x1xf32>
    %319 = vector.broadcast %318 : vector<16x1xf32> to vector<16x32xf32>
    %320 = arith.subf %314, %319 : vector<16x32xf32>
    %321 = arith.mulf %320, %320 : vector<16x32xf32>
    %cst_159 = arith.constant dense<0.000000e+00> : vector<16xf32>
    %322 = vector.multi_reduction <add>, %321, %cst_159 [1] : vector<16x32xf32> to vector<16xf32>
    %323 = vector.shape_cast %322 : vector<16xf32> to vector<16x1xf32>
    %cst_160 = arith.constant 3.200000e+01 : f32
    %324 = vector.broadcast %cst_160 : f32 to vector<16x1xf32>
    %325 = arith.divf %323, %324 : vector<16x1xf32>
    %cst_161 = arith.constant 9.99999974E-6 : f32
    %326 = vector.broadcast %cst_161 : f32 to vector<16x1xf32>
    %327 = arith.addf %325, %326 : vector<16x1xf32>
    %328 = math.rsqrt %327 : vector<16x1xf32>
    %329 = vector.broadcast %328 : vector<16x1xf32> to vector<16x32xf32>
    %330 = arith.mulf %320, %329 : vector<16x32xf32>
    %c0_162 = arith.constant 0 : index
    %c0_163 = arith.constant 0 : index
    %c0_164 = arith.constant 0 : index
    %331 = vector.load %arg26[%c0_162, %c0_163, %c0_164] : memref<1x1x32xf32, #tpu.memory_space<vmem>>, vector<1x1x32xf32>
    %332 = vector.shape_cast %331 : vector<1x1x32xf32> to vector<1x32xf32>
    %333 = vector.broadcast %332 : vector<1x32xf32> to vector<16x32xf32>
    %334 = arith.mulf %330, %333 : vector<16x32xf32>
    %c0_165 = arith.constant 0 : index
    %c0_166 = arith.constant 0 : index
    %c0_167 = arith.constant 0 : index
    %335 = vector.load %arg27[%c0_165, %c0_166, %c0_167] : memref<1x1x32xf32, #tpu.memory_space<vmem>>, vector<1x1x32xf32>
    %336 = vector.shape_cast %335 : vector<1x1x32xf32> to vector<1x32xf32>
    %337 = vector.broadcast %336 : vector<1x32xf32> to vector<16x32xf32>
    %338 = arith.addf %334, %337 : vector<16x32xf32>
    %c0_168 = arith.constant 0 : index
    %c0_169 = arith.constant 0 : index
    %339 = vector.load %arg31[%c0_168, %c0_169] : memref<16x32xf32, #tpu.memory_space<vmem>>, vector<16x32xf32>
    tpu.vector_store %arg31[%c0_168, %c0_169], %338 {strides = array<i32>} : memref<16x32xf32, #tpu.memory_space<vmem>>, vector<16x32xf32>,
    %c1_i32 = arith.constant 1 : i32
    %340 = arith.cmpi eq, %arg1, %c1_i32 : i32
    %341 = arith.extui %340 : i1 to i32
    %c0_i32_170 = arith.constant 0 : i32
    %342 = arith.cmpi ne, %341, %c0_i32_170 : i32
    scf.if %342 {
      %c0_171 = arith.constant 0 : index
      %c0_172 = arith.constant 0 : index
      %343 = vector.load %arg28[%c0_171, %c0_172] : memref<32x256xf32, #tpu.memory_space<vmem>>, vector<32x256xf32>
      %c0_173 = arith.constant 0 : index
      %c0_174 = arith.constant 0 : index
      %344 = vector.load %arg29[%c0_173, %c0_174] : memref<1x256xf32, #tpu.memory_space<vmem>>, vector<1x256xf32>
      %cst_175 = arith.constant dense<0.000000e+00> : vector<16x256xf32>
      %345 = tpu.matmul %338, %343, %cst_175 {dimension_numbers = #tpu.dot_dimension_numbers<[1], [0], [0], [1], [0, 0, 1, 1], [], []>} : vector<16x32xf32>, vector<32x256xf32>, vector<16x256xf32> -> vector<16x256xf32>
      %346 = vector.broadcast %344 : vector<1x256xf32> to vector<16x256xf32>
      %347 = arith.addf %345, %346 : vector<16x256xf32>
      %c0_176 = arith.constant 0 : index
      %c0_177 = arith.constant 0 : index
      %c0_178 = arith.constant 0 : index
      %348 = vector.load %arg30[%c0_176, %c0_177, %c0_178] : memref<1x16x256xf32, #tpu.memory_space<vmem>>, vector<1x16x256xf32>
      %349 = vector.shape_cast %348 : vector<1x16x256xf32> to vector<16x256xf32>
      %350 = vector.shape_cast %347 : vector<16x256xf32> to vector<1x16x256xf32>
      tpu.vector_store %arg30[%c0_176, %c0_177, %c0_178], %350 {strides = array<i32>} : memref<1x16x256xf32, #tpu.memory_space<vmem>>, vector<1x16x256xf32>,
    } else {
    }
    return
  }
  func.func @transform_0(%arg0: i32, %arg1: i32) -> (i32, i32, i32) {
    %c0_i32 = arith.constant 0 : i32
    %c0_i32_0 = arith.constant 0 : i32
    %c0_i32_1 = arith.constant 0 : i32
    return %arg0, %c0_i32, %c0_i32_0 : i32, i32, i32
  }
  func.func @transform_1(%arg0: i32, %arg1: i32) -> (i32, i32, i32) {
    %c0_i32 = arith.constant 0 : i32
    %c0_i32_0 = arith.constant 0 : i32
    %c0_i32_1 = arith.constant 0 : i32
    return %arg0, %c0_i32, %c0_i32_0 : i32, i32, i32
  }
  func.func @transform_2(%arg0: i32, %arg1: i32) -> (i32, i32, i32) {
    %c0_i32 = arith.constant 0 : i32
    %c0_i32_0 = arith.constant 0 : i32
    %c0_i32_1 = arith.constant 0 : i32
    return %arg0, %c0_i32, %c0_i32_0 : i32, i32, i32
  }
  func.func @transform_3(%arg0: i32, %arg1: i32) -> (i32, i32) {
    %c0_i32 = arith.constant 0 : i32
    %c0_i32_0 = arith.constant 0 : i32
    %c0_i32_1 = arith.constant 0 : i32
    return %c0_i32, %c0_i32_0 : i32, i32
  }
  func.func @transform_4(%arg0: i32, %arg1: i32) -> (i32, i32) {
    %c0_i32 = arith.constant 0 : i32
    %c0_i32_0 = arith.constant 0 : i32
    %c0_i32_1 = arith.constant 0 : i32
    return %c0_i32, %c0_i32_0 : i32, i32
  }
  func.func @transform_5(%arg0: i32, %arg1: i32) -> (i32, i32) {
    %c0_i32 = arith.constant 0 : i32
    %c0_i32_0 = arith.constant 0 : i32
    %c0_i32_1 = arith.constant 0 : i32
    return %c0_i32, %c0_i32_0 : i32, i32
  }
  func.func @transform_6(%arg0: i32, %arg1: i32) -> (i32, i32, i32) {
    %c0_i32 = arith.constant 0 : i32
    %c0_i32_0 = arith.constant 0 : i32
    %c0_i32_1 = arith.constant 0 : i32
    return %arg1, %c0_i32, %c0_i32_0 : i32, i32, i32
  }
  func.func @transform_7(%arg0: i32, %arg1: i32) -> (i32, i32, i32) {
    %c0_i32 = arith.constant 0 : i32
    %c0_i32_0 = arith.constant 0 : i32
    %c0_i32_1 = arith.constant 0 : i32
    return %arg1, %c0_i32, %c0_i32_0 : i32, i32, i32
  }
  func.func @transform_8(%arg0: i32, %arg1: i32) -> (i32, i32, i32) {
    %c0_i32 = arith.constant 0 : i32
    %c0_i32_0 = arith.constant 0 : i32
    %c0_i32_1 = arith.constant 0 : i32
    return %arg1, %c0_i32, %c0_i32_0 : i32, i32, i32
  }
  func.func @transform_9(%arg0: i32, %arg1: i32) -> (i32, i32, i32) {
    %c0_i32 = arith.constant 0 : i32
    %c0_i32_0 = arith.constant 0 : i32
    %c0_i32_1 = arith.constant 0 : i32
    return %arg1, %c0_i32, %c0_i32_0 : i32, i32, i32
  }
  func.func @transform_10(%arg0: i32, %arg1: i32) -> (i32, i32, i32) {
    %c0_i32 = arith.constant 0 : i32
    %c0_i32_0 = arith.constant 0 : i32
    %c0_i32_1 = arith.constant 0 : i32
    return %arg1, %c0_i32, %c0_i32_0 : i32, i32, i32
  }
  func.func @transform_11(%arg0: i32, %arg1: i32) -> (i32, i32, i32) {
    %c0_i32 = arith.constant 0 : i32
    %c0_i32_0 = arith.constant 0 : i32
    %c0_i32_1 = arith.constant 0 : i32
    return %arg1, %c0_i32, %c0_i32_0 : i32, i32, i32
  }
  func.func @transform_12(%arg0: i32, %arg1: i32) -> (i32, i32, i32) {
    %c0_i32 = arith.constant 0 : i32
    %c0_i32_0 = arith.constant 0 : i32
    %c0_i32_1 = arith.constant 0 : i32
    return %arg1, %c0_i32, %c0_i32_0 : i32, i32, i32
  }
  func.func @transform_13(%arg0: i32, %arg1: i32) -> (i32, i32, i32) {
    %c0_i32 = arith.constant 0 : i32
    %c0_i32_0 = arith.constant 0 : i32
    %c0_i32_1 = arith.constant 0 : i32
    return %arg1, %c0_i32, %c0_i32_0 : i32, i32, i32
  }
  func.func @transform_14(%arg0: i32, %arg1: i32) -> (i32, i32, i32) {
    %c0_i32 = arith.constant 0 : i32
    %c0_i32_0 = arith.constant 0 : i32
    %c0_i32_1 = arith.constant 0 : i32
    return %arg1, %c0_i32, %c0_i32_0 : i32, i32, i32
  }
  func.func @transform_15(%arg0: i32, %arg1: i32) -> (i32, i32, i32) {
    %c0_i32 = arith.constant 0 : i32
    %c0_i32_0 = arith.constant 0 : i32
    %c0_i32_1 = arith.constant 0 : i32
    return %arg1, %c0_i32, %c0_i32_0 : i32, i32, i32
  }
  func.func @transform_16(%arg0: i32, %arg1: i32) -> (i32, i32, i32) {
    %c0_i32 = arith.constant 0 : i32
    %c0_i32_0 = arith.constant 0 : i32
    %c0_i32_1 = arith.constant 0 : i32
    return %arg1, %c0_i32, %c0_i32_0 : i32, i32, i32
  }
  func.func @transform_17(%arg0: i32, %arg1: i32) -> (i32, i32, i32) {
    %c0_i32 = arith.constant 0 : i32
    %c0_i32_0 = arith.constant 0 : i32
    %c0_i32_1 = arith.constant 0 : i32
    return %arg1, %c0_i32, %c0_i32_0 : i32, i32, i32
  }
  func.func @transform_18(%arg0: i32, %arg1: i32) -> (i32, i32, i32) {
    %c0_i32 = arith.constant 0 : i32
    %c0_i32_0 = arith.constant 0 : i32
    %c0_i32_1 = arith.constant 0 : i32
    return %arg1, %c0_i32, %c0_i32_0 : i32, i32, i32
  }
  func.func @transform_19(%arg0: i32, %arg1: i32) -> (i32, i32, i32) {
    %c0_i32 = arith.constant 0 : i32
    %c0_i32_0 = arith.constant 0 : i32
    %c0_i32_1 = arith.constant 0 : i32
    return %arg1, %c0_i32, %c0_i32_0 : i32, i32, i32
  }
  func.func @transform_20(%arg0: i32, %arg1: i32) -> (i32, i32, i32) {
    %c0_i32 = arith.constant 0 : i32
    %c0_i32_0 = arith.constant 0 : i32
    %c0_i32_1 = arith.constant 0 : i32
    return %arg1, %c0_i32, %c0_i32_0 : i32, i32, i32
  }
  func.func @transform_21(%arg0: i32, %arg1: i32) -> (i32, i32, i32) {
    %c0_i32 = arith.constant 0 : i32
    %c0_i32_0 = arith.constant 0 : i32
    %c0_i32_1 = arith.constant 0 : i32
    return %arg1, %c0_i32, %c0_i32_0 : i32, i32, i32
  }
  func.func @transform_22(%arg0: i32, %arg1: i32) -> (i32, i32, i32) {
    %c0_i32 = arith.constant 0 : i32
    %c0_i32_0 = arith.constant 0 : i32
    %c0_i32_1 = arith.constant 0 : i32
    return %arg1, %c0_i32, %c0_i32_0 : i32, i32, i32
  }
  func.func @transform_23(%arg0: i32, %arg1: i32) -> (i32, i32, i32) {
    %c0_i32 = arith.constant 0 : i32
    %c0_i32_0 = arith.constant 0 : i32
    %c0_i32_1 = arith.constant 0 : i32
    return %arg1, %c0_i32, %c0_i32_0 : i32, i32, i32
  }
  func.func @transform_24(%arg0: i32, %arg1: i32) -> (i32, i32, i32) {
    %c0_i32 = arith.constant 0 : i32
    %c0_i32_0 = arith.constant 0 : i32
    %c0_i32_1 = arith.constant 0 : i32
    return %arg1, %c0_i32, %c0_i32_0 : i32, i32, i32
  }
  func.func @transform_25(%arg0: i32, %arg1: i32) -> (i32, i32, i32) {
    %c0_i32 = arith.constant 0 : i32
    %c0_i32_0 = arith.constant 0 : i32
    %c0_i32_1 = arith.constant 0 : i32
    return %arg1, %c0_i32, %c0_i32_0 : i32, i32, i32
  }
  func.func @transform_26(%arg0: i32, %arg1: i32) -> (i32, i32) {
    %c0_i32 = arith.constant 0 : i32
    %c0_i32_0 = arith.constant 0 : i32
    %c0_i32_1 = arith.constant 0 : i32
    return %c0_i32, %c0_i32_0 : i32, i32
  }
  func.func @transform_27(%arg0: i32, %arg1: i32) -> (i32, i32) {
    %c0_i32 = arith.constant 0 : i32
    %c0_i32_0 = arith.constant 0 : i32
    %c0_i32_1 = arith.constant 0 : i32
    return %c0_i32, %c0_i32_0 : i32, i32
  }
  func.func @transform_28(%arg0: i32, %arg1: i32) -> (i32, i32, i32) {
    %c0_i32 = arith.constant 0 : i32
    %c0_i32_0 = arith.constant 0 : i32
    %c0_i32_1 = arith.constant 0 : i32
    return %arg0, %c0_i32, %c0_i32_0 : i32, i32, i32
  }
}

</mosaic_0001>

<bundles_post_ra>
// kernel: tpu_custom_call.1
= control target key start
LH: loop header
LB: loop body
LE: loop exit
PB: predicated region body
PF: predicated region fallthrough
CT: control target
= control target key end

     0   :  { %s9595_s0 = inlined_call_operand.hbm [shape: s32[1,16,1], index: 0, kind: input, shape index: {}]   ;;  %s9596_s1 = inlined_call_operand.hbm [shape: f32[1,16,64], index: 1, kind: input, shape index: {}]   ;;  %s9597_s2 = inlined_call_operand.hbm [shape: s32[1,2,8], index: 2, kind: input, shape index: {}]   ;;  %s9598_s3 = inlined_call_operand.hbm [shape: f32[256,32], index: 3, kind: input, shape index: {}]   ;;  %s9599_s4 = inlined_call_operand.hbm [shape: f32[64,32], index: 4, kind: input, shape index: {}]   ;;  %s9600_s5 = inlined_call_operand.hbm [shape: f32[1,32], index: 5, kind: input, shape index: {}]   ;;  %s9601_s6 = inlined_call_operand.hbm [shape: f32[2,32,96], index: 6, kind: input, shape index: {}]   ;;  %s9602_s7 = inlined_call_operand.hbm [shape: f32[2,1,96], index: 7, kind: input, shape index: {}]   ;;  %s9603_s8 = inlined_call_operand.hbm [shape: f32[2,32,32], index: 8, kind: input, shape index: {}]   ;;  %s9604_s9 = inlined_call_operand.hbm [shape: f32[2,1,32], index: 9, kind: input, shape index: {}]   ;;  %s9605_s10 = inlined_call_operand.hbm [shape: f32[2,1,32], index: 10, kind: input, shape index: {}]   ;;  %s9606_s11 = inlined_call_operand.hbm [shape: f32[2,1,32], index: 11, kind: input, shape index: {}]   ;;  %s9607_s12 = inlined_call_operand.hbm [shape: f32[2,32,32], index: 12, kind: input, shape index: {}]   ;;  %s9608_s13 = inlined_call_operand.hbm [shape: f32[2,1,32], index: 13, kind: input, shape index: {}]   ;;  %s9609_s14 = inlined_call_operand.hbm [shape: f32[2,32,64], index: 14, kind: input, shape index: {}]   ;;  %s9610_s15 = inlined_call_operand.hbm [shape: f32[2,1,64], index: 15, kind: input, shape index: {}]   ;;  %s9611_s16 = inlined_call_operand.hbm [shape: f32[2,32,32], index: 16, kind: input, shape index: {}]   ;;  %s9612_s17 = inlined_call_operand.hbm [shape: f32[2,1,32], index: 17, kind: input, shape index: {}]   ;;  %s9613_s18 = inlined_call_operand.hbm [shape: f32[2,1,32], index: 18, kind: input, shape index: {}]   ;;  %s9614_s19 = inlined_call_operand.hbm [shape: f32[2,1,32], index: 19, kind: input, shape index: {}]   ;;  %s9615_s20 = inlined_call_operand.hbm [shape: f32[2,32,128], index: 20, kind: input, shape index: {}]   ;;  %s9616_s21 = inlined_call_operand.hbm [shape: f32[2,1,128], index: 21, kind: input, shape index: {}]   ;;  %s9617_s22 = inlined_call_operand.hbm [shape: f32[2,128,32], index: 22, kind: input, shape index: {}]   ;;  %s9618_s23 = inlined_call_operand.hbm [shape: f32[2,1,32], index: 23, kind: input, shape index: {}]   ;;  %s9619_s24 = inlined_call_operand.hbm [shape: f32[2,1,32], index: 24, kind: input, shape index: {}]   ;;  %s9620_s25 = inlined_call_operand.hbm [shape: f32[2,1,32], index: 25, kind: input, shape index: {}]   ;;  %s9621_s26 = inlined_call_operand.hbm [shape: f32[32,256], index: 26, kind: input, shape index: {}]   ;;  %s9622_s27 = inlined_call_operand.hbm [shape: f32[1,256], index: 27, kind: input, shape index: {}]   ;;  %s9623_s28 = inlined_call_operand.hbm [shape: f32[1,16,256], index: 28, kind: output, shape index: {}]  }
   0x1   :  { %9679 = sst [smem:[#allocation56_spill]] %s9595_s0 }
   0x2   :  { %9680 = sst [smem:[#allocation57_spill]] %s9596_s1 }
   0x3   :  { %9681 = sst [smem:[#allocation58_spill]] %s9597_s2 }
   0x4   :  { %9682 = sst [smem:[#allocation59_spill]] %s9598_s3 }
   0x5   :  { %9683 = sst [smem:[#allocation60_spill]] %s9599_s4 }
   0x6   :  { %9684 = sst [smem:[#allocation61_spill]] %s9600_s5 }
   0x7   :  { %9685 = sst [smem:[#allocation62_spill]] %s9601_s6 }
   0x8   :  { %9686 = sst [smem:[#allocation63_spill]] %s9602_s7 }
   0x9   :  { %9687 = sst [smem:[#allocation64_spill]] %s9603_s8 }
   0xa   :  { %9688 = sst [smem:[#allocation65_spill]] %s9604_s9 }
   0xb   :  { %9689 = sst [smem:[#allocation66_spill]] %s9605_s10 }
   0xc   :  { %9690 = sst [smem:[#allocation67_spill]] %s9606_s11 }
   0xd   :  { %9691 = sst [smem:[#allocation68_spill]] %s9607_s12 }
   0xe   :  { %9692 = sst [smem:[#allocation69_spill]] %s9608_s13 }
   0xf   :  { %9693 = sst [smem:[#allocation70_spill]] %s9609_s14 }
  0x10   :  { %9694 = sst [smem:[#allocation71_spill]] %s9613_s18 }
  0x11   :  { %9695 = sst [smem:[#allocation72_spill]] %s9614_s19 }
  0x12   :  { %9696 = sst [smem:[#allocation73_spill]] %s9615_s20 }
  0x13   :  { %9697 = sst [smem:[#allocation74_spill]] %s9616_s21 }
  0x14   :  { %9698 = sst [smem:[#allocation75_spill]] %s9617_s22 }
  0x15   :  { %9699 = sst [smem:[#allocation76_spill]] %s9618_s23 }
  0x16   :  { %9700 = sst [smem:[#allocation77_spill]] %s9619_s24 }
  0x17   :  { %9701 = sst [smem:[#allocation78_spill]] %s9620_s25 }
  0x18   :  { %9702 = sst [smem:[#allocation79_spill]] %s9621_s26 }
  0x19   :  { %9703 = sst [smem:[#allocation80_spill]] %s9622_s27 }
  0x1a   :  { %9704 = sst [smem:[#allocation81_spill]] %s9623_s28 }
  0x1b   :  { %33 = vsyncpa [#allocation6], 0 }
  0x1c   :  { %34 = vsyncpa [#allocation9], 0 }
  0x1d   :  { %35 = vsyncpa [#allocation12], 0 }
  0x1e   :  { %36 = vsyncpa [#allocation15], 0 }
  0x1f   :  { %37 = vsyncpa [#allocation7], 0  ;;  %s8189_s8 = smov 0   ;;  %s8191_s5 = smov 0  }
  0x20   :  { %s8193_s9 = smov 0   ;;  %s8195_s30 = smov 0  }
  0x21   :  { %s8197_s3 = smov 0   ;;  %s8199_s6 = smov 0  }
  0x22 LB: > { %9705 = sst [smem:[#allocation47_spill]] %s7969_s5  ;;  %s8218_s10 = sadd.s32 4294967295, %s7985_s6   ;;  %s7985_s6 = sphi %s8199_s6, %s43_s6   ;;  %s7981_s3 = sphi %s8197_s3, %s9797_s3   ;;  %s7977_s30 = sphi %s8195_s30, %s9796_s30   ;;  %s7973_s9 = sphi %s8193_s9, %s9794_s9   ;;  %s7969_s5 = sphi %s8191_s5, %s9793_s5   ;;  %s7965_s8 = sphi %s8189_s8, %s9792_s8  }
  0x23   : > { %9706 = sst [smem:[#allocation48_spill]] %s7973_s9  ;;  %s52_s0 = sadd.s32 1, %s7981_s3 }
  0x24   : > { %9707 = sst [smem:[#allocation49_spill]] %s7977_s30  ;;  %p53_p0 = scmp.ge.s32.totalorder %s52_s0, 2 }
  0x25   : > { %9708 = sst [smem:[#allocation50_spill]] %s7985_s6  ;;  %s203_s11 = sadd.s32 1, %s7973_s9 }
  0x26   : > { %9709 = sst [smem:[#allocation51_spill]] %s8218_s10  ;;  %p210_p1 = scmp.ne.s32.totalorder %s7973_s9, %s7969_s5 }
  0x27   : > { %p211_p2 = scmp.eq.s32.totalorder %s7985_s6, 0  ;;  %s9799_s0 = smov (%p53_p0, %s52_s0), 0 }
  0x28   : > { %9710 = sst [smem:[#allocation52_spill]] %s9799_s0  ;;  %p216_p4 = scmp.ne.s32.totalorder %s7969_s5, %s7965_s8 }
  0x29   : > { %p8227_p3 = por %p211_p2, %p210_p1  ;;  %s200_s2 = ssub.s32 %s7981_s3, %s9799_s0 }
  0x2a   : > { %p9647_p5 = scmp.eq.s32.totalorder %s8218_s10, 0  ;;  %p201_p6 = scmp.eq.s32.totalorder %s200_s2, 0 }
  0x2b   : > { %s9711_s29 = scalar_select %p8227_p3, 1, 0 }
  0x2c   : > { %p6067_p7 = scmp.ge.s32.totalorder %s7985_s6, 1  ;;  %p8238_p8 = por %p9647_p5, %p216_p4 }
  0x2d   : > { %p789_p9 = scmp.lt.s32.totalorder %s7985_s6, 3  ;;  %s7987_s4 = smov [#allocation8]  }
  0x2e   : > { %s9712_s7 = scalar_select %p8238_p8, 1, 0 }
  0x2f   : > { %s8244_s12 = scalar_select %p201_p6, %s7973_s9, %s203_s11  }
  0x30   : > { %9713 = sst [smem:[#allocation53_spill]] %s9712_s7  ;;  %p8246_p10 = pnand %p6067_p7, %p789_p9 }
  0x31   : > { %9714 = sst [smem:[#allocation54_spill]] %s8244_s12  ;;  %s820_s8 = sshll.u32 %s7987_s4, 4  ;;  %s821_s8 = int_to_ptr.vmem [resolvable:$true] %s820_s8 }
  0x32   : > { %s9715_s1 = scalar_select %p8246_p10, 1, 0 }
  0x33   : > { %p6888_p11 = pneg %p8246_p10  ;;  %s7988_s0 = smov [#allocation11]  }
  0x34   : > { %9716 = sst [smem:[#allocation55_spill]] %s9715_s1  ;;  %s846_s28 = sshll.u32 %s7988_s0, 4  ;;  %s8258_s28 = int_to_ptr.vmem [resolvable:$true] %s846_s28 }
  0x35   : > { %p8254_p12 = pnand %p6888_p11, %p9647_p5  ;;  %s9718_s30 = sld [smem:[#allocation57_spill]] }
  0x37   : > { %p8268_p0 = pneg %p8254_p12 }
  0x3b   : > { %s9719_s7 = smov %s9718_s30  ;;  %s7097_s5 = scalar_lea.hbm %s9718_s30, 256 }
  0x3c   : > { %p7098_p13 = scmp.ne.s32.totalorder %s9719_s7, %s7097_s5  ;;  %p7104_p4 = scmp.lt.u32.totalorder %s7097_s5, %s9719_s7 }
  0x3e   : > { %p7100_p1 = pnand %p8268_p0, %p7098_p13 }
  0x40   : > { %p7101_p2 = pneg %p7100_p1 }
  0x42   : > { %p7106_p6 = pnand %p7104_p4, %p7101_p2 }
  0x44   : > { %7109 = shalt.err (!%p7106_p6)
}
  0x45   : > { %s7110_s30 = scalar_lea.vmem %s821_s8, 256  ;;  %p7118_p5 = scmp.lt.s32.totalorder %s821_s8, %s821_s8 }
  0x46   : > { %p7111_p7 = scmp.ne.s32.totalorder %s821_s8, %s7110_s30  ;;  %p7119_p8 = scmp.lt.s32.totalorder %s7110_s30, %s7110_s30 }
  0x48   : > { %p7113_p9 = pnand %p7111_p7, %p8268_p0  ;;  %p7120_p10 = por %p7119_p8, %p7118_p5 }
  0x4a   : > { %p7114_p11 = pneg %p7113_p9 }
  0x4c   : > { %p7121_p3 = pnand %p7120_p10, %p7114_p11 }
  0x4e   : > { %7124 = shalt.err (!%p7121_p3)
}
  0x4f   : > { %s7989_s25 = smov 128   ;;  %s7990_s12 = smov 8  }
  0x50   : > { %6894 = dma.hbm_to_vmem [thread:$0]  (!%p8254_p12), %s9719_s7, 256, %s821_s8, [#allocation9], %s7989_s25, %s7989_s25, %s7990_s12  }
  0x51   : > { %s9721_s0 = sld [smem:[#allocation59_spill]] }
  0x57   : > { %s7125_s24 = scalar_lea.hbm %s9721_s0, 4096 }
  0x58   : > { %p7126_p3 = scmp.ne.s32.totalorder %s9721_s0, %s7125_s24  ;;  %p7132_p10 = scmp.lt.u32.totalorder %s7125_s24, %s9721_s0 }
  0x5a   : > { %p7128_p5 = pnand %p7126_p3, %p8268_p0 }
  0x5c   : > { %p7129_p8 = pneg %p7128_p5 }
  0x5e   : > { %p7134_p13 = pnand %p7132_p10, %p7129_p8 }
  0x60   : > { %7137 = shalt.err (!%p7134_p13)
}
  0x61   : > { %s7138_s8 = scalar_lea.vmem %s8258_s28, 4096  ;;  %p7146_p6 = scmp.lt.s32.totalorder %s8258_s28, %s8258_s28 }
  0x62   : > { %p7139_p1 = scmp.ne.s32.totalorder %s8258_s28, %s7138_s8  ;;  %p7147_p7 = scmp.lt.s32.totalorder %s7138_s8, %s7138_s8 }
  0x64   : > { %p7141_p2 = pnand %p7139_p1, %p8268_p0  ;;  %p7148_p9 = por %p7147_p7, %p7146_p6 }
  0x66   : > { %p7142_p4 = pneg %p7141_p2 }
  0x68   : > { %p7149_p11 = pnand %p7148_p9, %p7142_p4 }
  0x6a   : > { %7152 = shalt.err (!%p7149_p11)
}
  0x6b   : > { %6900 = dma.hbm_to_vmem [thread:$0]  (!%p8254_p12), %s9721_s0, 4096, %s8258_s28, [#allocation12], %s7989_s25, %s7989_s25, %s7990_s12  }
  0x6c   : > { %s7991_s23 = smov [#allocation10]   ;;  %s7992_s5 = smov [#allocation13]  }
  0x6d   : > { %s836_s24 = sshll.u32 %s7991_s23, 4  ;;  %s859_s10 = sshll.u32 %s7992_s5, 4  ;;  %s837_s24 = int_to_ptr.vmem [resolvable:$true] %s836_s24  ;;  %s860_s10 = int_to_ptr.vmem [resolvable:$true] %s859_s10 }
  0x6e   : > { %s9722_s30 = sld [smem:[#allocation58_spill]] }
  0x74   : > { %s9723_s7 = smov %s9722_s30  ;;  %s7153_s8 = scalar_lea.hbm %s9722_s30, 32 }
  0x75   : > { %p7154_p3 = scmp.ne.s32.totalorder %s9723_s7, %s7153_s8  ;;  %p7160_p10 = scmp.lt.u32.totalorder %s7153_s8, %s9723_s7 }
  0x77   : > { %p7156_p5 = pnand %p7154_p3, %p8268_p0 }
  0x79   : > { %p7157_p8 = pneg %p7156_p5 }
  0x7b   : > { %p7162_p13 = pnand %p7160_p10, %p7157_p8 }
  0x7d   : > { %7165 = shalt.err (!%p7162_p13)
}
  0x7e   : > { %s7166_s28 = scalar_lea.vmem %s837_s24, 32  ;;  %p7174_p6 = scmp.lt.s32.totalorder %s837_s24, %s837_s24 }
  0x7f   : > { %p7167_p1 = scmp.ne.s32.totalorder %s837_s24, %s7166_s28  ;;  %p7175_p7 = scmp.lt.s32.totalorder %s7166_s28, %s7166_s28 }
  0x81   : > { %p7169_p2 = pnand %p7167_p1, %p8268_p0  ;;  %p7176_p9 = por %p7175_p7, %p7174_p6 }
  0x83   : > { %p7170_p4 = pneg %p7169_p2 }
  0x85   : > { %p7177_p11 = pnand %p7176_p9, %p7170_p4 }
  0x87   : > { %7180 = shalt.err (!%p7177_p11)
}
  0x88   : > { %6897 = dma.hbm_to_vmem [thread:$0]  (!%p8254_p12), %s9723_s7, 32, %s837_s24, [#allocation9]  }
  0x89   : > { %s9724_s23 = sld [smem:[#allocation60_spill]] }
  0x8f   : > { %s7181_s5 = scalar_lea.hbm %s9724_s23, 1024 }
  0x90   : > { %p7182_p3 = scmp.ne.s32.totalorder %s9724_s23, %s7181_s5  ;;  %p7188_p10 = scmp.lt.u32.totalorder %s7181_s5, %s9724_s23 }
  0x92   : > { %p7184_p5 = pnand %p7182_p3, %p8268_p0 }
  0x94   : > { %p7185_p8 = pneg %p7184_p5 }
  0x96   : > { %p7190_p13 = pnand %p7188_p10, %p7185_p8 }
  0x98   : > { %7193 = shalt.err (!%p7190_p13)
}
  0x99   : > { %s7194_s21 = scalar_lea.vmem %s860_s10, 1024  ;;  %p7202_p6 = scmp.lt.s32.totalorder %s860_s10, %s860_s10 }
  0x9a   : > { %p7195_p1 = scmp.ne.s32.totalorder %s860_s10, %s7194_s21  ;;  %p7203_p7 = scmp.lt.s32.totalorder %s7194_s21, %s7194_s21 }
  0x9c   : > { %p7197_p2 = pnand %p7195_p1, %p8268_p0  ;;  %p7204_p9 = por %p7203_p7, %p7202_p6 }
  0x9e   : > { %p7198_p4 = pneg %p7197_p2 }
  0xa0   : > { %p7205_p11 = pnand %p7204_p9, %p7198_p4 }
  0xa2   : > { %7208 = shalt.err (!%p7205_p11)
}
  0xa3   : > { %6903 = dma.hbm_to_vmem [thread:$0]  (!%p8254_p12), %s9724_s23, 1024, %s860_s10, [#allocation12], %s7989_s25, %s7989_s25, %s7990_s12  }
  0xa4   : > { %s7993_s19 = smov [#allocation5]   ;;  %s7994_s18 = smov [#allocation14]  }
  0xa5   : > { %s804_s20 = sshll.u32 %s7993_s19, 4  ;;  %s873_s22 = sshll.u32 %s7994_s18, 4  ;;  %s805_s20 = int_to_ptr.vmem [resolvable:$true] %s804_s20  ;;  %s874_s22 = int_to_ptr.vmem [resolvable:$true] %s873_s22 }
  0xa6   : > { %s9725_s11 = sld [smem:[#allocation56_spill]] }
  0xac   : > { %s7209_s30 = scalar_lea.hbm %s9725_s11, 256 }
  0xad   : > { %p7210_p3 = scmp.ne.s32.totalorder %s9725_s11, %s7209_s30  ;;  %p7216_p10 = scmp.lt.u32.totalorder %s7209_s30, %s9725_s11 }
  0xaf   : > { %p7212_p5 = pnand %p7210_p3, %p8268_p0 }
  0xb1   : > { %p7213_p8 = pneg %p7212_p5 }
  0xb3   : > { %p7218_p13 = pnand %p7216_p10, %p7213_p8 }
  0xb5   : > { %7221 = shalt.err (!%p7218_p13)
}
  0xb6   : > { %s7222_s10 = scalar_lea.vmem %s805_s20, 256  ;;  %p7230_p6 = scmp.lt.s32.totalorder %s805_s20, %s805_s20 }
  0xb7   : > { %p7223_p1 = scmp.ne.s32.totalorder %s805_s20, %s7222_s10  ;;  %p7231_p7 = scmp.lt.s32.totalorder %s7222_s10, %s7222_s10 }
  0xb9   : > { %p7225_p2 = pnand %p7223_p1, %p8268_p0  ;;  %p7232_p9 = por %p7231_p7, %p7230_p6 }
  0xbb   : > { %p7226_p4 = pneg %p7225_p2 }
  0xbd   : > { %p7233_p11 = pnand %p7232_p9, %p7226_p4 }
  0xbf   : > { %7236 = shalt.err (!%p7233_p11)
}
  0xc0   : > { %6891 = dma.hbm_to_vmem [thread:$0]  (!%p8254_p12), %s9725_s11, 256, %s805_s20, [#allocation6], %s7989_s25, %s7989_s25, %s7990_s12  }
  0xc1   : > { %s9726_s5 = sld [smem:[#allocation61_spill]] }
  0xc7   : > { %s9727_s1 = smov %s9726_s5  ;;  %s7237_s30 = scalar_lea.hbm %s9726_s5, 16 }
  0xc8   : > { %p7238_p3 = scmp.ne.s32.totalorder %s9727_s1, %s7237_s30  ;;  %p7244_p10 = scmp.lt.u32.totalorder %s7237_s30, %s9727_s1 }
  0xca   : > { %p7240_p5 = pnand %p7238_p3, %p8268_p0 }
  0xcc   : > { %p7241_p8 = pneg %p7240_p5 }
  0xce   : > { %p7246_p13 = pnand %p7244_p10, %p7241_p8 }
  0xd0   : > { %7249 = shalt.err (!%p7246_p13)
}
  0xd1   : > { %s7250_s0 = scalar_lea.vmem %s874_s22, 16  ;;  %s7257_s25 = scalar_lea.vmem %s874_s22, 32 }
  0xd2   : > { %p7251_p1 = scmp.ne.s32.totalorder %s874_s22, %s7250_s0  ;;  %p7258_p6 = scmp.lt.s32.totalorder %s874_s22, %s874_s22 }
  0xd3   : > { %p7259_p7 = scmp.lt.s32.totalorder %s7257_s25, %s7250_s0 }
  0xd4   : > { %p7253_p2 = pnand %p7251_p1, %p8268_p0 }
  0xd5   : > { %p7260_p9 = por %p7259_p7, %p7258_p6 }
  0xd6   : > { %p7254_p4 = pneg %p7253_p2 }
  0xd8   : > { %p7261_p11 = pnand %p7260_p9, %p7254_p4 }
  0xda   : > { %7264 = shalt.err (!%p7261_p11)
}
  0xdb   : > { %6906 = dma.hbm_to_vmem [thread:$0]  (!%p8254_p12), %s9727_s1, 16, %s874_s22, [#allocation15]  }
  0xdc   : > { %s7995_s28 = smov [#allocation36]   ;;  %s9728_s26 = sld [smem:[#allocation79_spill]] }
  0xdd   : > { %s883_s19 = sshll.u32 %s7995_s28, 4  ;;  %s884_s19 = int_to_ptr.vmem [resolvable:$true] %s883_s19 }
  0xe2   : > { %s7265_s30 = scalar_lea.hbm %s9728_s26, 1024 }
  0xe3   : > { %p7266_p3 = scmp.ne.s32.totalorder %s9728_s26, %s7265_s30  ;;  %p7272_p10 = scmp.lt.u32.totalorder %s7265_s30, %s9728_s26 }
  0xe5   : > { %p7268_p5 = pnand %p7266_p3, %p8268_p0 }
  0xe7   : > { %p7269_p8 = pneg %p7268_p5 }
  0xe9   : > { %p7274_p13 = pnand %p7272_p10, %p7269_p8 }
  0xeb   : > { %7277 = shalt.err (!%p7274_p13)
}
  0xec   : > { %s7278_s22 = scalar_lea.vmem %s884_s19, 1024  ;;  %p7286_p6 = scmp.lt.s32.totalorder %s884_s19, %s884_s19 }
  0xed   : > { %p7279_p1 = scmp.ne.s32.totalorder %s884_s19, %s7278_s22  ;;  %p7287_p7 = scmp.lt.s32.totalorder %s7278_s22, %s7278_s22 }
  0xef   : > { %p7281_p2 = pnand %p7279_p1, %p8268_p0  ;;  %p7288_p9 = por %p7287_p7, %p7286_p6 }
  0xf1   : > { %p7282_p4 = pneg %p7281_p2 }
  0xf3   : > { %p7289_p11 = pnand %p7288_p9, %p7282_p4 }
  0xf5   : > { %7292 = shalt.err (!%p7289_p11)
}
  0xf6   : > { %s7996_s0 = smov 256   ;;  %s7997_s25 = smov 16  }
  0xf7   : > { %6909 = dma.hbm_to_vmem [thread:$0]  (!%p8254_p12), %s9728_s26, 1024, %s884_s19, [#allocation9], %s7996_s0, %s7996_s0, %s7997_s25  }
  0xf8   : > { %s7998_s28 = smov [#allocation37]   ;;  %s9729_s27 = sld [smem:[#allocation80_spill]] }
  0xf9   : > { %s897_s18 = sshll.u32 %s7998_s28, 4  ;;  %s898_s18 = int_to_ptr.vmem [resolvable:$true] %s897_s18 }
  0xfe   : > { %s7293_s8 = scalar_lea.hbm %s9729_s27, 32 }
  0xff   : > { %p7294_p3 = scmp.ne.s32.totalorder %s9729_s27, %s7293_s8  ;;  %p7300_p10 = scmp.lt.u32.totalorder %s7293_s8, %s9729_s27 }
 0x101   : > { %p7296_p5 = pnand %p7294_p3, %p8268_p0 }
 0x103   : > { %p7297_p8 = pneg %p7296_p5 }
 0x105   : > { %p7302_p13 = pnand %p7300_p10, %p7297_p8 }
 0x107   : > { %7305 = shalt.err (!%p7302_p13)
}
 0x108   : > { %s7306_s19 = scalar_lea.vmem %s898_s18, 32  ;;  %p7314_p6 = scmp.lt.s32.totalorder %s898_s18, %s898_s18 }
 0x109   : > { %p7307_p1 = scmp.ne.s32.totalorder %s898_s18, %s7306_s19  ;;  %p7315_p7 = scmp.lt.s32.totalorder %s7306_s19, %s7306_s19 }
 0x10b   : > { %p7309_p2 = pnand %p7307_p1, %p8268_p0  ;;  %p7316_p9 = por %p7315_p7, %p7314_p6 }
 0x10d   : > { %p7310_p4 = pneg %p7309_p2 }
 0x10f   : > { %p7317_p11 = pnand %p7316_p9, %p7310_p4 }
 0x111   : > { %7320 = shalt.err (!%p7317_p11)
}
 0x112   : > { %6912 = dma.hbm_to_vmem [thread:$0]  (!%p8254_p12), %s9729_s27, 32, %s898_s18, [#allocation12]  }
 0x113   : > { %p6076_p3 = scmp.ge.s32.totalorder %s7985_s6, 2 }
 0x114   : > { %s908_s4 = sand.u32 (!%p6076_p3), 1, %s7985_s6   ;;  %s8430_s12 = sand.u32 (!%p6076_p3), 1, %s7973_s9  }
 0x115   : > { %904 = sbr.rel (%p6076_p3) target bundleno = 770 (0x302), region = 48  ;;  %s8433_s20 = sshll.u32 (!%p6076_p3), %s8430_s12, 5 }
 0x116   : > { %s8436_s28 = sshll.u32 (!%p6076_p3), %s7981_s3, 9  ;;  %s9730_s18 = sld [smem:[#allocation62_spill]] (!%p6076_p3) }
 0x117   : > { %s912_s8 = scalar_lea.vmem (!%p6076_p3), [#allocation16], %s8433_s20  ;;  %s8447_s24 = scalar_lea.sflag (!%p6076_p3), [#allocation6], %s908_s4 }
 0x118   : > { %s919_s21 = sshll.u32 (!%p6076_p3), %s912_s8, 4  ;;  %p9731_p0 = scmp.ne.s32.totalorder (!%p6076_p3), %s9711_s29, 0  ;;  %s8445_s21 = int_to_ptr.vmem [resolvable:$true] %s919_s21 }
 0x11c   : > { %s8442_s30 = scalar_lea.hbm %s9730_s18, %s8436_s28  ;;  %s7325_s0 = scalar_lea.hbm %s9730_s18, 1024 }
 0x11d   : > { %s7321_s10 = scalar_lea.hbm %s8442_s30, 512  ;;  %p7326_p10 = scmp.lt.u32.totalorder %s8442_s30, %s9730_s18 }
 0x11e   : > { %p7322_p12 = scmp.ne.s32.totalorder %s8442_s30, %s7321_s10  ;;  %p7327_p13 = scmp.lt.u32.totalorder %s7325_s0, %s7321_s10 }
 0x11f   : > { %p7329_p2 = scmp.lt.u32.totalorder %s7321_s10, %s8442_s30 }
 0x120   : > { %p7323_p5 = pnand %p7322_p12, %p9731_p0  ;;  %p7328_p1 = por %p7327_p13, %p7326_p10 }
 0x122   : > { %p7324_p8 = pneg %p7323_p5  ;;  %p7330_p4 = por %p7329_p2, %p7328_p1 }
 0x124   : > { %p7331_p6 = pnand %p7330_p4, %p7324_p8 }
 0x126   : > { %7334 = shalt.err (!%p7331_p6)
}
 0x127   : > { %s7335_s4 = scalar_lea.vmem %s8445_s21, 512  ;;  %s7999_s5 = smov [#allocation16]  }
 0x128   : > { %p7336_p7 = scmp.ne.s32.totalorder %s8445_s21, %s7335_s4  ;;  %s7339_s8 = sshll.u32 %s7999_s5, 4  ;;  %s7340_s8 = int_to_ptr.vmem [resolvable:$false] %s7339_s8 }
 0x129   : > { %s7341_s22 = scalar_lea.vmem %s7340_s8, 1024  ;;  %p7342_p3 = scmp.lt.s32.totalorder %s8445_s21, %s7340_s8 }
 0x12a   : > { %p7337_p9 = pnand %p7336_p7, %p9731_p0  ;;  %p7343_p12 = scmp.lt.s32.totalorder %s7341_s22, %s7335_s4 }
 0x12c   : > { %p7338_p11 = pneg %p7337_p9  ;;  %p7344_p5 = por %p7343_p12, %p7342_p3 }
 0x12e   : > { %p7345_p10 = pnand %p7344_p5, %p7338_p11 }
 0x130   : > { %7348 = shalt.err (!%p7345_p10)
}
 0x131   : > { %s9665_s10 = smov 128   ;;  %s9667_s19 = smov 8  }
 0x132   : > { %6828 = dma.hbm_to_vmem [thread:$0]  (%p9731_p0), %s8442_s30, 512, %s8445_s21, %s8447_s24, %s9665_s10, %s9665_s10, %s9667_s19  }
 0x133   : > { %s8475_s0 = sshll.u32 %s7981_s3, 4  ;;  %s932_s25 = scalar_lea.vmem [#allocation17], %s8430_s12 }
 0x134   : > { %s939_s2 = sshll.u32 %s932_s25, 4  ;;  %s9732_s8 = sld [smem:[#allocation63_spill]]  ;;  %s940_s2 = int_to_ptr.vmem [resolvable:$true] %s939_s2 }
 0x13a   : > { %s9733_s22 = smov %s9732_s8  ;;  %s937_s1 = scalar_lea.hbm %s9732_s8, %s8475_s0 }
 0x13b   : > { %s7349_s7 = scalar_lea.hbm %s937_s1, 16  ;;  %s7353_s23 = scalar_lea.hbm %s9733_s22, 32 }
 0x13c   : > { %p7350_p8 = scmp.ne.s32.totalorder %s937_s1, %s7349_s7  ;;  %p7354_p2 = scmp.lt.u32.totalorder %s937_s1, %s9733_s22 }
 0x13d   : > { %p7355_p4 = scmp.lt.u32.totalorder %s7353_s23, %s7349_s7  ;;  %p7357_p7 = scmp.lt.u32.totalorder %s7349_s7, %s937_s1 }
 0x13e   : > { %p7351_p13 = pnand %p7350_p8, %p9731_p0 }
 0x13f   : > { %p7356_p6 = por %p7355_p4, %p7354_p2 }
 0x140   : > { %p7352_p1 = pneg %p7351_p13 }
 0x141   : > { %p7358_p9 = por %p7357_p7, %p7356_p6 }
 0x143   : > { %p7359_p11 = pnand %p7358_p9, %p7352_p1 }
 0x145   : > { %7362 = shalt.err (!%p7359_p11)
}
 0x146   : > { %s7363_s25 = scalar_lea.vmem %s940_s2, 16  ;;  %s8002_s4 = smov [#allocation17]  }
 0x147   : > { %p7364_p3 = scmp.ne.s32.totalorder %s940_s2, %s7363_s25  ;;  %s7367_s5 = sshll.u32 %s8002_s4, 4  ;;  %s7368_s5 = int_to_ptr.vmem [resolvable:$false] %s7367_s5 }
 0x148   : > { %s7369_s11 = scalar_lea.vmem %s7368_s5, 32  ;;  %p7370_p10 = scmp.lt.s32.totalorder %s940_s2, %s7368_s5 }
 0x149   : > { %p7365_p12 = pnand %p7364_p3, %p9731_p0  ;;  %p7371_p8 = scmp.lt.s32.totalorder %s7369_s11, %s7363_s25 }
 0x14b   : > { %p7366_p5 = pneg %p7365_p12  ;;  %p7372_p13 = por %p7371_p8, %p7370_p10 }
 0x14d   : > { %p7373_p2 = pnand %p7372_p13, %p7366_p5 }
 0x14f   : > { %7376 = shalt.err (!%p7373_p2)
}
 0x150   : > { %6829 = dma.hbm_to_vmem [thread:$0]  (%p9731_p0), %s937_s1, 16, %s940_s2, %s8447_s24  }
 0x151   : > { %s9734_s18 = sld [smem:[#allocation64_spill]]  ;;  %s950_s30 = scalar_lea.vmem [#allocation18], %s8433_s20 }
 0x152   : > { %s957_s21 = sshll.u32 %s950_s30, 4  ;;  %s9735_s5 = sld [smem:[#allocation65_spill]]  ;;  %s8502_s21 = int_to_ptr.vmem [resolvable:$true] %s957_s21 }
 0x157   : > { %s8499_s8 = scalar_lea.hbm %s9734_s18, %s8436_s28  ;;  %s7381_s7 = scalar_lea.hbm %s9734_s18, 1024 }
 0x158   : > { %s9736_s11 = smov %s9735_s5  ;;  %s8508_s10 = scalar_lea.hbm %s9735_s5, %s8475_s0 }
 0x159   : > { %s7377_s19 = scalar_lea.hbm %s8499_s8, 512  ;;  %p7382_p7 = scmp.lt.u32.totalorder %s8499_s8, %s9734_s18 }
 0x15a   : > { %p7378_p1 = scmp.ne.s32.totalorder %s8499_s8, %s7377_s19  ;;  %p7383_p9 = scmp.lt.u32.totalorder %s7381_s7, %s7377_s19 }
 0x15b   : > { %p7385_p3 = scmp.lt.u32.totalorder %s7377_s19, %s8499_s8 }
 0x15c   : > { %p7379_p4 = pnand %p7378_p1, %p9731_p0  ;;  %p7384_p11 = por %p7383_p9, %p7382_p7 }
 0x15e   : > { %p7380_p6 = pneg %p7379_p4  ;;  %p7386_p12 = por %p7385_p3, %p7384_p11 }
 0x160   : > { %p7387_p5 = pnand %p7386_p12, %p7380_p6 }
 0x162   : > { %7390 = shalt.err (!%p7387_p5)
}
 0x163   : > { %s7391_s30 = scalar_lea.vmem %s8502_s21, 512  ;;  %s8003_s25 = smov [#allocation18]  }
 0x164   : > { %p7392_p10 = scmp.ne.s32.totalorder %s8502_s21, %s7391_s30  ;;  %s7395_s4 = sshll.u32 %s8003_s25, 4  ;;  %s7396_s4 = int_to_ptr.vmem [resolvable:$false] %s7395_s4 }
 0x165   : > { %s7397_s22 = scalar_lea.vmem %s7396_s4, 1024  ;;  %p7398_p2 = scmp.lt.s32.totalorder %s8502_s21, %s7396_s4 }
 0x166   : > { %p7393_p8 = pnand %p7392_p10, %p9731_p0  ;;  %p7399_p1 = scmp.lt.s32.totalorder %s7397_s22, %s7391_s30 }
 0x168   : > { %p7394_p13 = pneg %p7393_p8  ;;  %p7400_p4 = por %p7399_p1, %p7398_p2 }
 0x16a   : > { %p7401_p7 = pnand %p7400_p4, %p7394_p13 }
 0x16c   : > { %7404 = shalt.err (!%p7401_p7)
}
 0x16d   : > { %s9737_s19 = smov 8   ;;  %s9738_s5 = smov 128  }
 0x16e   : > { %6830 = dma.hbm_to_vmem [thread:$0]  (%p9731_p0), %s8499_s8, 512, %s8502_s21, %s8447_s24, %s9738_s5, %s9738_s5, %s9737_s19  }
 0x16f   : > { %s970_s1 = scalar_lea.vmem [#allocation19], %s8430_s12  ;;  %s9739_s30 = sld [smem:[#allocation66_spill]] }
 0x170   : > { %s977_s2 = sshll.u32 %s970_s1, 4  ;;  %s7405_s22 = scalar_lea.hbm %s8508_s10, 16  ;;  %s978_s2 = int_to_ptr.vmem [resolvable:$true] %s977_s2 }
 0x171   : > { %p7406_p6 = scmp.ne.s32.totalorder %s8508_s10, %s7405_s22  ;;  %s7409_s27 = scalar_lea.hbm %s9736_s11, 32 }
 0x172   : > { %p7410_p3 = scmp.lt.u32.totalorder %s8508_s10, %s9736_s11  ;;  %p7411_p12 = scmp.lt.u32.totalorder %s7409_s27, %s7405_s22 }
 0x173   : > { %p7407_p9 = pnand %p7406_p6, %p9731_p0  ;;  %p7413_p10 = scmp.lt.u32.totalorder %s7405_s22, %s8508_s10 }
 0x174   : > { %p7412_p5 = por %p7411_p12, %p7410_p3 }
 0x175   : > { %s9740_s25 = smov %s9739_s30  ;;  %s8540_s4 = scalar_lea.hbm %s9739_s30, %s8475_s0 }
 0x176   : > { %p7408_p11 = pneg %p7407_p9  ;;  %p7414_p8 = por %p7413_p10, %p7412_p5 }
 0x178   : > { %p7415_p13 = pnand %p7414_p8, %p7408_p11 }
 0x17a   : > { %7418 = shalt.err (!%p7415_p13)
}
 0x17b   : > { %s7419_s8 = scalar_lea.vmem %s978_s2, 16  ;;  %s8004_s21 = smov [#allocation19]  }
 0x17c   : > { %p7420_p2 = scmp.ne.s32.totalorder %s978_s2, %s7419_s8  ;;  %s7423_s1 = sshll.u32 %s8004_s21, 4  ;;  %s7424_s1 = int_to_ptr.vmem [resolvable:$false] %s7423_s1 }
 0x17d   : > { %s7425_s26 = scalar_lea.vmem %s7424_s1, 32  ;;  %p7426_p7 = scmp.lt.s32.totalorder %s978_s2, %s7424_s1 }
 0x17e   : > { %p7421_p1 = pnand %p7420_p2, %p9731_p0  ;;  %p7427_p6 = scmp.lt.s32.totalorder %s7425_s26, %s7419_s8 }
 0x180   : > { %p7422_p4 = pneg %p7421_p1  ;;  %p7428_p9 = por %p7427_p6, %p7426_p7 }
 0x182   : > { %p7429_p3 = pnand %p7428_p9, %p7422_p4 }
 0x184   : > { %7432 = shalt.err (!%p7429_p3)
}
 0x185   : > { %6831 = dma.hbm_to_vmem [thread:$0]  (%p9731_p0), %s8508_s10, 16, %s978_s2, %s8447_s24  }
 0x186   : > { %s987_s27 = scalar_lea.vmem [#allocation20], %s8430_s12  ;;  %s9741_s7 = sld [smem:[#allocation67_spill]] }
 0x187   : > { %s994_s9 = sshll.u32 %s987_s27, 4  ;;  %s7433_s30 = scalar_lea.hbm %s8540_s4, 16  ;;  %s995_s9 = int_to_ptr.vmem [resolvable:$true] %s994_s9 }
 0x188   : > { %p7434_p11 = scmp.ne.s32.totalorder %s8540_s4, %s7433_s30  ;;  %s7437_s21 = scalar_lea.hbm %s9740_s25, 32 }
 0x189   : > { %p7438_p10 = scmp.lt.u32.totalorder %s8540_s4, %s9740_s25  ;;  %p7439_p8 = scmp.lt.u32.totalorder %s7437_s21, %s7433_s30 }
 0x18a   : > { %p7435_p12 = pnand %p7434_p11, %p9731_p0  ;;  %p7441_p2 = scmp.lt.u32.totalorder %s7433_s30, %s8540_s4 }
 0x18b   : > { %p7440_p13 = por %p7439_p8, %p7438_p10 }
 0x18c   : > { %s8565_s23 = scalar_lea.hbm %s9741_s7, %s8475_s0  ;;  %p7436_p5 = pneg %p7435_p12 }
 0x18d   : > { %p7442_p1 = por %p7441_p2, %p7440_p13 }
 0x18f   : > { %p7443_p4 = pnand %p7442_p1, %p7436_p5 }
 0x191   : > { %7446 = shalt.err (!%p7443_p4)
}
 0x192   : > { %s7447_s10 = scalar_lea.vmem %s995_s9, 16  ;;  %s8005_s2 = smov [#allocation20]  }
 0x193   : > { %p7448_p7 = scmp.ne.s32.totalorder %s995_s9, %s7447_s10  ;;  %s7451_s27 = sshll.u32 %s8005_s2, 4  ;;  %s7452_s27 = int_to_ptr.vmem [resolvable:$false] %s7451_s27 }
 0x194   : > { %s7453_s6 = scalar_lea.vmem %s7452_s27, 32  ;;  %p7454_p3 = scmp.lt.s32.totalorder %s995_s9, %s7452_s27 }
 0x195   : > { %p7449_p6 = pnand %p7448_p7, %p9731_p0  ;;  %p7455_p11 = scmp.lt.s32.totalorder %s7453_s6, %s7447_s10 }
 0x197   : > { %p7450_p9 = pneg %p7449_p6  ;;  %p7456_p12 = por %p7455_p11, %p7454_p3 }
 0x199   : > { %p7457_p8 = pnand %p7456_p12, %p7450_p9 }
 0x19b   : > { %7460 = shalt.err (!%p7457_p8)
}
 0x19c   : > { %6832 = dma.hbm_to_vmem [thread:$0]  (%p9731_p0), %s8540_s4, 16, %s995_s9, %s8447_s24  }
 0x19d   : > { %s1004_s18 = scalar_lea.vmem [#allocation21], %s8430_s12  ;;  %s9742_s21 = sld [smem:[#allocation68_spill]] }
 0x19e   : > { %s1011_s30 = sshll.u32 %s1004_s18, 4  ;;  %s7461_s26 = scalar_lea.hbm %s8565_s23, 16  ;;  %s1012_s30 = int_to_ptr.vmem [resolvable:$true] %s1011_s30 }
 0x19f   : > { %p7462_p5 = scmp.ne.s32.totalorder %s8565_s23, %s7461_s26  ;;  %s7465_s27 = scalar_lea.hbm %s9741_s7, 32 }
 0x1a0   : > { %p7466_p2 = scmp.lt.u32.totalorder %s8565_s23, %s9741_s7  ;;  %p7467_p1 = scmp.lt.u32.totalorder %s7465_s27, %s7461_s26 }
 0x1a1   : > { %p7463_p10 = pnand %p7462_p5, %p9731_p0  ;;  %p7469_p7 = scmp.lt.u32.totalorder %s7461_s26, %s8565_s23 }
 0x1a2   : > { %p7468_p4 = por %p7467_p1, %p7466_p2 }
 0x1a3   : > { %s8590_s1 = scalar_lea.hbm %s9742_s21, %s8436_s28  ;;  %p7464_p13 = pneg %p7463_p10 }
 0x1a4   : > { %p7470_p6 = por %p7469_p7, %p7468_p4 }
 0x1a6   : > { %p7471_p9 = pnand %p7470_p6, %p7464_p13 }
 0x1a8   : > { %7474 = shalt.err (!%p7471_p9)
}
 0x1a9   : > { %s7475_s4 = scalar_lea.vmem %s1012_s30, 16  ;;  %s8006_s9 = smov [#allocation21]  }
 0x1aa   : > { %p7476_p3 = scmp.ne.s32.totalorder %s1012_s30, %s7475_s4  ;;  %s7479_s18 = sshll.u32 %s8006_s9, 4  ;;  %s7480_s18 = int_to_ptr.vmem [resolvable:$false] %s7479_s18 }
 0x1ab   : > { %s7481_s22 = scalar_lea.vmem %s7480_s18, 32  ;;  %p7482_p8 = scmp.lt.s32.totalorder %s1012_s30, %s7480_s18 }
 0x1ac   : > { %p7477_p11 = pnand %p7476_p3, %p9731_p0  ;;  %p7483_p5 = scmp.lt.s32.totalorder %s7481_s22, %s7475_s4 }
 0x1ae   : > { %p7478_p12 = pneg %p7477_p11  ;;  %p7484_p10 = por %p7483_p5, %p7482_p8 }
 0x1b0   : > { %p7485_p1 = pnand %p7484_p10, %p7478_p12 }
 0x1b2   : > { %7488 = shalt.err (!%p7485_p1)
}
 0x1b3   : > { %6833 = dma.hbm_to_vmem [thread:$0]  (%p9731_p0), %s8565_s23, 16, %s1012_s30, %s8447_s24  }
 0x1b4   : > { %s1022_s11 = scalar_lea.vmem [#allocation22], %s8433_s20  ;;  %s9743_s13 = sld [smem:[#allocation69_spill]] }
 0x1b5   : > { %s1029_s8 = sshll.u32 %s1022_s11, 4  ;;  %s7489_s27 = scalar_lea.hbm %s8590_s1, 512  ;;  %s8611_s8 = int_to_ptr.vmem [resolvable:$true] %s1029_s8 }
 0x1b6   : > { %p7490_p13 = scmp.ne.s32.totalorder %s8590_s1, %s7489_s27  ;;  %s7493_s9 = scalar_lea.hbm %s9742_s21, 1024 }
 0x1b7   : > { %p7494_p7 = scmp.lt.u32.totalorder %s8590_s1, %s9742_s21  ;;  %p7495_p6 = scmp.lt.u32.totalorder %s7493_s9, %s7489_s27 }
 0x1b8   : > { %p7491_p2 = pnand %p7490_p13, %p9731_p0  ;;  %p7497_p3 = scmp.lt.u32.totalorder %s7489_s27, %s8590_s1 }
 0x1b9   : > { %p7496_p9 = por %p7495_p6, %p7494_p7 }
 0x1ba   : > { %s8617_s2 = scalar_lea.hbm %s9743_s13, %s8475_s0  ;;  %p7492_p4 = pneg %p7491_p2 }
 0x1bb   : > { %p7498_p11 = por %p7497_p3, %p7496_p9 }
 0x1bd   : > { %p7499_p12 = pnand %p7498_p11, %p7492_p4 }
 0x1bf   : > { %7502 = shalt.err (!%p7499_p12)
}
 0x1c0   : > { %s7503_s30 = scalar_lea.vmem %s8611_s8, 512  ;;  %s8007_s22 = smov [#allocation22]  }
 0x1c1   : > { %p7504_p8 = scmp.ne.s32.totalorder %s8611_s8, %s7503_s30  ;;  %s7507_s11 = sshll.u32 %s8007_s22, 4  ;;  %s7508_s11 = int_to_ptr.vmem [resolvable:$false] %s7507_s11 }
 0x1c2   : > { %s7509_s26 = scalar_lea.vmem %s7508_s11, 1024  ;;  %p7510_p1 = scmp.lt.s32.totalorder %s8611_s8, %s7508_s11 }
 0x1c3   : > { %p7505_p5 = pnand %p7504_p8, %p9731_p0  ;;  %p7511_p13 = scmp.lt.s32.totalorder %s7509_s26, %s7503_s30 }
 0x1c5   : > { %p7506_p10 = pneg %p7505_p5  ;;  %p7512_p2 = por %p7511_p13, %p7510_p1 }
 0x1c7   : > { %p7513_p7 = pnand %p7512_p2, %p7506_p10 }
 0x1c9   : > { %7516 = shalt.err (!%p7513_p7)
}
 0x1ca   : > { %6834 = dma.hbm_to_vmem [thread:$0]  (%p9731_p0), %s8590_s1, 512, %s8611_s8, %s8447_s24, %s9738_s5, %s9738_s5, %s9737_s19  }
 0x1cb   : > { %s1042_s10 = scalar_lea.vmem [#allocation23], %s8430_s12  ;;  %s9744_s14 = sld [smem:[#allocation70_spill]] }
 0x1cc   : > { %s1049_s27 = sshll.u32 %s1042_s10, 4  ;;  %s7517_s18 = scalar_lea.hbm %s8617_s2, 16  ;;  %s1050_s27 = int_to_ptr.vmem [resolvable:$true] %s1049_s27 }
 0x1cd   : > { %p7518_p4 = scmp.ne.s32.totalorder %s8617_s2, %s7517_s18  ;;  %s7521_s22 = scalar_lea.hbm %s9743_s13, 32 }
 0x1ce   : > { %p7522_p3 = scmp.lt.u32.totalorder %s8617_s2, %s9743_s13  ;;  %p7523_p11 = scmp.lt.u32.totalorder %s7521_s22, %s7517_s18 }
 0x1cf   : > { %p7519_p6 = pnand %p7518_p4, %p9731_p0  ;;  %p7525_p8 = scmp.lt.u32.totalorder %s7517_s18, %s8617_s2 }
 0x1d0   : > { %p7524_p12 = por %p7523_p11, %p7522_p3 }
 0x1d1   : > { %s8649_s9 = scalar_lea.hbm %s9744_s14, %s8436_s28  ;;  %p7520_p9 = pneg %p7519_p6 }
 0x1d2   : > { %p7526_p5 = por %p7525_p8, %p7524_p12 }
 0x1d4   : > { %p7527_p10 = pnand %p7526_p5, %p7520_p9 }
 0x1d6   : > { %7530 = shalt.err (!%p7527_p10)
}
 0x1d7   : > { %s7531_s1 = scalar_lea.vmem %s1050_s27, 16  ;;  %s8008_s8 = smov [#allocation23]  }
 0x1d8   : > { %p7532_p1 = scmp.ne.s32.totalorder %s1050_s27, %s7531_s1  ;;  %s7535_s10 = sshll.u32 %s8008_s8, 4  ;;  %s7536_s10 = int_to_ptr.vmem [resolvable:$false] %s7535_s10 }
 0x1d9   : > { %s7537_s6 = scalar_lea.vmem %s7536_s10, 32  ;;  %p7538_p7 = scmp.lt.s32.totalorder %s1050_s27, %s7536_s10 }
 0x1da   : > { %p7533_p13 = pnand %p7532_p1, %p9731_p0  ;;  %p7539_p4 = scmp.lt.s32.totalorder %s7537_s6, %s7531_s1 }
 0x1dc   : > { %p7534_p2 = pneg %p7533_p13  ;;  %p7540_p6 = por %p7539_p4, %p7538_p7 }
 0x1de   : > { %p7541_p3 = pnand %p7540_p6, %p7534_p2 }
 0x1e0   : > { %7544 = shalt.err (!%p7541_p3)
}
 0x1e1   : > { %6835 = dma.hbm_to_vmem [thread:$0]  (%p9731_p0), %s8617_s2, 16, %s1050_s27, %s8447_s24  }
 0x1e2   : > { %s1060_s4 = scalar_lea.vmem [#allocation24], %s8433_s20  ;;  %s8676_s22 = scalar_lea.hbm %s9610_s15, %s8475_s0 }
 0x1e3   : > { %s1067_s18 = sshll.u32 %s1060_s4, 4  ;;  %s7545_s11 = scalar_lea.hbm %s8649_s9, 512  ;;  %s8670_s18 = int_to_ptr.vmem [resolvable:$true] %s1067_s18 }
 0x1e4   : > { %p7546_p9 = scmp.ne.s32.totalorder %s8649_s9, %s7545_s11  ;;  %s7549_s8 = scalar_lea.hbm %s9744_s14, 1024 }
 0x1e5   : > { %p7550_p8 = scmp.lt.u32.totalorder %s8649_s9, %s9744_s14  ;;  %p7551_p5 = scmp.lt.u32.totalorder %s7549_s8, %s7545_s11 }
 0x1e6   : > { %p7547_p11 = pnand %p7546_p9, %p9731_p0  ;;  %p7553_p1 = scmp.lt.u32.totalorder %s7545_s11, %s8649_s9 }
 0x1e7   : > { %p7552_p10 = por %p7551_p5, %p7550_p8 }
 0x1e8   : > { %p7548_p12 = pneg %p7547_p11 }
 0x1e9   : > { %p7554_p13 = por %p7553_p1, %p7552_p10 }
 0x1eb   : > { %p7555_p2 = pnand %p7554_p13, %p7548_p12 }
 0x1ed   : > { %7558 = shalt.err (!%p7555_p2)
}
 0x1ee   : > { %s7559_s27 = scalar_lea.vmem %s8670_s18, 512  ;;  %s8009_s6 = smov [#allocation24]  }
 0x1ef   : > { %p7560_p7 = scmp.ne.s32.totalorder %s8670_s18, %s7559_s27  ;;  %s7563_s4 = sshll.u32 %s8009_s6, 4  ;;  %s7564_s4 = int_to_ptr.vmem [resolvable:$false] %s7563_s4 }
 0x1f0   : > { %s7565_s23 = scalar_lea.vmem %s7564_s4, 1024  ;;  %p7566_p3 = scmp.lt.s32.totalorder %s8670_s18, %s7564_s4 }
 0x1f1   : > { %p7561_p4 = pnand %p7560_p7, %p9731_p0  ;;  %p7567_p9 = scmp.lt.s32.totalorder %s7565_s23, %s7559_s27 }
 0x1f3   : > { %p7562_p6 = pneg %p7561_p4  ;;  %p7568_p11 = por %p7567_p9, %p7566_p3 }
 0x1f5   : > { %p7569_p8 = pnand %p7568_p11, %p7562_p6 }
 0x1f7   : > { %7572 = shalt.err (!%p7569_p8)
}
 0x1f8   : > { %6836 = dma.hbm_to_vmem [thread:$0]  (%p9731_p0), %s8649_s9, 512, %s8670_s18, %s8447_s24, %s9738_s5, %s9738_s5, %s9737_s19  }
 0x1f9   : > { %s1080_s30 = scalar_lea.vmem [#allocation25], %s8430_s12  ;;  %s8708_s8 = scalar_lea.hbm %s9611_s16, %s8436_s28 }
 0x1fa   : > { %s1087_s11 = sshll.u32 %s1080_s30, 4  ;;  %s7573_s10 = scalar_lea.hbm %s8676_s22, 16  ;;  %s1088_s11 = int_to_ptr.vmem [resolvable:$true] %s1087_s11 }
 0x1fb   : > { %p7574_p12 = scmp.ne.s32.totalorder %s8676_s22, %s7573_s10  ;;  %s7577_s6 = scalar_lea.hbm %s9610_s15, 32 }
 0x1fc   : > { %p7578_p1 = scmp.lt.u32.totalorder %s8676_s22, %s9610_s15  ;;  %p7579_p13 = scmp.lt.u32.totalorder %s7577_s6, %s7573_s10 }
 0x1fd   : > { %p7575_p5 = pnand %p7574_p12, %p9731_p0  ;;  %p7581_p7 = scmp.lt.u32.totalorder %s7573_s10, %s8676_s22 }
 0x1fe   : > { %p7580_p2 = por %p7579_p13, %p7578_p1 }
 0x1ff   : > { %p7576_p10 = pneg %p7575_p5 }
 0x200   : > { %p7582_p4 = por %p7581_p7, %p7580_p2 }
 0x202   : > { %p7583_p6 = pnand %p7582_p4, %p7576_p10 }
 0x204   : > { %7586 = shalt.err (!%p7583_p6)
}
 0x205   : > { %s7587_s9 = scalar_lea.vmem %s1088_s11, 16  ;;  %s8010_s18 = smov [#allocation25]  }
 0x206   : > { %p7588_p3 = scmp.ne.s32.totalorder %s1088_s11, %s7587_s9  ;;  %s7591_s30 = sshll.u32 %s8010_s18, 4  ;;  %s7592_s30 = int_to_ptr.vmem [resolvable:$false] %s7591_s30 }
 0x207   : > { %s7593_s26 = scalar_lea.vmem %s7592_s30, 32  ;;  %p7594_p8 = scmp.lt.s32.totalorder %s1088_s11, %s7592_s30 }
 0x208   : > { %p7589_p9 = pnand %p7588_p3, %p9731_p0  ;;  %p7595_p12 = scmp.lt.s32.totalorder %s7593_s26, %s7587_s9 }
 0x20a   : > { %p7590_p11 = pneg %p7589_p9  ;;  %p7596_p5 = por %p7595_p12, %p7594_p8 }
 0x20c   : > { %p7597_p1 = pnand %p7596_p5, %p7590_p11 }
 0x20e   : > { %7600 = shalt.err (!%p7597_p1)
}
 0x20f   : > { %6837 = dma.hbm_to_vmem [thread:$0]  (%p9731_p0), %s8676_s22, 16, %s1088_s11, %s8447_s24  }
 0x210   : > { %s1098_s1 = scalar_lea.vmem [#allocation26], %s8433_s20  ;;  %s8735_s6 = scalar_lea.hbm %s9612_s17, %s8475_s0 }
 0x211   : > { %s1105_s10 = sshll.u32 %s1098_s1, 4  ;;  %s7601_s4 = scalar_lea.hbm %s8708_s8, 512  ;;  %s8729_s10 = int_to_ptr.vmem [resolvable:$true] %s1105_s10 }
 0x212   : > { %p7602_p10 = scmp.ne.s32.totalorder %s8708_s8, %s7601_s4  ;;  %s7605_s18 = scalar_lea.hbm %s9611_s16, 1024 }
 0x213   : > { %p7606_p7 = scmp.lt.u32.totalorder %s8708_s8, %s9611_s16  ;;  %p7607_p4 = scmp.lt.u32.totalorder %s7605_s18, %s7601_s4 }
 0x214   : > { %p7603_p13 = pnand %p7602_p10, %p9731_p0  ;;  %p7609_p3 = scmp.lt.u32.totalorder %s7601_s4, %s8708_s8 }
 0x215   : > { %p7608_p6 = por %p7607_p4, %p7606_p7 }
 0x216   : > { %p7604_p2 = pneg %p7603_p13 }
 0x217   : > { %p7610_p9 = por %p7609_p3, %p7608_p6 }
 0x219   : > { %p7611_p11 = pnand %p7610_p9, %p7604_p2 }
 0x21b   : > { %7614 = shalt.err (!%p7611_p11)
}
 0x21c   : > { %s7615_s11 = scalar_lea.vmem %s8729_s10, 512  ;;  %s8011_s26 = smov [#allocation26]  }
 0x21d   : > { %p7616_p8 = scmp.ne.s32.totalorder %s8729_s10, %s7615_s11  ;;  %s7619_s1 = sshll.u32 %s8011_s26, 4  ;;  %s7620_s1 = int_to_ptr.vmem [resolvable:$false] %s7619_s1 }
 0x21e   : > { %s7621_s2 = scalar_lea.vmem %s7620_s1, 1024  ;;  %p7622_p1 = scmp.lt.s32.totalorder %s8729_s10, %s7620_s1 }
 0x21f   : > { %p7617_p12 = pnand %p7616_p8, %p9731_p0  ;;  %p7623_p10 = scmp.lt.s32.totalorder %s7621_s2, %s7615_s11 }
 0x221   : > { %p7618_p5 = pneg %p7617_p12  ;;  %p7624_p13 = por %p7623_p10, %p7622_p1 }
 0x223   : > { %p7625_p7 = pnand %p7624_p13, %p7618_p5 }
 0x225   : > { %7628 = shalt.err (!%p7625_p7)
}
 0x226   : > { %6838 = dma.hbm_to_vmem [thread:$0]  (%p9731_p0), %s8708_s8, 512, %s8729_s10, %s8447_s24, %s9738_s5, %s9738_s5, %s9737_s19  }
 0x227   : > { %s1118_s27 = scalar_lea.vmem [#allocation27], %s8430_s12  ;;  %s9745_s18 = sld [smem:[#allocation71_spill]] }
 0x228   : > { %s1125_s4 = sshll.u32 %s1118_s27, 4  ;;  %s7629_s22 = scalar_lea.hbm %s8735_s6, 16  ;;  %s1126_s4 = int_to_ptr.vmem [resolvable:$true] %s1125_s4 }
 0x229   : > { %p7630_p2 = scmp.ne.s32.totalorder %s8735_s6, %s7629_s22  ;;  %s7633_s1 = scalar_lea.hbm %s9612_s17, 32 }
 0x22a   : > { %p7634_p3 = scmp.lt.u32.totalorder %s8735_s6, %s9612_s17  ;;  %p7635_p9 = scmp.lt.u32.totalorder %s7633_s1, %s7629_s22 }
 0x22b   : > { %p7631_p4 = pnand %p7630_p2, %p9731_p0  ;;  %p7637_p8 = scmp.lt.u32.totalorder %s7629_s22, %s8735_s6 }
 0x22c   : > { %p7636_p11 = por %p7635_p9, %p7634_p3 }
 0x22d   : > { %s8767_s30 = scalar_lea.hbm %s9745_s18, %s8475_s0  ;;  %p7632_p6 = pneg %p7631_p4 }
 0x22e   : > { %p7638_p12 = por %p7637_p8, %p7636_p11 }
 0x230   : > { %p7639_p5 = pnand %p7638_p12, %p7632_p6 }
 0x232   : > { %7642 = shalt.err (!%p7639_p5)
}
 0x233   : > { %s7643_s8 = scalar_lea.vmem %s1126_s4, 16  ;;  %s8012_s10 = smov [#allocation27]  }
 0x234   : > { %p7644_p1 = scmp.ne.s32.totalorder %s1126_s4, %s7643_s8  ;;  %s7647_s27 = sshll.u32 %s8012_s10, 4  ;;  %s7648_s27 = int_to_ptr.vmem [resolvable:$false] %s7647_s27 }
 0x235   : > { %s7649_s23 = scalar_lea.vmem %s7648_s27, 32  ;;  %p7650_p7 = scmp.lt.s32.totalorder %s1126_s4, %s7648_s27 }
 0x236   : > { %p7645_p10 = pnand %p7644_p1, %p9731_p0  ;;  %p7651_p2 = scmp.lt.s32.totalorder %s7649_s23, %s7643_s8 }
 0x238   : > { %p7646_p13 = pneg %p7645_p10  ;;  %p7652_p4 = por %p7651_p2, %p7650_p7 }
 0x23a   : > { %p7653_p3 = pnand %p7652_p4, %p7646_p13 }
 0x23c   : > { %7656 = shalt.err (!%p7653_p3)
}
 0x23d   : > { %6839 = dma.hbm_to_vmem [thread:$0]  (%p9731_p0), %s8735_s6, 16, %s1126_s4, %s8447_s24  }
 0x23e   : > { %s1135_s7 = scalar_lea.vmem [#allocation28], %s8430_s12  ;;  %s9746_s26 = sld [smem:[#allocation72_spill]] }
 0x23f   : > { %s1142_s9 = sshll.u32 %s1135_s7, 4  ;;  %s7657_s2 = scalar_lea.hbm %s8767_s30, 16  ;;  %s1143_s9 = int_to_ptr.vmem [resolvable:$true] %s1142_s9 }
 0x240   : > { %p7658_p6 = scmp.ne.s32.totalorder %s8767_s30, %s7657_s2  ;;  %s7661_s27 = scalar_lea.hbm %s9745_s18, 32 }
 0x241   : > { %p7662_p8 = scmp.lt.u32.totalorder %s8767_s30, %s9745_s18  ;;  %p7663_p12 = scmp.lt.u32.totalorder %s7661_s27, %s7657_s2 }
 0x242   : > { %p7659_p9 = pnand %p7658_p6, %p9731_p0  ;;  %p7665_p1 = scmp.lt.u32.totalorder %s7657_s2, %s8767_s30 }
 0x243   : > { %p7664_p5 = por %p7663_p12, %p7662_p8 }
 0x244   : > { %s8792_s1 = scalar_lea.hbm %s9746_s26, %s8475_s0  ;;  %p7660_p11 = pneg %p7659_p9 }
 0x245   : > { %p7666_p10 = por %p7665_p1, %p7664_p5 }
 0x247   : > { %p7667_p13 = pnand %p7666_p10, %p7660_p11 }
 0x249   : > { %7670 = shalt.err (!%p7667_p13)
}
 0x24a   : > { %s7671_s6 = scalar_lea.vmem %s1143_s9, 16  ;;  %s8013_s4 = smov [#allocation28]  }
 0x24b   : > { %p7672_p7 = scmp.ne.s32.totalorder %s1143_s9, %s7671_s6  ;;  %s7675_s7 = sshll.u32 %s8013_s4, 4  ;;  %s7676_s7 = int_to_ptr.vmem [resolvable:$false] %s7675_s7 }
 0x24c   : > { %s7677_s22 = scalar_lea.vmem %s7676_s7, 32  ;;  %p7678_p3 = scmp.lt.s32.totalorder %s1143_s9, %s7676_s7 }
 0x24d   : > { %p7673_p2 = pnand %p7672_p7, %p9731_p0  ;;  %p7679_p6 = scmp.lt.s32.totalorder %s7677_s22, %s7671_s6 }
 0x24f   : > { %p7674_p4 = pneg %p7673_p2  ;;  %p7680_p9 = por %p7679_p6, %p7678_p3 }
 0x251   : > { %p7681_p8 = pnand %p7680_p9, %p7674_p4 }
 0x253   : > { %7684 = shalt.err (!%p7681_p8)
}
 0x254   : > { %6840 = dma.hbm_to_vmem [thread:$0]  (%p9731_p0), %s8767_s30, 16, %s1143_s9, %s8447_s24  }
 0x255   : > { %s1152_s13 = scalar_lea.vmem [#allocation29], %s8430_s12  ;;  %s9747_s10 = sld [smem:[#allocation73_spill]] }
 0x256   : > { %s1159_s11 = sshll.u32 %s1152_s13, 4  ;;  %s7685_s23 = scalar_lea.hbm %s8792_s1, 16  ;;  %s1160_s11 = int_to_ptr.vmem [resolvable:$true] %s1159_s11 }
 0x257   : > { %p7686_p11 = scmp.ne.s32.totalorder %s8792_s1, %s7685_s23  ;;  %s7689_s7 = scalar_lea.hbm %s9746_s26, 32 }
 0x258   : > { %p7690_p1 = scmp.lt.u32.totalorder %s8792_s1, %s9746_s26  ;;  %p7691_p10 = scmp.lt.u32.totalorder %s7689_s7, %s7685_s23 }
 0x259   : > { %p7687_p12 = pnand %p7686_p11, %p9731_p0  ;;  %p7693_p7 = scmp.lt.u32.totalorder %s7685_s23, %s8792_s1 }
 0x25a   : > { %p7692_p13 = por %p7691_p10, %p7690_p1 }
 0x25b   : > { %s8817_s27 = scalar_lea.hbm %s9747_s10, %s8436_s28  ;;  %p7688_p5 = pneg %p7687_p12 }
 0x25c   : > { %p7694_p2 = por %p7693_p7, %p7692_p13 }
 0x25e   : > { %p7695_p4 = pnand %p7694_p2, %p7688_p5 }
 0x260   : > { %7698 = shalt.err (!%p7695_p4)
}
 0x261   : > { %s7699_s28 = scalar_lea.vmem %s1160_s11, 16  ;;  %s8014_s30 = smov [#allocation29]  }
 0x262   : > { %p7700_p3 = scmp.ne.s32.totalorder %s1160_s11, %s7699_s28  ;;  %s7703_s9 = sshll.u32 %s8014_s30, 4  ;;  %s7704_s9 = int_to_ptr.vmem [resolvable:$false] %s7703_s9 }
 0x263   : > { %s7705_s13 = scalar_lea.vmem %s7704_s9, 32  ;;  %p7706_p8 = scmp.lt.s32.totalorder %s1160_s11, %s7704_s9 }
 0x264   : > { %p7701_p6 = pnand %p7700_p3, %p9731_p0  ;;  %p7707_p11 = scmp.lt.s32.totalorder %s7705_s13, %s7699_s28 }
 0x266   : > { %p7702_p9 = pneg %p7701_p6  ;;  %p7708_p12 = por %p7707_p11, %p7706_p8 }
 0x268   : > { %p7709_p1 = pnand %p7708_p12, %p7702_p9 }
 0x26a   : > { %7712 = shalt.err (!%p7709_p1)
}
 0x26b   : > { %6841 = dma.hbm_to_vmem [thread:$0]  (%p9731_p0), %s8792_s1, 16, %s1160_s11, %s8447_s24  }
 0x26c   : > { %s1170_s14 = scalar_lea.vmem [#allocation30], %s8433_s20  ;;  %s9748_s6 = sld [smem:[#allocation74_spill]] }
 0x26d   : > { %s1177_s2 = sshll.u32 %s1170_s14, 4  ;;  %s7713_s22 = scalar_lea.hbm %s8817_s27, 512  ;;  %s8838_s2 = int_to_ptr.vmem [resolvable:$true] %s1177_s2 }
 0x26e   : > { %p7714_p5 = scmp.ne.s32.totalorder %s8817_s27, %s7713_s22  ;;  %s7717_s9 = scalar_lea.hbm %s9747_s10, 1024 }
 0x26f   : > { %p7718_p7 = scmp.lt.u32.totalorder %s8817_s27, %s9747_s10  ;;  %p7719_p2 = scmp.lt.u32.totalorder %s7717_s9, %s7713_s22 }
 0x270   : > { %p7715_p10 = pnand %p7714_p5, %p9731_p0  ;;  %p7721_p3 = scmp.lt.u32.totalorder %s7713_s22, %s8817_s27 }
 0x271   : > { %p7720_p4 = por %p7719_p2, %p7718_p7 }
 0x272   : > { %s9749_s4 = smov %s9748_s6  ;;  %s8844_s7 = scalar_lea.hbm %s9748_s6, %s8475_s0 }
 0x273   : > { %p7716_p13 = pneg %p7715_p10  ;;  %p7722_p6 = por %p7721_p3, %p7720_p4 }
 0x275   : > { %p7723_p9 = pnand %p7722_p6, %p7716_p13 }
 0x277   : > { %7726 = shalt.err (!%p7723_p9)
}
 0x278   : > { %s7727_s20 = scalar_lea.vmem %s8838_s2, 512  ;;  %s8015_s11 = smov [#allocation30]  }
 0x279   : > { %p7728_p8 = scmp.ne.s32.totalorder %s8838_s2, %s7727_s20  ;;  %s7731_s14 = sshll.u32 %s8015_s11, 4  ;;  %s7732_s14 = int_to_ptr.vmem [resolvable:$false] %s7731_s14 }
 0x27a   : > { %s7733_s8 = scalar_lea.vmem %s7732_s14, 1024  ;;  %p7734_p1 = scmp.lt.s32.totalorder %s8838_s2, %s7732_s14 }
 0x27b   : > { %p7729_p11 = pnand %p7728_p8, %p9731_p0  ;;  %p7735_p5 = scmp.lt.s32.totalorder %s7733_s8, %s7727_s20 }
 0x27d   : > { %p7730_p12 = pneg %p7729_p11  ;;  %p7736_p10 = por %p7735_p5, %p7734_p1 }
 0x27f   : > { %p7737_p7 = pnand %p7736_p10, %p7730_p12 }
 0x281   : > { %7740 = shalt.err (!%p7737_p7)
}
 0x282   : > { %6842 = dma.hbm_to_vmem [thread:$0]  (%p9731_p0), %s8817_s27, 512, %s8838_s2, %s8447_s24, %s9738_s5, %s9738_s5, %s9737_s19  }
 0x283   : > { %s1190_s23 = scalar_lea.vmem [#allocation31], %s8430_s12  ;;  %s6105_s22 = sshll.u32 %s8430_s12, 7 }
 0x284   : > { %s1197_s6 = sshll.u32 %s1190_s23, 4  ;;  %s7741_s28 = scalar_lea.hbm %s8844_s7, 16  ;;  %s1198_s6 = int_to_ptr.vmem [resolvable:$true] %s1197_s6 }
 0x285   : > { %p7742_p13 = scmp.ne.s32.totalorder %s8844_s7, %s7741_s28  ;;  %s7745_s13 = scalar_lea.hbm %s9749_s4, 32 }
 0x286   : > { %p7746_p3 = scmp.lt.u32.totalorder %s8844_s7, %s9749_s4  ;;  %p7747_p6 = scmp.lt.u32.totalorder %s7745_s13, %s7741_s28 }
 0x287   : > { %p7743_p2 = pnand %p7742_p13, %p9731_p0  ;;  %p7749_p8 = scmp.lt.u32.totalorder %s7741_s28, %s8844_s7 }
 0x288   : > { %p7748_p9 = por %p7747_p6, %p7746_p3 }
 0x289   : > { %p7744_p4 = pneg %p7743_p2 }
 0x28a   : > { %p7750_p11 = por %p7749_p8, %p7748_p9 }
 0x28c   : > { %p7751_p12 = pnand %p7750_p11, %p7744_p4 }
 0x28e   : > { %7754 = shalt.err (!%p7751_p12)
}
 0x28f   : > { %s7755_s27 = scalar_lea.vmem %s1198_s6, 16  ;;  %s8016_s2 = smov [#allocation31]  }
 0x290   : > { %p7756_p1 = scmp.ne.s32.totalorder %s1198_s6, %s7755_s27  ;;  %s7759_s11 = sshll.u32 %s8016_s2, 4  ;;  %s7760_s11 = int_to_ptr.vmem [resolvable:$false] %s7759_s11 }
 0x291   : > { %s7761_s14 = scalar_lea.vmem %s7760_s11, 32  ;;  %p7762_p7 = scmp.lt.s32.totalorder %s1198_s6, %s7760_s11 }
 0x292   : > { %p7757_p5 = pnand %p7756_p1, %p9731_p0  ;;  %p7763_p13 = scmp.lt.s32.totalorder %s7761_s14, %s7755_s27 }
 0x294   : > { %p7758_p10 = pneg %p7757_p5  ;;  %p7764_p2 = por %p7763_p13, %p7762_p7 }
 0x296   : > { %p7765_p3 = pnand %p7764_p2, %p7758_p10 }
 0x298   : > { %7768 = shalt.err (!%p7765_p3)
}
 0x299   : > { %6843 = dma.hbm_to_vmem [thread:$0]  (%p9731_p0), %s8844_s7, 16, %s1198_s6, %s8447_s24  }
 0x29a   : > { %s6225_s8 = sshll.u32 %s7981_s3, 11  ;;  %s1208_s23 = scalar_lea.vmem [#allocation32], %s6105_s22 }
 0x29b   : > { %s1215_s28 = sshll.u32 %s1208_s23, 4  ;;  %s9750_s13 = sld [smem:[#allocation75_spill]]  ;;  %s8899_s28 = int_to_ptr.vmem [resolvable:$true] %s1215_s28 }
 0x2a1   : > { %s8897_s1 = scalar_lea.hbm %s9750_s13, %s6225_s8  ;;  %s7773_s22 = scalar_lea.hbm %s9750_s13, 4096 }
 0x2a2   : > { %s7769_s20 = scalar_lea.hbm %s8897_s1, 2048  ;;  %p7774_p8 = scmp.lt.u32.totalorder %s8897_s1, %s9750_s13 }
 0x2a3   : > { %p7770_p4 = scmp.ne.s32.totalorder %s8897_s1, %s7769_s20  ;;  %p7775_p11 = scmp.lt.u32.totalorder %s7773_s22, %s7769_s20 }
 0x2a4   : > { %p7777_p1 = scmp.lt.u32.totalorder %s7769_s20, %s8897_s1 }
 0x2a5   : > { %p7771_p6 = pnand %p7770_p4, %p9731_p0  ;;  %p7776_p12 = por %p7775_p11, %p7774_p8 }
 0x2a7   : > { %p7772_p9 = pneg %p7771_p6  ;;  %p7778_p5 = por %p7777_p1, %p7776_p12 }
 0x2a9   : > { %p7779_p10 = pnand %p7778_p5, %p7772_p9 }
 0x2ab   : > { %7782 = shalt.err (!%p7779_p10)
}
 0x2ac   : > { %s7783_s11 = scalar_lea.vmem %s8899_s28, 2048  ;;  %s8017_s14 = smov [#allocation32]  }
 0x2ad   : > { %p7784_p7 = scmp.ne.s32.totalorder %s8899_s28, %s7783_s11  ;;  %s7787_s8 = sshll.u32 %s8017_s14, 4  ;;  %s7788_s8 = int_to_ptr.vmem [resolvable:$false] %s7787_s8 }
 0x2ae   : > { %s7789_s23 = scalar_lea.vmem %s7788_s8, 4096  ;;  %p7790_p3 = scmp.lt.s32.totalorder %s8899_s28, %s7788_s8 }
 0x2af   : > { %p7785_p13 = pnand %p7784_p7, %p9731_p0  ;;  %p7791_p4 = scmp.lt.s32.totalorder %s7789_s23, %s7783_s11 }
 0x2b1   : > { %p7786_p2 = pneg %p7785_p13  ;;  %p7792_p6 = por %p7791_p4, %p7790_p3 }
 0x2b3   : > { %p7793_p8 = pnand %p7792_p6, %p7786_p2 }
 0x2b5   : > { %7796 = shalt.err (!%p7793_p8)
}
 0x2b6   : > { %6844 = dma.hbm_to_vmem [thread:$0]  (%p9731_p0), %s8897_s1, 2048, %s8899_s28, %s8447_s24, %s9738_s5, %s9738_s5, %s9737_s19  }
 0x2b7   : > { %s9751_s20 = sld [smem:[#allocation76_spill]]  ;;  %s1228_s6 = scalar_lea.vmem [#allocation33], %s8430_s12 }
 0x2b8   : > { %s1235_s22 = sshll.u32 %s1228_s6, 4  ;;  %s9752_s11 = sld [smem:[#allocation77_spill]]  ;;  %s1236_s22 = int_to_ptr.vmem [resolvable:$true] %s1235_s22 }
 0x2bd   : > { %s8930_s7 = scalar_lea.hbm %s9751_s20, %s8475_s0  ;;  %s7801_s28 = scalar_lea.hbm %s9751_s20, 32 }
 0x2be   : > { %s8937_s14 = scalar_lea.hbm %s9752_s11, %s8475_s0  ;;  %s7797_s8 = scalar_lea.hbm %s8930_s7, 16 }
 0x2bf   : > { %p7798_p9 = scmp.ne.s32.totalorder %s8930_s7, %s7797_s8  ;;  %p7802_p1 = scmp.lt.u32.totalorder %s8930_s7, %s9751_s20 }
 0x2c0   : > { %p7803_p5 = scmp.lt.u32.totalorder %s7801_s28, %s7797_s8  ;;  %p7805_p7 = scmp.lt.u32.totalorder %s7797_s8, %s8930_s7 }
 0x2c1   : > { %p7799_p11 = pnand %p7798_p9, %p9731_p0 }
 0x2c2   : > { %p7804_p10 = por %p7803_p5, %p7802_p1 }
 0x2c3   : > { %p7800_p12 = pneg %p7799_p11 }
 0x2c4   : > { %p7806_p13 = por %p7805_p7, %p7804_p10 }
 0x2c6   : > { %p7807_p2 = pnand %p7806_p13, %p7800_p12 }
 0x2c8   : > { %7810 = shalt.err (!%p7807_p2)
}
 0x2c9   : > { %s7811_s30 = scalar_lea.vmem %s1236_s22, 16  ;;  %s8018_s9 = smov [#allocation33]  }
 0x2ca   : > { %p7812_p3 = scmp.ne.s32.totalorder %s1236_s22, %s7811_s30  ;;  %s7815_s6 = sshll.u32 %s8018_s9, 4  ;;  %s7816_s6 = int_to_ptr.vmem [resolvable:$false] %s7815_s6 }
 0x2cb   : > { %s7817_s27 = scalar_lea.vmem %s7816_s6, 32  ;;  %p7818_p8 = scmp.lt.s32.totalorder %s1236_s22, %s7816_s6 }
 0x2cc   : > { %p7813_p4 = pnand %p7812_p3, %p9731_p0  ;;  %p7819_p9 = scmp.lt.s32.totalorder %s7817_s27, %s7811_s30 }
 0x2ce   : > { %p7814_p6 = pneg %p7813_p4  ;;  %p7820_p11 = por %p7819_p9, %p7818_p8 }
 0x2d0   : > { %p7821_p1 = pnand %p7820_p11, %p7814_p6 }
 0x2d2   : > { %7824 = shalt.err (!%p7821_p1)
}
 0x2d3   : > { %6845 = dma.hbm_to_vmem [thread:$0]  (%p9731_p0), %s8930_s7, 16, %s1236_s22, %s8447_s24  }
 0x2d4   : > { %s1245_s2 = scalar_lea.vmem [#allocation34], %s8430_s12  ;;  %s9753_s28 = sld [smem:[#allocation78_spill]] }
 0x2d5   : > { %s1252_s8 = sshll.u32 %s1245_s2, 4  ;;  %s7825_s23 = scalar_lea.hbm %s8937_s14, 16  ;;  %s1253_s8 = int_to_ptr.vmem [resolvable:$true] %s1252_s8 }
 0x2d6   : > { %p7826_p12 = scmp.ne.s32.totalorder %s8937_s14, %s7825_s23  ;;  %s7829_s6 = scalar_lea.hbm %s9752_s11, 32 }
 0x2d7   : > { %p7830_p7 = scmp.lt.u32.totalorder %s8937_s14, %s9752_s11  ;;  %p7831_p13 = scmp.lt.u32.totalorder %s7829_s6, %s7825_s23 }
 0x2d8   : > { %p7827_p5 = pnand %p7826_p12, %p9731_p0  ;;  %p7833_p3 = scmp.lt.u32.totalorder %s7825_s23, %s8937_s14 }
 0x2d9   : > { %p7832_p2 = por %p7831_p13, %p7830_p7 }
 0x2da   : > { %s8962_s1 = scalar_lea.hbm %s9753_s28, %s8475_s0  ;;  %p7828_p10 = pneg %p7827_p5 }
 0x2db   : > { %p7834_p4 = por %p7833_p3, %p7832_p2 }
 0x2dd   : > { %p7835_p6 = pnand %p7834_p4, %p7828_p10 }
 0x2df   : > { %7838 = shalt.err (!%p7835_p6)
}
 0x2e0   : > { %s7839_s0 = scalar_lea.vmem %s1253_s8, 16  ;;  %s8019_s7 = smov [#allocation34]  }
 0x2e1   : > { %p7840_p8 = scmp.ne.s32.totalorder %s1253_s8, %s7839_s0  ;;  %s7843_s22 = sshll.u32 %s8019_s7, 4  ;;  %s7844_s22 = int_to_ptr.vmem [resolvable:$false] %s7843_s22 }
 0x2e2   : > { %s7845_s2 = scalar_lea.vmem %s7844_s22, 32  ;;  %p7846_p1 = scmp.lt.s32.totalorder %s1253_s8, %s7844_s22 }
 0x2e3   : > { %p7841_p9 = pnand %p7840_p8, %p9731_p0  ;;  %p7847_p12 = scmp.lt.s32.totalorder %s7845_s2, %s7839_s0 }
 0x2e5   : > { %p7842_p11 = pneg %p7841_p9  ;;  %p7848_p5 = por %p7847_p12, %p7846_p1 }
 0x2e7   : > { %p7849_p7 = pnand %p7848_p5, %p7842_p11 }
 0x2e9   : > { %7852 = shalt.err (!%p7849_p7)
}
 0x2ea   : > { %6846 = dma.hbm_to_vmem [thread:$0]  (%p9731_p0), %s8937_s14, 16, %s1253_s8, %s8447_s24  }
 0x2eb   : > { %s1262_s4 = scalar_lea.vmem [#allocation35], %s8430_s12  ;;  %s7853_s5 = scalar_lea.hbm %s8962_s1, 16 }
 0x2ec   : > { %s1269_s19 = sshll.u32 %s1262_s4, 4  ;;  %p7854_p10 = scmp.ne.s32.totalorder %s8962_s1, %s7853_s5  ;;  %s1270_s19 = int_to_ptr.vmem [resolvable:$true] %s1269_s19 }
 0x2ed   : > { %s7857_s9 = scalar_lea.hbm %s9753_s28, 32  ;;  %p7858_p3 = scmp.lt.u32.totalorder %s8962_s1, %s9753_s28 }
 0x2ee   : > { %p7855_p13 = pnand %p7854_p10, %p9731_p0  ;;  %p7859_p4 = scmp.lt.u32.totalorder %s7857_s9, %s7853_s5 }
 0x2ef   : > { %p7861_p8 = scmp.lt.u32.totalorder %s7853_s5, %s8962_s1 }
 0x2f0   : > { %p7856_p2 = pneg %p7855_p13  ;;  %p7860_p6 = por %p7859_p4, %p7858_p3 }
 0x2f2   : > { %p7862_p9 = por %p7861_p8, %p7860_p6 }
 0x2f4   : > { %p7863_p11 = pnand %p7862_p9, %p7856_p2 }
 0x2f6   : > { %7866 = shalt.err (!%p7863_p11)
}
 0x2f7   : > { %s7867_s12 = scalar_lea.vmem %s1270_s19, 16  ;;  %s8020_s14 = smov [#allocation35]  }
 0x2f8   : > { %p7868_p1 = scmp.ne.s32.totalorder %s1270_s19, %s7867_s12  ;;  %s7871_s8 = sshll.u32 %s8020_s14, 4  ;;  %s7872_s8 = int_to_ptr.vmem [resolvable:$false] %s7871_s8 }
 0x2f9   : > { %s7873_s0 = scalar_lea.vmem %s7872_s8, 32  ;;  %p7874_p7 = scmp.lt.s32.totalorder %s1270_s19, %s7872_s8 }
 0x2fa   : > { %p7869_p12 = pnand %p7868_p1, %p9731_p0  ;;  %p7875_p10 = scmp.lt.s32.totalorder %s7873_s0, %s7867_s12 }
 0x2fc   : > { %p7870_p5 = pneg %p7869_p12  ;;  %p7876_p13 = por %p7875_p10, %p7874_p7 }
 0x2fe   : > { %p7877_p3 = pnand %p7876_p13, %p7870_p5 }
 0x300   : > { %7880 = shalt.err (!%p7877_p3)
}
 0x301   : > { %6847 = dma.hbm_to_vmem [thread:$0]  (%p9731_p0), %s8962_s1, 16, %s1270_s19, %s8447_s24  }
 0x302 PF: > { %s9754_s7 = sld [smem:[#allocation55_spill]] }
 0x308   : > { %p9755_p2 = scmp.ne.s32.totalorder %s9754_s7, 0 }
 0x309   : > { %s9756_s22 = sld [smem:[#allocation51_spill]] (!%p9755_p2) }
 0x30a   : > { %1278 = sbr.rel (%p9755_p2) target bundleno = 8759 (0x2237), region = 132 }
 0x30f   : > { %p9757_p4 = scmp.eq.s32.totalorder (!%p9755_p2), %s9756_s22, 0 }
 0x311   : > { %7932 = dma.done.wait (%p9757_p4), [#allocation6], 256   ;;  %p9758_p6 = pmov %p9757_p4 }
 0x312   : > { %p9759_p8 = pmov %p9757_p4 }
 0x313   : > { %7934 = vsyncadd (%p9758_p6), [#allocation6], 4294967040 }
 0x314   : > { %7936 = dma.done.wait (%p9759_p8), [#allocation9], 288   ;;  %p9760_p9 = pmov %p9757_p4 }
 0x315   : > { %p9761_p11 = pmov %p9757_p4 }
 0x316   : > { %7938 = vsyncadd (%p9760_p9), [#allocation9], 4294967008 }
 0x317   : > { %7940 = dma.done.wait (%p9761_p11), [#allocation12], 5120   ;;  %p9762_p0 = pmov %p9757_p4 }
 0x319   : > { %7942 = vsyncadd (%p9762_p0), [#allocation12], 4294962176  ;;  %p9763_p1 = pmov %p9762_p0 }
 0x31a   : > { %p9764_p12 = pmov %p9762_p0 }
 0x31b   : > { %7944 = dma.done.wait (%p9763_p1), [#allocation15], 16  }
 0x31c   : > { %7946 = vsyncadd (%p9764_p12), [#allocation15], 4294967280  ;;  %s9765_s29 = sld [smem:[#allocation47_spill]]  ;;  %s9766_s24 = sld [smem:[#allocation53_spill]] }
 0x31d   : > { %s1304_s1 = sand.u32 1, %s9756_s22  }
 0x31e   : > { %s1305_s19 = scalar_lea.sflag [#allocation6], %s1304_s1 }
 0x322   : > { %s9021_s2 = sand.u32 1, %s9765_s29   ;;  %p9767_p5 = scmp.ne.s32.totalorder %s9766_s24, 0 }
 0x323   : > { %s6118_s4 = sshll.u32 %s9021_s2, 5 }
 0x324   : > { %s9024_s5 = scalar_lea.vmem [#allocation16], %s6118_s4 }
 0x325   : > { %7948 = dma.done.wait (%p9767_p5), %s1305_s19, 5328  }
 0x326   : > { %7950 = vsyncadd (%p9767_p5), %s1305_s19, 4294961968  ;;  %s6124_s23 = sshll.u32 %s9021_s2, 7  ;;  %s9032_s9 = scalar_lea.vmem [#allocation18], %s6118_s4 }
 0x327   : > { %s1349_s12 = scalar_lea.vmem [#allocation21], %s9021_s2  ;;  %s9037_s14 = scalar_lea.vmem [#allocation22], %s6118_s4 }
 0x328   : > { %s1366_s8 = scalar_lea.vmem [#allocation23], %s9021_s2  ;;  %s9040_s0 = scalar_lea.vmem [#allocation24], %s6118_s4 }
 0x329   : > { %s1383_s7 = scalar_lea.vmem [#allocation25], %s9021_s2  ;;  %s9043_s29 = scalar_lea.vmem [#allocation26], %s6118_s4 }
 0x32a   : > { %s1400_s24 = scalar_lea.vmem [#allocation27], %s9021_s2  ;;  %s9048_s30 = scalar_lea.vmem [#allocation30], %s6118_s4 }
 0x32b   : > { %s9051_s11 = scalar_lea.vmem [#allocation32], %s6124_s23  ;;  %p9768_p7 = pmov %p9762_p0 }
 0x32c   : > { %p9769_p10 = pmov %p9762_p0 }
 0x32d   : > { %7952 = dma.done.wait (%p9768_p7), [#allocation9], 1024  }
 0x32e   : > { %7954 = vsyncadd (%p9769_p10), [#allocation9], 4294966272  ;;  %p9770_p13 = pmov %p9762_p0 }
 0x32f   : > { %p9771_p3 = pmov %p9762_p0 }
 0x330   : > { %7956 = dma.done.wait (%p9770_p13), [#allocation12], 32  }
 0x331   : > { %7958 = vsyncadd (%p9771_p3), [#allocation12], 4294967264  ;;  %s9772_s19 = sld [smem:[#allocation49_spill]] }
 0x337   : > { %p6127_p2 = scmp.ne.s32.totalorder %s9772_s19, 0 }
 0x338   : > { %v1628_v0 = vld [vmem:[#allocation5] sm:$0xff] (!%p6127_p2)  ;;  %v8021_v2 = vmov (!%p6127_p2), 0   ;;  %v1629_v3 = vld [vmem:[#allocation5 + $0x8] sm:$0xff] (!%p6127_p2)  ;;  %v1669_v9 = vld [vmem:[#allocation11 + $0x90] sm:$0xff] (!%p6127_p2)  ;;  %vm1778_vm0 = vcmask (!%p6127_p2), 523264   ;;  %vm1758_vm5 = vcmask (!%p6127_p2), 261120  }
 0x339   : > { %1627 = sbr.rel (%p6127_p2) target bundleno = 1176 (0x498), region = 248  ;;  %v1667_v1 = vld [vmem:[#allocation11 + $0x80] sm:$0xff] (!%p6127_p2)  ;;  %7016 = vset.pattern.permute.xlu0 (!%p6127_p2), %v8021_v2  ;;  %v1668_v4 = vld [vmem:[#allocation11 + $0x88] sm:$0xff] (!%p6127_p2)  ;;  %v1670_v10 = vld [vmem:[#allocation11 + $0x98] sm:$0xff] (!%p6127_p2) }
 0x33a   : > { %v1651_v5 = vld [vmem:[#allocation11] sm:$0xff] (!%p6127_p2)  ;;  %v1652_v6 = vld [vmem:[#allocation11 + $0x8] sm:$0xff] (!%p6127_p2)  ;;  %1634 = vperm.xlu0 (!%p6127_p2), %7016, %v1628_v0   ;;  %v6672_v7 = vpack.c.bf16 (!%p6127_p2), %v1668_v4, %v1667_v1  ;;  %v1653_v11 = vld [vmem:[#allocation11 + $0x10] sm:$0xff] (!%p6127_p2)  ;;  %v6676_v12 = vpack.c.bf16 (!%p6127_p2), %v1670_v10, %v1669_v9  ;;  %v1630_v1 = vlaneseq (!%p6127_p2) }
 0x33b   : > { %v6674_v8 = vpack.c.bf16 (!%p6127_p2), %v1652_v6, %v1651_v5  ;;  %v1654_v13 = vld [vmem:[#allocation11 + $0x18] sm:$0xff] (!%p6127_p2)  ;;  %v1671_v14 = vld [vmem:[#allocation11 + $0xa0] sm:$0xff] (!%p6127_p2)  ;;  %v1672_v15 = vld [vmem:[#allocation11 + $0xa8] sm:$0xff] (!%p6127_p2)  ;;  %v8022_v5 = vmov (!%p6127_p2), 1.0  }
 0x33c   : > { %6673 = vmatprep.subr.bf16.mxu0 (!%p6127_p2), %v6672_v7  ;;  %v6678_v16 = vpack.c.bf16 (!%p6127_p2), %v1654_v13, %v1653_v11  ;;  %v6680_v17 = vpack.c.bf16 (!%p6127_p2), %v1672_v15, %v1671_v14  ;;  %v1655_v18 = vld [vmem:[#allocation11 + $0x20] sm:$0xff] (!%p6127_p2)  ;;  %v1656_v19 = vld [vmem:[#allocation11 + $0x28] sm:$0xff] (!%p6127_p2)  ;;  %v1673_v20 = vld [vmem:[#allocation11 + $0xb0] sm:$0xff] (!%p6127_p2)  ;;  %v1631_v2 = vand.u32 (!%p6127_p2), 127, %v1630_v1 }
 0x33d   : > { %6675 = vmatpush3.bf16.msra.mxu0 (!%p6127_p2), %v6674_v8  ;;  %v1674_v21 = vld [vmem:[#allocation11 + $0xb8] sm:$0xff] (!%p6127_p2)  ;;  %v1763_v22 = vld [vmem:[#allocation13] sm:$0xff] (!%p6127_p2)  ;;  %v1764_v23 = vld [vmem:[#allocation13 + $0x8] sm:$0xff] (!%p6127_p2)  ;;  %v6682_v25 = vpack.c.bf16 (!%p6127_p2), %v1656_v19, %v1655_v18 }
 0x33e   : > { %1637 = vperm.xlu0 (!%p6127_p2), %7016, %v1629_v3   ;;  %6677 = vmatprep.subr.bf16.mxu0 (!%p6127_p2), %v6676_v12  ;;  %v6704_v24 = vpack.c.bf16 (!%p6127_p2), %v1764_v23, %v1763_v22  ;;  %v1765_v26 = vld [vmem:[#allocation13 + $0x10] sm:$0xff] (!%p6127_p2)  ;;  %v1766_v27 = vld [vmem:[#allocation13 + $0x18] sm:$0xff] (!%p6127_p2)  ;;  %v6684_v28 = vpack.c.bf16 (!%p6127_p2), %v1674_v21, %v1673_v20  ;;  %v1675_v31 = vld [vmem:[#allocation11 + $0xc0] sm:$0xff] (!%p6127_p2)  ;;  %v1632_v3 = vadd.s32 (!%p6127_p2), 128, %v1631_v2 }
 0x33f   : > { %v1657_v29 = vld [vmem:[#allocation11 + $0x30] sm:$0xff] (!%p6127_p2)  ;;  %v1658_v30 = vld [vmem:[#allocation11 + $0x38] sm:$0xff] (!%p6127_p2)  ;;  %v6708_v32 = vpack.c.bf16 (!%p6127_p2), %v1766_v27, %v1765_v26  ;;  %v1676_v33 = vld [vmem:[#allocation11 + $0xc8] sm:$0xff] (!%p6127_p2) }
 0x340   : > { %6705 = vmatprep.subr.bf16.mxu1 %v6704_v24  ;;  %v1767_v34 = vld [vmem:[#allocation13 + $0x20] sm:$0xff]  ;;  %v1768_v35 = vld [vmem:[#allocation13 + $0x28] sm:$0xff]  ;;  %v6686_v37 = vpack.c.bf16 %v1658_v30, %v1657_v29  ;;  %v1769_v38 = vld [vmem:[#allocation13 + $0x30] sm:$0xff]  ;;  %v6688_v40 = vpack.c.bf16 %v1676_v33, %v1675_v31 }
 0x341   : > { %6679 = vmatpush3.bf16.msra.mxu0 %v6678_v16  ;;  %6707 = vmatpush3.bf16.msra.mxu1 %v6704_v24  ;;  %v6712_v36 = vpack.c.bf16 %v1768_v35, %v1767_v34  ;;  %v1770_v39 = vld [vmem:[#allocation13 + $0x38] sm:$0xff]  ;;  %v1659_v41 = vld [vmem:[#allocation11 + $0x40] sm:$0xff]  ;;  %v1660_v42 = vld [vmem:[#allocation11 + $0x48] sm:$0xff] }
 0x342   : > { %6681 = vmatprep.subr.bf16.mxu0 %v6680_v17  ;;  %6709 = vmatprep.subr.bf16.mxu1 %v6708_v32  ;;  %v1761_v43 = vld [vmem:[#allocation8] sm:$0xff]  ;;  %v1678_v45 = vld [vmem:[#allocation11 + $0xd8] sm:$0xff]  ;;  %v6716_v46 = vpack.c.bf16 %v1770_v39, %v1769_v38  ;;  %v6690_v47 = vpack.c.bf16 %v1660_v42, %v1659_v41  ;;  %v1679_v51 = vld [vmem:[#allocation11 + $0xe0] sm:$0xff] }
 0x343   : > { %v1677_v44 = vld [vmem:[#allocation11 + $0xd0] sm:$0xff]  ;;  %6408 = vmatprep.mubr.msk.f32.mxu1 %vm1778_vm0, %v1761_v43  ;;  %v1662_v50 = vld [vmem:[#allocation11 + $0x58] sm:$0xff]  ;;  %v1680_v52 = vld [vmem:[#allocation11 + $0xe8] sm:$0xff] }
 0x344   : > { %v6692_v48 = vpack.c.bf16 %v1678_v45, %v1677_v44  ;;  %v1661_v49 = vld [vmem:[#allocation11 + $0x50] sm:$0xff]  ;;  %v6696_v54 = vpack.c.bf16 %v1680_v52, %v1679_v51  ;;  %v1663_v55 = vld [vmem:[#allocation11 + $0x60] sm:$0xff]  ;;  %v1664_v56 = vld [vmem:[#allocation11 + $0x68] sm:$0xff] }
 0x345   : > { %6683 = vmatpush3.bf16.msra.mxu0 %v6682_v25  ;;  %6711 = vmatpush3.bf16.msra.mxu1 %v6708_v32  ;;  %v6694_v53 = vpack.c.bf16 %v1662_v50, %v1661_v49  ;;  %v1681_v57 = vld [vmem:[#allocation11 + $0xf0] sm:$0xff]  ;;  %v1682_v58 = vld [vmem:[#allocation11 + $0xf8] sm:$0xff]  ;;  %v6698_v60 = vpack.c.bf16 %v1664_v56, %v1663_v55  ;;  %v6136_v7 = vld [vmem:[#allocation14] ss:$0 sm:$0xff] }
 0x346   : > { %6685 = vmatprep.subr.bf16.mxu0 %v6684_v28  ;;  %6713 = vmatprep.subr.bf16.mxu1 %v6712_v36  ;;  %v1762_v59 = vld [vmem:[#allocation8 + $0x8] sm:$0xff]  ;;  %v6700_v61 = vpack.c.bf16 %v1682_v58, %v1681_v57 }
 0x347   : > { %v1665_v62 = vld [vmem:[#allocation11 + $0x70] sm:$0xff]  ;;  %v1666_v63 = vld [vmem:[#allocation11 + $0x78] sm:$0xff] }
 0x348   : > { %v6702_v0 = vpack.c.bf16 %v1666_v63, %v1665_v62 }
 0x349   : > { %6687 = vmatpush3.bf16.msra.mxu0 %v6686_v37  ;;  %6715 = vmatpush3.bf16.msra.mxu1 %v6712_v36 }
 0x34a   : > { %6689 = vmatprep.subr.bf16.mxu0 %v6688_v40  ;;  %6717 = vmatprep.subr.bf16.mxu1 %v6716_v46 }
 0x34d   : > { %6691 = vmatpush3.bf16.msra.mxu0 %v6690_v47  ;;  %6719 = vmatpush3.bf16.msra.mxu1 %v6716_v46 }
 0x34e   : > { %6693 = vmatprep.subr.bf16.mxu0 %v6692_v48 }
 0x350   : > { %6409 = vmatmul.mubr.msk.f32.vlgmr.msra.gmra.mrb[0].mxu1 %vm1778_vm0, %v1762_v59 }
 0x351   : > { %6695 = vmatpush3.bf16.msra.mxu0 %v6694_v53 }
 0x352   : > { %6697 = vmatprep.subr.bf16.mxu0 %v6696_v54 }
 0x355   : > { %6699 = vmatpush3.bf16.msra.mxu0 %v6698_v60 }
 0x356   : > { %6701 = vmatprep.subr.bf16.mxu0 %v6700_v61 }
 0x359   : > { %6703 = vmatpush3.bf16.msra.mxu0 %v6702_v0 }
 0x3b9   : > { %v1635_v4 = vpop.permute.xlu0 %1634 }
 0x3ba   : > { %vm1639_vm1 = vcmp.eq.s32.totalorder %v1631_v2, %v1635_v4  ;;  %vm1640_vm2 = vcmp.eq.s32.totalorder %v1632_v3, %v1635_v4 }
 0x3bb   : > { %6132 = vmatprep.mubr.msk.f32.mxu0 %vm1640_vm2, %v8022_v5 }
 0x3bc   : > { %6133 = vmatmul.mubr.msk.f32.vlgmr.msra.gmra.mrb[0].mxu0 %vm1639_vm1, %v8022_v5 }
 0x3bd   : > { %v1638_v6 = vpop.permute.xlu0 %1637 }
 0x3be   : > { %vm1641_vm3 = vcmp.eq.s32.totalorder %v1631_v2, %v1638_v6  ;;  %vm1642_vm4 = vcmp.eq.s32.totalorder %v1632_v3, %v1638_v6 }
 0x3bf   : > { %6134 = vmatprep.mubr.msk.f32.mxu0 %vm1642_vm4, %v8022_v5 }
 0x3c0   : > { %6135 = vmatmul.mubr.msk.f32.gmra.mrb[2].mxu0 %vm1641_vm3, %v8022_v5 }
 0x423   : > { %v6410_v8 = vpop.f32.mrb[0].mxu1 }
 0x424   : > { %v1857_v9 = vadd.f32 %v6410_v8, %v6136_v7  ;;  %v1851_v10 = vpop.f32.mrb[1].mxu1 }
 0x425   : > { %v1852_v11 = vadd.f32 %v6136_v7, %v1851_v10 }
 0x426   : > { %1861 = vst.msk [vmem:[#allocation3 + $0x8] sm:$0xff] %vm1758_vm5, %v1857_v9 }
 0x427   : > { %1860 = vst.msk [vmem:[#allocation3] sm:$0xff] %vm1758_vm5, %v1852_v11 }
 0x48f   : > { %v6258_v12 = vpop.f32.mrb[0].mxu0 }
 0x490   : > { %v6259_v13 = vpop.f32.mrb[1].mxu0 }
 0x491   : > { %v6260_v14 = vadd.f32 %v6259_v13, %v6258_v12 }
 0x493   : > { %1759 = vst.msk [vmem:[#allocation2] sm:$0xff] %vm1758_vm5, %v6260_v14  ;;  %v6261_v15 = vpop.f32.mrb[2].mxu0 }
 0x494   : > { %v6262_v16 = vpop.f32.mrb[3].mxu0 }
 0x495   : > { %v6263_v17 = vadd.f32 %v6262_v16, %v6261_v15 }
 0x497   : > { %1760 = vst.msk [vmem:[#allocation2 + $0x8] sm:$0xff] %vm1758_vm5, %v6263_v17 }
 0x498 PF: > { %v1864_v18 = vld [vmem:[%s9024_s5] sm:$0xff]  ;;  %v1865_v19 = vld [vmem:[%s9024_s5 + $0x8] sm:$0xff]  ;;  %v1866_v20 = vld [vmem:[%s9024_s5 + $0x10] sm:$0xff]  ;;  %vm1875_vm6 = vcmask 261120   ;;  %v8023_v26 = vmov 0.0   ;;  %vm8024_vm7 = vmmov 0   ;;  %v1957_v34 = vlaneseq }
 0x499   : > { %v6720_v21 = vpack.c.bf16 %v1865_v19, %v1864_v18  ;;  %v1867_v22 = vld [vmem:[%s9024_s5 + $0x18] sm:$0xff]  ;;  %6432 = vmatprep.subr.mxu0 %v8023_v26  ;;  %6434 = vmatprep.mubr.msk.f32.mxu0 %vm8024_vm7, %v8023_v26  ;;  %s9773_s22 = scalar_lea.vmem [#allocation17], %s9021_s2  ;;  %s8025_s4 = smov 96   ;;  %vm1970_vm8 = vcmask 64512   ;;  %vm2646_vm10 = vcmask 130112   ;;  %vm2991_vm11 = vcmask 195712  }
 0x49a   : > { %v9071_v23 = vld [vmem:[#allocation2] sm:$0xff]  ;;  %v6724_v24 = vpack.c.bf16 %v1867_v22, %v1866_v20  ;;  %v9107_v35 = vshrl.u32 %v1957_v34, 7  ;;  %v1960_v36 = vand.u32 127, %v1957_v34  ;;  %s8026_s5 = smov 64   ;;  %s8027_s23 = smov 88   ;;  %vm3336_vm12 = vcmask 261312  }
 0x49b   : > { %6419 = vmatprep.mubr.msk.f32.mxu1 %vm1875_vm6, %v9071_v23  ;;  %6721 = vmatprep.subr.bf16.mxu1 %v6720_v21  ;;  %v6139_v27 = vld [vmem:[%s9773_s22] ss:$0 sm:$0xff]  ;;  %s8028_s19 = smov 120   ;;  %s8029_s22 = smov 56  }
 0x49c   : > { %6723 = vmatpush3.bf16.msra.mxu1 %v6720_v21  ;;  %vm9110_vm9 = vcmp.gt.s32.totalorder %v1960_v36, %v9107_v35  ;;  %s8031_s13 = smov 112   ;;  %s8033_s27 = smov 72  }
 0x49d   : > { %6725 = vmatprep.subr.bf16.mxu1 %v6724_v24  ;;  %s8034_s6 = smov 104   ;;  %s8036_s10 = smov 8  }
 0x49e   : > { %v9075_v25 = vld [vmem:[#allocation2 + $0x8] sm:$0xff]  ;;  %s8037_s1 = smov 16  }
 0x4a0   : > { %6727 = vmatpush3.bf16.msra.mxu1 %v6724_v24 }
 0x4a1   : > { %6422 = vmatprep.subr.mxu1 %v8023_v26 }
 0x4a3   : > { %6420 = vmatmul.mubr.msk.f32.vlgmr.msra.gmra.mrb[0].mxu1 %vm1875_vm6, %v9075_v25 }
 0x4a4   : > { %6424 = vmatprep.mubr.msk.f32.mxu1 %vm8024_vm7, %v8023_v26 }
 0x576   : > { %v6421_v28 = vpop.f32.mrb[0].mxu1 }
 0x577   : > { %v1948_v29 = vpop.f32.mrb[1].mxu1  ;;  %v9091_v31 = vadd.f32 %v6421_v28, %v6139_v27 }
 0x578   : > { %v9087_v30 = vadd.f32 %v6139_v27, %v1948_v29 }
 0x57a   : > { %1968 = vrot.lane.b32.xlu0 %v9087_v30, %s8025_s4 }
 0x57e   : > { %2046 = vrot.lane.b32.xlu0 %v9091_v31, %s8025_s4 }
 0x5ec   : > { %v1969_v32 = vpop.permute.xlu0 %1968 }
 0x5ed   : > { %6423 = vmatpush3.xpose.msk.msra.mxu1 %vm1970_vm8, %v1969_v32 }
 0x5ee   : > { %6427 = vmatprep.subr.mxu1 %v8023_v26 }
 0x5f0   : > { %6425 = vmatmul.mubr.msk.f32.vlgmr.msra.gmra.mrb[2].mxu1 %vm1970_vm8, %v9087_v30  ;;  %v2047_v33 = vpop.permute.xlu0 %2046 }
 0x5f1   : > { %6428 = vmatpush3.xpose.msk.msra.mxu1 %vm1970_vm8, %v2047_v33  ;;  %6429 = vmatprep.mubr.msk.f32.mxu1 %vm8024_vm7, %v8023_v26 }
 0x5f2   : > { %6437 = vmatprep.subr.mxu1 %v8023_v26 }
 0x5f4   : > { %6430 = vmatmul.mubr.msk.f32.vlgmr.msra.gmra.mrb[4].mxu1 %vm1970_vm8, %v9091_v31 }
 0x5f5   : > { %6439 = vmatprep.mubr.msk.f32.mxu1 %vm8024_vm7, %v8023_v26 }
 0x6c3   : > { %v2041_v37 = vpop.f32.mrb[2].mxu1 }
 0x6c4   : > { %v2122_v39 = vmul.f32 0.35355338, %v2041_v37  ;;  %v6426_v40 = vpop.f32.mrb[3].mxu1 }
 0x6c6   : > { %v2126_v41 = vsel %vm9110_vm9, -inf, %v2122_v39 }
 0x6c7   : > { %v2118_v42 = vpop.f32.mrb[4].mxu1  ;;  %v2128_v43 = vsel %vm1970_vm8, %v2126_v41, -inf }
 0x6c8   : > { %v2123_v44 = vmul.f32 0.35355338, %v2118_v42  ;;  %2129 = vmax.xlane.f32.xlu1 %v2128_v43  ;;  %v6431_v45 = vpop.f32.mrb[5].mxu1 }
 0x6ca   : > { %v2127_v46 = vsel %vm9110_vm9, -inf, %v2123_v44 }
 0x6cb   : > { %v2131_v47 = vsel %vm1970_vm8, %v2127_v46, -inf }
 0x6cc   : > { %2132 = vmax.xlane.f32.xlu1 %v2131_v47 }
 0x6dd   : > { %2150 = vrot.lane.b32.xlu1 %v9087_v30, %s8026_s5 }
 0x6e1   : > { %2226 = vrot.lane.b32.xlu1 %v9091_v31, %s8026_s5  ;;  %s8030_s5 = smov 80  }
 0x6e5   : > { %2306 = vrot.lane.b32.xlu1 %v9087_v30, %s8027_s23 }
 0x6e9   : > { %2384 = vrot.lane.b32.xlu1 %v9091_v31, %s8027_s23 }
 0x755   : > { %v2130_v48 = vpop.xlane.xlu1 %2129 }
 0x756   : > { %v2134_v49 = vsub.f32 %v2126_v41, %v2130_v48 }
 0x758   : > { %v2136_v50 = vmul.f32 1.442695, %v2134_v49 }
 0x759   : > { %v2133_v51 = vpop.xlane.xlu1 %2132 }
 0x75a   : > { %7017 = vpow2.f32 %v2136_v50  ;;  %v2135_v52 = vsub.f32 %v2127_v46, %v2133_v51 }
 0x75c   : > { %v2138_v53 = vmul.f32 1.442695, %v2135_v52 }
 0x75d   : > { %v2151_v54 = vpop.permute.xlu1 %2150 }
 0x75e   : > { %7019 = vpow2.f32 %v2138_v53  ;;  %6433 = vmatpush3.msra.mxu0 %v2151_v54 }
 0x75f   : > { %6442 = vmatprep.subr.mxu0 %v8023_v26 }
 0x761   : > { %v2227_v55 = vpop.permute.xlu1 %2226 }
 0x762   : > { %6438 = vmatpush3.msra.mxu1 %v2227_v55 }
 0x763   : > { %6447 = vmatprep.subr.mxu1 %v8023_v26 }
 0x764   : > { %v7018_v56 = vpop.eup %7017 }
 0x765   : > { %v2140_v57 = vsel %vm1970_vm8, %v7018_v56, 0.0  ;;  %v2307_v60 = vpop.permute.xlu1 %2306 }
 0x766   : > { %2141 = vadd.xlane.f32.xlu0 %v2140_v57 }
 0x768   : > { %v7020_v58 = vpop.eup %7019 }
 0x769   : > { %v2143_v59 = vsel %vm1970_vm8, %v7020_v58, 0.0  ;;  %v2385_v61 = vpop.permute.xlu1 %2384 }
 0x76a   : > { %2144 = vadd.xlane.f32.xlu1 %v2143_v59 }
 0x77b   : > { %2382 = vrot.lane.b32.xlu1 %v9091_v31, %s8028_s19 }
 0x77c   : > { %2304 = vrot.lane.b32.xlu0 %v9087_v30, %s8028_s19 }
 0x7f3   : > { %v2142_v62 = vpop.xlane.xlu0 %2141 }
 0x7f4   : > { %7021 = vrcp.f32 %v2142_v62 }
 0x7f7   : > { %v2145_v63 = vpop.xlane.xlu1 %2144  ;;  %v2305_v4 = vpop.permute.xlu0 %2304 }
 0x7f8   : > { %7023 = vrcp.f32 %v2145_v63 }
 0x7fb   : > { %v2383_v5 = vpop.permute.xlu1 %2382 }
 0x7fe   : > { %v7022_v0 = vpop.eup %7021 }
 0x7ff   : > { %v2148_v1 = vmul.f32 %v7022_v0, %v7018_v56 }
 0x801   : > { %6435 = vmatmul.mubr.msk.f32.vlgmr.msra.gmra.mrb[0].mxu0 %vm1970_vm8, %v2148_v1 }
 0x802   : > { %v7024_v2 = vpop.eup %7023  ;;  %6443 = vmatpush3.xpose.msk.msra.mxu0 %vm1970_vm8, %v2307_v60  ;;  %6444 = vmatprep.mubr.msk.f32.mxu0 %vm8024_vm7, %v8023_v26 }
 0x803   : > { %v2149_v3 = vmul.f32 %v7024_v2, %v7020_v58  ;;  %6452 = vmatprep.subr.mxu0 %v8023_v26 }
 0x805   : > { %6440 = vmatmul.mubr.msk.f32.vlgmr.msra.gmra.mrb[6].mxu1 %vm1970_vm8, %v2149_v3  ;;  %6445 = vmatmul.mubr.msk.f32.vlgmr.msra.gmra.mrb[2].mxu0 %vm1970_vm8, %v2305_v4 }
 0x806   : > { %6448 = vmatpush3.xpose.msk.msra.mxu1 %vm1970_vm8, %v2385_v61  ;;  %6449 = vmatprep.mubr.msk.f32.mxu1 %vm8024_vm7, %v8023_v26 }
 0x807   : > { %6457 = vmatprep.subr.mxu1 %v8023_v26  ;;  %6454 = vmatprep.mubr.msk.f32.mxu0 %vm8024_vm7, %v8023_v26 }
 0x809   : > { %6450 = vmatmul.mubr.msk.f32.vlgmr.msra.gmra.mrb[8].mxu1 %vm1970_vm8, %v2383_v5 }
 0x80a   : > { %6459 = vmatprep.mubr.msk.f32.mxu1 %vm8024_vm7, %v8023_v26 }
 0x8d4   : > { %v2222_v6 = vpop.f32.mrb[0].mxu0 }
 0x8d5   : > { %2302 = vst.msk [vmem:[#allocation4] sm:$0xff] %vm1970_vm8, %v2222_v6  ;;  %v6436_v7 = vpop.f32.mrb[1].mxu0 }
 0x8d8   : > { %v2298_v8 = vpop.f32.mrb[6].mxu1  ;;  %v2378_v9 = vpop.f32.mrb[2].mxu0 }
 0x8d9   : > { %2303 = vst.msk [vmem:[#allocation4 + $0x8] sm:$0xff] %vm1970_vm8, %v2298_v8  ;;  %v2460_v10 = vmul.f32 0.35355338, %v2378_v9  ;;  %v6441_v11 = vpop.f32.mrb[7].mxu1  ;;  %v6446_v12 = vpop.f32.mrb[3].mxu0 }
 0x8db   : > { %v2462_v13 = vsel %vm9110_vm9, -inf, %v2460_v10 }
 0x8dc   : > { %v2456_v14 = vpop.f32.mrb[8].mxu1  ;;  %v2464_v15 = vsel %vm1970_vm8, %v2462_v13, -inf }
 0x8dd   : > { %v2461_v16 = vmul.f32 0.35355338, %v2456_v14  ;;  %v6451_v17 = vpop.f32.mrb[9].mxu1  ;;  %2465 = vmax.xlane.f32.xlu1 %v2464_v15 }
 0x8df   : > { %v2463_v18 = vsel %vm9110_vm9, -inf, %v2461_v16 }
 0x8e0   : > { %v2467_v19 = vsel %vm1970_vm8, %v2463_v18, -inf }
 0x8e1   : > { %2468 = vmax.xlane.f32.xlu0 %v2467_v19 }
 0x8ee   : > { %2486 = vrot.lane.b32.xlu1 %v9087_v30, %s8029_s22 }
 0x8f2   : > { %2651 = vrot.lane.b32.xlu1 %v9087_v30, %s8030_s5 }
 0x8f6   : > { %2729 = vrot.lane.b32.xlu1 %v9091_v31, %s8030_s5 }
 0x8f7   : > { %2562 = vrot.lane.b32.xlu0 %v9091_v31, %s8029_s22  ;;  %s8032_s22 = smov 48  }
 0x8fb   : > { %2649 = vrot.lane.b32.xlu0 %v9087_v30, %s8031_s13 }
 0x96a   : > { %v2466_v20 = vpop.xlane.xlu1 %2465 }
 0x96b   : > { %v2470_v21 = vsub.f32 %v2462_v13, %v2466_v20 }
 0x96d   : > { %v2472_v22 = vmul.f32 1.442695, %v2470_v21 }
 0x96e   : > { %v2487_v24 = vpop.permute.xlu1 %2486  ;;  %v2469_v27 = vpop.xlane.xlu0 %2468 }
 0x96f   : > { %7025 = vpow2.f32 %v2472_v22  ;;  %v2471_v28 = vsub.f32 %v2463_v18, %v2469_v27  ;;  %6453 = vmatpush3.msra.mxu0 %v2487_v24 }
 0x970   : > { %6462 = vmatprep.subr.mxu0 %v8023_v26 }
 0x971   : > { %v2474_v29 = vmul.f32 1.442695, %v2471_v28 }
 0x972   : > { %v2563_v32 = vpop.permute.xlu0 %2562  ;;  %v2652_v39 = vpop.permute.xlu1 %2651 }
 0x973   : > { %7027 = vpow2.f32 %v2474_v29  ;;  %6458 = vmatpush3.msra.mxu1 %v2563_v32 }
 0x974   : > { %6467 = vmatprep.subr.mxu1 %v8023_v26 }
 0x976   : > { %v2730_v40 = vpop.permute.xlu1 %2729  ;;  %v2650_v47 = vpop.permute.xlu0 %2649 }
 0x979   : > { %v7026_v33 = vpop.eup %7025 }
 0x97a   : > { %v2476_v34 = vsel %vm1970_vm8, %v7026_v33, 0.0 }
 0x97b   : > { %2477 = vadd.xlane.f32.xlu1 %v2476_v34 }
 0x97d   : > { %v7028_v36 = vpop.eup %7027 }
 0x97e   : > { %v2479_v37 = vsel %vm1970_vm8, %v7028_v36, 0.0 }
 0x97f   : > { %2480 = vadd.xlane.f32.xlu1 %v2479_v37 }
 0x990   : > { %2727 = vrot.lane.b32.xlu1 %v9091_v31, %s8031_s13 }
 0xa08   : > { %v2478_v41 = vpop.xlane.xlu1 %2477 }
 0xa09   : > { %7029 = vrcp.f32 %v2478_v41 }
 0xa0c   : > { %v2481_v42 = vpop.xlane.xlu1 %2480 }
 0xa0d   : > { %7031 = vrcp.f32 %v2481_v42 }
 0xa10   : > { %v2728_v48 = vpop.permute.xlu1 %2727 }
 0xa13   : > { %v7030_v43 = vpop.eup %7029 }
 0xa14   : > { %v2484_v44 = vmul.f32 %v7030_v43, %v7026_v33 }
 0xa16   : > { %6455 = vmatmul.mubr.msk.f32.vlgmr.msra.gmra.mrb[4].mxu0 %vm1970_vm8, %v2484_v44 }
 0xa17   : > { %v7032_v45 = vpop.eup %7031  ;;  %6463 = vmatpush3.xpose.msk.msra.mxu0 %vm1970_vm8, %v2652_v39  ;;  %6464 = vmatprep.mubr.msk.f32.mxu0 %vm8024_vm7, %v8023_v26 }
 0xa18   : > { %v2485_v46 = vmul.f32 %v7032_v45, %v7028_v36  ;;  %6472 = vmatprep.subr.mxu0 %v8023_v26 }
 0xa1a   : > { %6460 = vmatmul.mubr.msk.f32.vlgmr.msra.gmra.mrb[10].mxu1 %vm1970_vm8, %v2485_v46  ;;  %6465 = vmatmul.mubr.msk.f32.vlgmr.msra.gmra.mrb[6].mxu0 %vm1970_vm8, %v2650_v47 }
 0xa1b   : > { %6468 = vmatpush3.xpose.msk.msra.mxu1 %vm1970_vm8, %v2730_v40  ;;  %6469 = vmatprep.mubr.msk.f32.mxu1 %vm8024_vm7, %v8023_v26 }
 0xa1c   : > { %6477 = vmatprep.subr.mxu1 %v8023_v26  ;;  %6474 = vmatprep.mubr.msk.f32.mxu0 %vm8024_vm7, %v8023_v26 }
 0xa1e   : > { %6470 = vmatmul.mubr.msk.f32.vlgmr.msra.gmra.mrb[12].mxu1 %vm1970_vm8, %v2728_v48 }
 0xa1f   : > { %6479 = vmatprep.mubr.msk.f32.mxu1 %vm8024_vm7, %v8023_v26 }
 0xae9   : > { %v9188_v49 = vpop.f32.mrb[4].mxu0 }
 0xaea   : > { %v6456_v50 = vpop.f32.mrb[5].mxu0 }
 0xaed   : > { %v9190_v51 = vpop.f32.mrb[10].mxu1  ;;  %v2723_v52 = vpop.f32.mrb[6].mxu0 }
 0xaee   : > { %v2805_v53 = vmul.f32 0.35355338, %v2723_v52  ;;  %v6461_v54 = vpop.f32.mrb[11].mxu1  ;;  %v6466_v55 = vpop.f32.mrb[7].mxu0 }
 0xaf0   : > { %v2807_v56 = vsel %vm9110_vm9, -inf, %v2805_v53 }
 0xaf1   : > { %v2801_v57 = vpop.f32.mrb[12].mxu1  ;;  %v2809_v58 = vsel %vm1970_vm8, %v2807_v56, -inf }
 0xaf2   : > { %v2806_v59 = vmul.f32 0.35355338, %v2801_v57  ;;  %v6471_v60 = vpop.f32.mrb[13].mxu1  ;;  %2810 = vmax.xlane.f32.xlu0 %v2809_v58 }
 0xaf4   : > { %v2808_v61 = vsel %vm9110_vm9, -inf, %v2806_v59 }
 0xaf5   : > { %v2812_v62 = vsel %vm1970_vm8, %v2808_v61, -inf }
 0xaf6   : > { %2813 = vmax.xlane.f32.xlu1 %v2812_v62  ;;  %v1963_v62 = vld [vmem:[%s9032_s9 + $0x8] sm:$0xff] }
 0xb07   : > { %2831 = vrot.lane.b32.xlu1 %v9087_v30, %s8032_s22 }
 0xb08   : > { %2907 = vrot.lane.b32.xlu0 %v9091_v31, %s8032_s22  ;;  %s8035_s22 = smov 40  }
 0xb0b   : > { %2996 = vrot.lane.b32.xlu1 %v9087_v30, %s8033_s27 }
 0xb0f   : > { %3074 = vrot.lane.b32.xlu1 %v9091_v31, %s8033_s27 }
 0xb13   : > { %3072 = vrot.lane.b32.xlu1 %v9091_v31, %s8034_s6 }
 0xb7f   : > { %v2811_v63 = vpop.xlane.xlu0 %2810 }
 0xb80   : > { %v2815_v0 = vsub.f32 %v2807_v56, %v2811_v63 }
 0xb82   : > { %v2817_v1 = vmul.f32 1.442695, %v2815_v0  ;;  %v1964_v0 = vld [vmem:[%s9032_s9 + $0x10] sm:$0xff] }
 0xb83   : > { %v2814_v2 = vpop.xlane.xlu1 %2813  ;;  %v2908_v3 = vpop.permute.xlu0 %2907 }
 0xb84   : > { %7033 = vpow2.f32 %v2817_v1  ;;  %v2816_v4 = vsub.f32 %v2808_v61, %v2814_v2  ;;  %6478 = vmatpush3.msra.mxu1 %v2908_v3  ;;  %v1962_v61 = vld [vmem:[%s9032_s9] sm:$0xff]  ;;  %v1965_v1 = vld [vmem:[%s9032_s9 + $0x18] sm:$0xff]  ;;  %s9776_s9 = scalar_lea.vmem [#allocation19], %s9021_s2 }
 0xb85   : > { %6487 = vmatprep.subr.mxu1 %v8023_v26  ;;  %v6728_v63 = vpack.c.bf16 %v1963_v62, %v1962_v61  ;;  %v6732_v2 = vpack.c.bf16 %v1965_v1, %v1964_v0  ;;  %v6174_v62 = vld [vmem:[%s1383_s7] ss:$0 sm:$0xff] }
 0xb86   : > { %v2819_v5 = vmul.f32 1.442695, %v2816_v4 }
 0xb87   : > { %v2832_v6 = vpop.permute.xlu1 %2831 }
 0xb88   : > { %7035 = vpow2.f32 %v2819_v5  ;;  %6473 = vmatpush3.msra.mxu0 %v2832_v6 }
 0xb89   : > { %6482 = vmatprep.subr.mxu0 %v8023_v26 }
 0xb8b   : > { %v2997_v13 = vpop.permute.xlu1 %2996 }
 0xb8e   : > { %v7034_v7 = vpop.eup %7033 }
 0xb8f   : > { %v2821_v8 = vsel %vm1970_vm8, %v7034_v7, 0.0  ;;  %v3075_v17 = vpop.permute.xlu1 %3074 }
 0xb90   : > { %2822 = vadd.xlane.f32.xlu0 %v2821_v8 }
 0xb92   : > { %v7036_v9 = vpop.eup %7035 }
 0xb93   : > { %v2824_v10 = vsel %vm1970_vm8, %v7036_v9, 0.0  ;;  %v3073_v20 = vpop.permute.xlu1 %3072 }
 0xb94   : > { %2825 = vadd.xlane.f32.xlu0 %v2824_v10 }
 0xbaa   : > { %2994 = vrot.lane.b32.xlu0 %v9087_v30, %s8034_s6 }
 0xc1d   : > { %v2823_v11 = vpop.xlane.xlu0 %2822 }
 0xc1e   : > { %7037 = vrcp.f32 %v2823_v11  ;;  %v6166_v11 = vld [vmem:[%s9776_s9] ss:$0 sm:$0xff] }
 0xc21   : > { %v2826_v12 = vpop.xlane.xlu0 %2825 }
 0xc22   : > { %7039 = vrcp.f32 %v2826_v12 }
 0xc25   : > { %v2995_v19 = vpop.permute.xlu0 %2994 }
 0xc28   : > { %v7038_v14 = vpop.eup %7037 }
 0xc29   : > { %v2829_v15 = vmul.f32 %v7038_v14, %v7034_v7 }
 0xc2b   : > { %6475 = vmatmul.mubr.msk.f32.vlgmr.msra.gmra.mrb[8].mxu0 %vm1970_vm8, %v2829_v15 }
 0xc2c   : > { %v7040_v16 = vpop.eup %7039  ;;  %6483 = vmatpush3.xpose.msk.msra.mxu0 %vm1970_vm8, %v2997_v13  ;;  %6484 = vmatprep.mubr.msk.f32.mxu0 %vm8024_vm7, %v8023_v26 }
 0xc2d   : > { %v2830_v18 = vmul.f32 %v7040_v16, %v7036_v9  ;;  %6492 = vmatprep.subr.mxu0 %v8023_v26 }
 0xc2f   : > { %6480 = vmatmul.mubr.msk.f32.vlgmr.msra.gmra.mrb[14].mxu1 %vm1970_vm8, %v2830_v18  ;;  %6485 = vmatmul.mubr.msk.f32.vlgmr.msra.gmra.mrb[10].mxu0 %vm1970_vm8, %v2995_v19 }
 0xc30   : > { %6488 = vmatpush3.xpose.msk.msra.mxu1 %vm1970_vm8, %v3075_v17  ;;  %6489 = vmatprep.mubr.msk.f32.mxu1 %vm8024_vm7, %v8023_v26 }
 0xc31   : > { %6497 = vmatprep.subr.mxu1 %v8023_v26  ;;  %6494 = vmatprep.mubr.msk.f32.mxu0 %vm8024_vm7, %v8023_v26 }
 0xc33   : > { %6490 = vmatmul.mubr.msk.f32.vlgmr.msra.gmra.mrb[16].mxu1 %vm1970_vm8, %v3073_v20 }
 0xc34   : > { %6499 = vmatprep.mubr.msk.f32.mxu1 %vm8024_vm7, %v8023_v26 }
 0xcfe   : > { %v2903_v21 = vpop.f32.mrb[8].mxu0 }
 0xcff   : > { %v6476_v22 = vpop.f32.mrb[9].mxu0 }
 0xd02   : > { %v2979_v24 = vpop.f32.mrb[14].mxu1  ;;  %v3068_v27 = vpop.f32.mrb[10].mxu0 }
 0xd03   : > { %v3150_v28 = vmul.f32 0.35355338, %v3068_v27  ;;  %v6481_v29 = vpop.f32.mrb[15].mxu1  ;;  %v6486_v32 = vpop.f32.mrb[11].mxu0 }
 0xd05   : > { %v3152_v33 = vsel %vm9110_vm9, -inf, %v3150_v28 }
 0xd06   : > { %v3146_v34 = vpop.f32.mrb[16].mxu1  ;;  %v3154_v36 = vsel %vm1970_vm8, %v3152_v33, -inf }
 0xd07   : > { %v3151_v37 = vmul.f32 0.35355338, %v3146_v34  ;;  %v6491_v39 = vpop.f32.mrb[17].mxu1  ;;  %3155 = vmax.xlane.f32.xlu0 %v3154_v36  ;;  %v3570_v34 = vld [vmem:[%s9040_s0 + $0x8] sm:$0xff] }
 0xd08   : > { %v3476_v39 = vld [vmem:[%s9037_s14 + $0x8] sm:$0xff] }
 0xd09   : > { %v3153_v40 = vsel %vm9110_vm9, -inf, %v3151_v37  ;;  %v3475_v37 = vld [vmem:[%s9037_s14] sm:$0xff] }
 0xd0a   : > { %v3157_v41 = vsel %vm1970_vm8, %v3153_v40, -inf }
 0xd0b   : > { %3158 = vmax.xlane.f32.xlu1 %v3157_v41  ;;  %v6736_v41 = vpack.c.bf16 %v3476_v39, %v3475_v37 }
 0xd1c   : > { %3176 = vrot.lane.b32.xlu1 %v9087_v30, %s8035_s22 }
 0xd20   : > { %2640 = vrot.lane.b32.xlu1 %v9188_v49, %s8036_s10 }
 0xd24   : > { %2642 = vrot.lane.b32.xlu1 %v9190_v51, %s8036_s10 }
 0xd28   : > { %2987 = vrot.lane.b32.xlu1 %v2979_v24, %s8037_s1 }
 0xd94   : > { %v3156_v42 = vpop.xlane.xlu0 %3155 }
 0xd95   : > { %v3160_v38 = vsub.f32 %v3152_v33, %v3156_v42  ;;  %v3569_v33 = vld [vmem:[%s9040_s0] sm:$0xff]  ;;  %v3572_v42 = vld [vmem:[%s9040_s0 + $0x18] sm:$0xff] }
 0xd96   : > { %v6744_v36 = vpack.c.bf16 %v3570_v34, %v3569_v33 }
 0xd97   : > { %v3162_v43 = vmul.f32 1.442695, %v3160_v38 }
 0xd98   : > { %v3159_v44 = vpop.xlane.xlu1 %3158 }
 0xd99   : > { %7041 = vpow2.f32 %v3162_v43  ;;  %v3161_v45 = vsub.f32 %v3153_v40, %v3159_v44  ;;  %v3571_v40 = vld [vmem:[%s9040_s0 + $0x10] sm:$0xff] }
 0xd9a   : > { %v6748_v38 = vpack.c.bf16 %v3572_v42, %v3571_v40  ;;  %v3567_v43 = vld [vmem:[#allocation3] sm:$0xff] }
 0xd9b   : > { %v3164_v46 = vmul.f32 1.442695, %v3161_v45  ;;  %v3477_v44 = vld [vmem:[%s9037_s14 + $0x10] sm:$0xff]  ;;  %v3478_v45 = vld [vmem:[%s9037_s14 + $0x18] sm:$0xff]  ;;  %s9777_s14 = scalar_lea.vmem [#allocation20], %s9021_s2 }
 0xd9c   : > { %v3177_v47 = vpop.permute.xlu1 %3176 }
 0xd9d   : > { %7043 = vpow2.f32 %v3164_v46  ;;  %6493 = vmatpush3.msra.mxu0 %v3177_v47  ;;  %v6740_v46 = vpack.c.bf16 %v3478_v45, %v3477_v44  ;;  %v3568_v47 = vld [vmem:[#allocation3 + $0x8] sm:$0xff] }
 0xd9e   : > { %6745 = vmatprep.subr.bf16.mxu0 %v6744_v36 }
 0xda0   : > { %v2641_v30 = vpop.permute.xlu1 %2640 }
 0xda1   : > { %2647 = vst.msk [vmem:[#allocation4] sm:$0xff] %vm2646_vm10, %v2641_v30 }
 0xda3   : > { %v7042_v48 = vpop.eup %7041 }
 0xda4   : > { %v2643_v49 = vpop.permute.xlu1 %2642  ;;  %v3166_v50 = vsel %vm1970_vm8, %v7042_v48, 0.0 }
 0xda5   : > { %2648 = vst.msk [vmem:[#allocation4 + $0x8] sm:$0xff] %vm2646_vm10, %v2643_v49  ;;  %3167 = vadd.xlane.f32.xlu0 %v3166_v50 }
 0xda7   : > { %v7044_v51 = vpop.eup %7043 }
 0xda8   : > { %v2988_v52 = vpop.permute.xlu1 %2987  ;;  %v3169_v53 = vsel %vm1970_vm8, %v7044_v51, 0.0 }
 0xda9   : > { %2993 = vst.msk [vmem:[#allocation4 + $0x8] sm:$0xff] %vm2991_vm11, %v2988_v52  ;;  %3170 = vadd.xlane.f32.xlu0 %v3169_v53 }
 0xdbf   : > { %3252 = vrot.lane.b32.xlu0 %v9091_v31, %s8035_s22  ;;  %s8038_s22 = smov 24  }
 0xdc3   : > { %2985 = vrot.lane.b32.xlu0 %v2903_v21, %s8037_s1 }
 0xe32   : > { %v3168_v54 = vpop.xlane.xlu0 %3167 }
 0xe33   : > { %7045 = vrcp.f32 %v3168_v54  ;;  %v6169_v54 = vld [vmem:[%s9777_s14] ss:$0 sm:$0xff] }
 0xe36   : > { %v3171_v55 = vpop.xlane.xlu0 %3170 }
 0xe37   : > { %7047 = vrcp.f32 %v3171_v55 }
 0xe3a   : > { %v3253_v56 = vpop.permute.xlu0 %3252 }
 0xe3b   : > { %6498 = vmatpush3.msra.mxu1 %v3253_v56  ;;  %v6170_v56 = vld [vmem:[%s1349_s12] ss:$0 sm:$0xff]  ;;  %s9788_s12 = sld [smem:[#allocation49_spill]] }
 0xe3c   : > { %6729 = vmatprep.subr.bf16.mxu1 %v6728_v63 }
 0xe3d   : > { %v7046_v57 = vpop.eup %7045 }
 0xe3e   : > { %v3174_v58 = vmul.f32 %v7046_v57, %v7042_v48  ;;  %v2986_v59 = vpop.permute.xlu0 %2985 }
 0xe3f   : > { %2992 = vst.msk [vmem:[#allocation4] sm:$0xff] %vm2991_vm11, %v2986_v59 }
 0xe40   : > { %6495 = vmatmul.mubr.msk.f32.vlgmr.msra.gmra.mrb[12].mxu0 %vm1970_vm8, %v3174_v58 }
 0xe41   : > { %v7048_v31 = vpop.eup %7047  ;;  %6747 = vmatpush3.bf16.msra.mxu0 %v6744_v36  ;;  %6532 = vmatprep.mubr.msk.f32.mxu0 %vm1875_vm6, %v3567_v43  ;;  %p6212_p4 = scmp.ne.s32.totalorder %s9788_s12, 1 }
 0xe42   : > { %v3175_v60 = vmul.f32 %v7048_v31, %v7044_v51  ;;  %6749 = vmatprep.subr.bf16.mxu0 %v6748_v38 }
 0xe44   : > { %6500 = vmatmul.mubr.msk.f32.vlgmr.msra.gmra.mrb[18].mxu1 %vm1970_vm8, %v3175_v60 }
 0xe45   : > { %6731 = vmatpush3.bf16.msra.mxu1 %v6728_v63  ;;  %6751 = vmatpush3.bf16.msra.mxu0 %v6748_v38 }
 0xe46   : > { %6733 = vmatprep.subr.bf16.mxu1 %v6732_v2  ;;  %6545 = vmatprep.subr.mxu0 %v8023_v26 }
 0xe48   : > { %6533 = vmatmul.mubr.msk.f32.vlgmr.msra.gmra.mrb[14].mxu0 %vm1875_vm6, %v3568_v47 }
 0xe49   : > { %6735 = vmatpush3.bf16.msra.mxu1 %v6732_v2  ;;  %6547 = vmatprep.mubr.msk.f32.mxu0 %vm8024_vm7, %v8023_v26 }
 0xe4a   : > { %6737 = vmatprep.subr.bf16.mxu1 %v6736_v41 }
 0xf13   : > { %v3248_v3 = vpop.f32.mrb[12].mxu0 }
 0xf14   : > { %3330 = vrot.lane.b32.xlu0 %v3248_v3, %s8038_s22  ;;  %v6496_v4 = vpop.f32.mrb[13].mxu0  ;;  %v6171_v3 = vld [vmem:[%s1366_s8] ss:$0 sm:$0xff] }
 0xf17   : > { %v3324_v5 = vpop.f32.mrb[18].mxu1 }
 0xf18   : > { %3332 = vrot.lane.b32.xlu1 %v3324_v5, %s8038_s22  ;;  %v6501_v6 = vpop.f32.mrb[19].mxu1 }
 0xf1b   : > { %v6534_v63 = vpop.f32.mrb[14].mxu0 }
 0xf1c   : > { %v9300_v0 = vadd.f32 %v6534_v63, %v6174_v62  ;;  %v3652_v1 = vpop.f32.mrb[15].mxu0 }
 0xf1d   : > { %v9302_v2 = vadd.f32 %v6174_v62, %v3652_v1 }
 0xf86   : > { %v3331_v7 = vpop.permute.xlu0 %3330 }
 0xf87   : > { %3337 = vst.msk [vmem:[#allocation4] sm:$0xff] %vm3336_vm12, %v3331_v7 }
 0xf8a   : > { %v3333_v8 = vpop.permute.xlu1 %3332 }
 0xf8b   : > { %3338 = vst.msk [vmem:[#allocation4 + $0x8] sm:$0xff] %vm3336_vm12, %v3333_v8  ;;  %v8039_v8 = vmov 1966171168  }
 0xf8e   : > { %v3339_v9 = vld [vmem:[#allocation4] sm:$0xff] }
 0xf8f   : > { %6510 = vmatprep.mubr.msk.f32.mxu1 %vm1875_vm6, %v3339_v9  ;;  %v3665_v9 = vunpack.c.l.s4 %v8039_v8 }
 0xf92   : > { %v3340_v10 = vld [vmem:[#allocation4 + $0x8] sm:$0xff] }
 0xf93   : > { %6511 = vmatmul.mubr.msk.f32.vlgmr.msra.gmra.mrb[20].mxu1 %vm1875_vm6, %v3340_v10  ;;  %v3661_v10 = vld [vmem:[#allocation10] sm:$0x3] }
 0xf94   : > { %6739 = vmatpush3.bf16.msra.mxu1 %v6736_v41  ;;  %vm3662_vm13 = vcmp.ne.s32.totalorder %v3661_v10, 0 }
 0xf95   : > { %6741 = vmatprep.subr.bf16.mxu1 %v6740_v46 }
 0xf98   : > { %6743 = vmatpush3.bf16.msra.mxu1 %v6740_v46 }
 0xf99   : > { %6535 = vmatprep.subr.mxu1 %v8023_v26 }
0x1066   : > { %v6512_v12 = vpop.f32.mrb[20].mxu1 }
0x1067   : > { %v3425_v13 = vadd.f32 %v6512_v12, %v6166_v11  ;;  %v3419_v14 = vpop.f32.mrb[21].mxu1 }
0x1068   : > { %v3420_v15 = vadd.f32 %v6166_v11, %v3419_v14  ;;  %v3666_v11 = vunpack.c.0.s8 %v3665_v9 }
0x1069   : > { %v3429_v16 = vadd.f32 %v3425_v13, %v9075_v25  ;;  %v8040_v13 = vmov 0  }
0x106a   : > { %v3428_v17 = vadd.f32 %v3420_v15, %v9071_v23  ;;  %v3669_v12 = vsub.s32 %v3666_v11, %v9107_v35  ;;  %v3663_v14 = vsel %vm3662_vm13, 1, %v8040_v13 }
0x106b   : > { %v3433_v18 = vsel %vm1875_vm6, %v3429_v16, 0.0 }
0x106c   : > { %3434 = vadd.xlane.f32.xlu1 %v3433_v18  ;;  %v3430_v19 = vsel %vm1875_vm6, %v3428_v17, 0.0  ;;  %v3670_v15 = vrot.slane %v3663_v14, %v3669_v12 }
0x106d   : > { %3431 = vadd.xlane.f32.xlu0 %v3430_v19  ;;  %v9326_v19 = vsub.s32 0, %v9107_v35 }
0x10f9   : > { %v3435_v20 = vpop.xlane.xlu1 %3434 }
0x10fa   : > { %v3438_v21 = vmul.f32 0.03125, %v3435_v20  ;;  %v3432_v22 = vpop.xlane.xlu0 %3431 }
0x10fb   : > { %v3437_v24 = vmul.f32 0.03125, %v3432_v22 }
0x10fc   : > { %v3440_v27 = vsub.f32 %v3429_v16, %v3438_v21  ;;  %v3678_v16 = vrot.slane %v3670_v15, %v3669_v12 }
0x10fd   : > { %v3439_v28 = vsub.f32 %v3428_v17, %v3437_v24  ;;  %v3671_v17 = vcombine.high %v3670_v15, %v3670_v15 }
0x10fe   : > { %v3442_v29 = vmul.f32 %v3440_v27, %v3440_v27  ;;  %vm3686_vm14 = vcmp.ne.s32.totalorder %v3678_v16, 0 }
0x10ff   : > { %v3441_v25 = vmul.f32 %v3439_v28, %v3439_v28  ;;  %v3685_v18 = vrot.slane %v3671_v17, %v3669_v12  ;;  %v3847_v20 = vsel %vm3686_vm14, 1, %v8040_v13 }
0x1100   : > { %v3446_v32 = vsel %vm1875_vm6, %v3442_v29, 0.0  ;;  %v3852_v21 = vrot.slane %v3847_v20, %v9326_v19 }
0x1101   : > { %v3443_v23 = vsel %vm1875_vm6, %v3441_v25, 0.0  ;;  %vm3687_vm15 = vcmp.ne.s32.totalorder %v3685_v18, 0 }
0x1102   : > { %3444 = vadd.xlane.f32.xlu0 %v3443_v23  ;;  %v3848_v22 = vsel %vm3687_vm15, 1, %v8040_v13  ;;  %vm9329_vm0 = vcmp.eq.s32.totalorder %v3852_v21, 1 }
0x1106   : > { %3447 = vadd.xlane.f32.xlu0 %v3446_v32 }
0x118f   : > { %v3445_v30 = vpop.xlane.xlu0 %3444 }
0x1190   : > { %v3449_v48 = vmul.f32 0.03125, %v3445_v30 }
0x1192   : > { %v3451_v49 = vadd.f32 1e-05, %v3449_v48 }
0x1193   : > { %v3448_v50 = vpop.xlane.xlu0 %3447 }
0x1194   : > { %7049 = vrsqrt.f32 %v3451_v49  ;;  %v3450_v51 = vmul.f32 0.03125, %v3448_v50 }
0x1196   : > { %v3452_v52 = vadd.f32 1e-05, %v3450_v51 }
0x1198   : > { %7051 = vrsqrt.f32 %v3452_v52 }
0x119e   : > { %v7050_v53 = vpop.eup %7049 }
0x119f   : > { %v3455_v55 = vmul.f32 %v7050_v53, %v3439_v28  ;;  %v3856_v28 = vrot.slane %v3848_v22, %v9326_v19 }
0x11a1   : > { %v3464_v57 = vmul.f32 %v6169_v54, %v3455_v55  ;;  %vm9337_vm1 = vcmp.eq.s32.totalorder %v3856_v28, 1 }
0x11a2   : > { %v7052_v58 = vpop.eup %7051 }
0x11a3   : > { %v3456_v59 = vmul.f32 %v7052_v58, %v3440_v27  ;;  %v9288_v31 = vadd.f32 %v6170_v56, %v3464_v57 }
0x11a5   : > { %v3465_v60 = vmul.f32 %v6169_v54, %v3456_v59  ;;  %6521 = vmatprep.mubr.msk.f32.mxu1 %vm1875_vm6, %v9288_v31 }
0x11a7   : > { %v9292_v61 = vadd.f32 %v6170_v56, %v3465_v60 }
0x11a9   : > { %6522 = vmatmul.mubr.msk.f32.vlgmr.msra.gmra.mrb[22].mxu1 %vm1875_vm6, %v9292_v61 }
0x11aa   : > { %6537 = vmatprep.mubr.msk.f32.mxu1 %vm8024_vm7, %v8023_v26  ;;  %6536 = vmatpush3.xpose.msk.msra.mxu1 %vm1970_vm8, %v9302_v2 }
0x11ab   : > { %6540 = vmatprep.subr.mxu1 %v8023_v26 }
0x127c   : > { %v6523_v4 = vpop.f32.mrb[22].mxu1 }
0x127d   : > { %v3558_v5 = vpop.f32.mrb[23].mxu1  ;;  %v9317_v7 = vadd.f32 %v6523_v4, %v6171_v3 }
0x127e   : > { %v9309_v6 = vadd.f32 %v6171_v3, %v3558_v5 }
0x1280   : > { %6538 = vmatmul.mubr.msk.f32.vlgmr.msra.gmra.mrb[24].mxu1 %vm1970_vm8, %v9309_v6 }
0x1281   : > { %6541 = vmatpush3.xpose.msk.msra.mxu1 %vm1970_vm8, %v9300_v0  ;;  %6542 = vmatprep.mubr.msk.f32.mxu1 %vm8024_vm7, %v8023_v26 }
0x1282   : > { %6550 = vmatprep.subr.mxu1 %v8023_v26 }
0x1284   : > { %6543 = vmatmul.mubr.msk.f32.vlgmr.msra.gmra.mrb[26].mxu1 %vm1970_vm8, %v9317_v7 }
0x1285   : > { %6552 = vmatprep.mubr.msk.f32.mxu1 %vm8024_vm7, %v8023_v26 }
0x1353   : > { %v3765_v24 = vpop.f32.mrb[24].mxu1 }
0x1354   : > { %v3845_v25 = vmul.f32 0.35355338, %v3765_v24  ;;  %v6539_v23 = vpop.f32.mrb[25].mxu1 }
0x1356   : > { %v3859_v29 = vsel %vm9329_vm0, -inf, %v3845_v25 }
0x1357   : > { %v3841_v32 = vpop.f32.mrb[26].mxu1  ;;  %v3861_v33 = vsel %vm1970_vm8, %v3859_v29, -inf }
0x1358   : > { %v3846_v36 = vmul.f32 0.35355338, %v3841_v32  ;;  %3862 = vmax.xlane.f32.xlu1 %v3861_v33  ;;  %v6544_v37 = vpop.f32.mrb[27].mxu1 }
0x135a   : > { %v3860_v39 = vsel %vm9337_vm1, -inf, %v3846_v36 }
0x135b   : > { %v3864_v40 = vsel %vm1970_vm8, %v3860_v39, -inf }
0x135c   : > { %3865 = vmax.xlane.f32.xlu0 %v3864_v40 }
0x1369   : > { %3883 = vrot.lane.b32.xlu1 %v9302_v2, %s8025_s4 }
0x136d   : > { %4039 = vrot.lane.b32.xlu1 %v9302_v2, %s8028_s19 }
0x1371   : > { %4117 = vrot.lane.b32.xlu1 %v9300_v0, %s8028_s19 }
0x1372   : > { %3959 = vrot.lane.b32.xlu0 %v9300_v0, %s8025_s4 }
0x13e5   : > { %v3863_v41 = vpop.xlane.xlu1 %3862 }
0x13e6   : > { %v3867_v42 = vsub.f32 %v3859_v29, %v3863_v41 }
0x13e8   : > { %v3869_v38 = vmul.f32 1.442695, %v3867_v42 }
0x13e9   : > { %v3884_v43 = vpop.permute.xlu1 %3883  ;;  %v3866_v44 = vpop.xlane.xlu0 %3865 }
0x13ea   : > { %7053 = vpow2.f32 %v3869_v38  ;;  %v3868_v45 = vsub.f32 %v3860_v39, %v3866_v44  ;;  %6546 = vmatpush3.msra.mxu0 %v3884_v43 }
0x13eb   : > { %6555 = vmatprep.subr.mxu0 %v8023_v26 }
0x13ec   : > { %v3871_v46 = vmul.f32 1.442695, %v3868_v45 }
0x13ed   : > { %v3960_v47 = vpop.permute.xlu0 %3959  ;;  %v4040_v51 = vpop.permute.xlu1 %4039 }
0x13ee   : > { %7055 = vpow2.f32 %v3871_v46  ;;  %6551 = vmatpush3.msra.mxu1 %v3960_v47 }
0x13ef   : > { %6560 = vmatprep.subr.mxu1 %v8023_v26 }
0x13f1   : > { %v4118_v52 = vpop.permute.xlu1 %4117 }
0x13f4   : > { %v7054_v30 = vpop.eup %7053 }
0x13f5   : > { %v3873_v48 = vsel %vm1970_vm8, %v7054_v30, 0.0 }
0x13f6   : > { %3874 = vadd.xlane.f32.xlu1 %v3873_v48 }
0x13f8   : > { %v7056_v49 = vpop.eup %7055 }
0x13f9   : > { %v3876_v50 = vsel %vm1970_vm8, %v7056_v49, 0.0 }
0x13fa   : > { %3877 = vadd.xlane.f32.xlu0 %v3876_v50 }
0x1407   : > { %4115 = vrot.lane.b32.xlu1 %v9317_v7, %s8028_s19 }
0x1410   : > { %4037 = vrot.lane.b32.xlu0 %v9309_v6, %s8028_s19 }
0x1483   : > { %v3875_v53 = vpop.xlane.xlu1 %3874 }
0x1484   : > { %7057 = vrcp.f32 %v3875_v53 }
0x1487   : > { %v3878_v54 = vpop.xlane.xlu0 %3877  ;;  %v4116_v60 = vpop.permute.xlu1 %4115 }
0x1488   : > { %7059 = vrcp.f32 %v3878_v54 }
0x148b   : > { %v4038_v59 = vpop.permute.xlu0 %4037 }
0x148e   : > { %v7058_v55 = vpop.eup %7057 }
0x148f   : > { %v3881_v56 = vmul.f32 %v7058_v55, %v7054_v30 }
0x1491   : > { %6548 = vmatmul.mubr.msk.f32.vlgmr.msra.gmra.mrb[16].mxu0 %vm1970_vm8, %v3881_v56 }
0x1492   : > { %v7060_v57 = vpop.eup %7059  ;;  %6556 = vmatpush3.xpose.msk.msra.mxu0 %vm1970_vm8, %v4040_v51  ;;  %6557 = vmatprep.mubr.msk.f32.mxu0 %vm8024_vm7, %v8023_v26 }
0x1493   : > { %v3882_v58 = vmul.f32 %v7060_v57, %v7056_v49  ;;  %6565 = vmatprep.subr.mxu0 %v8023_v26 }
0x1495   : > { %6553 = vmatmul.mubr.msk.f32.vlgmr.msra.gmra.mrb[28].mxu1 %vm1970_vm8, %v3882_v58  ;;  %6558 = vmatmul.mubr.msk.f32.vlgmr.msra.gmra.mrb[18].mxu0 %vm1970_vm8, %v4038_v59 }
0x1496   : > { %6561 = vmatpush3.xpose.msk.msra.mxu1 %vm1970_vm8, %v4118_v52  ;;  %6562 = vmatprep.mubr.msk.f32.mxu1 %vm8024_vm7, %v8023_v26 }
0x1497   : > { %6570 = vmatprep.subr.mxu1 %v8023_v26  ;;  %6567 = vmatprep.mubr.msk.f32.mxu0 %vm8024_vm7, %v8023_v26 }
0x1499   : > { %6563 = vmatmul.mubr.msk.f32.vlgmr.msra.gmra.mrb[30].mxu1 %vm1970_vm8, %v4116_v60 }
0x149a   : > { %6572 = vmatprep.mubr.msk.f32.mxu1 %vm8024_vm7, %v8023_v26 }
0x1564   : > { %v3955_v62 = vpop.f32.mrb[16].mxu0 }
0x1565   : > { %4035 = vst.msk [vmem:[#allocation4] sm:$0xff] %vm1970_vm8, %v3955_v62  ;;  %v6549_v63 = vpop.f32.mrb[17].mxu0 }
0x1568   : > { %v4031_v1 = vpop.f32.mrb[28].mxu1  ;;  %v4111_v3 = vpop.f32.mrb[18].mxu0 }
0x1569   : > { %4036 = vst.msk [vmem:[#allocation4 + $0x8] sm:$0xff] %vm1970_vm8, %v4031_v1  ;;  %v4193_v4 = vmul.f32 0.35355338, %v4111_v3  ;;  %v6554_v5 = vpop.f32.mrb[29].mxu1  ;;  %v6559_v8 = vpop.f32.mrb[19].mxu0 }
0x156b   : > { %v4195_v9 = vsel %vm9329_vm0, -inf, %v4193_v4 }
0x156c   : > { %v4189_v10 = vpop.f32.mrb[30].mxu1  ;;  %v4197_v11 = vsel %vm1970_vm8, %v4195_v9, -inf }
0x156d   : > { %v4194_v12 = vmul.f32 0.35355338, %v4189_v10  ;;  %4198 = vmax.xlane.f32.xlu0 %v4197_v11  ;;  %v6564_v13 = vpop.f32.mrb[31].mxu1 }
0x156f   : > { %v4196_v14 = vsel %vm9337_vm1, -inf, %v4194_v12 }
0x1570   : > { %v4200_v15 = vsel %vm1970_vm8, %v4196_v14, -inf }
0x1571   : > { %4201 = vmax.xlane.f32.xlu1 %v4200_v15 }
0x1582   : > { %4219 = vrot.lane.b32.xlu1 %v9302_v2, %s8027_s23 }
0x1583   : > { %4295 = vrot.lane.b32.xlu0 %v9300_v0, %s8027_s23 }
0x1586   : > { %4383 = vrot.lane.b32.xlu1 %v9302_v2, %s8031_s13 }
0x158a   : > { %4461 = vrot.lane.b32.xlu1 %v9300_v0, %s8031_s13 }
0x158e   : > { %4459 = vrot.lane.b32.xlu1 %v9317_v7, %s8031_s13 }
0x15fa   : > { %v4199_v16 = vpop.xlane.xlu0 %4198 }
0x15fb   : > { %v4203_v17 = vsub.f32 %v4195_v9, %v4199_v16 }
0x15fd   : > { %v4205_v18 = vmul.f32 1.442695, %v4203_v17 }
0x15fe   : > { %v4296_v20 = vpop.permute.xlu0 %4295  ;;  %v4202_v21 = vpop.xlane.xlu1 %4201 }
0x15ff   : > { %7061 = vpow2.f32 %v4205_v18  ;;  %v4204_v22 = vsub.f32 %v4196_v14, %v4202_v21  ;;  %6571 = vmatpush3.msra.mxu1 %v4296_v20 }
0x1600   : > { %6580 = vmatprep.subr.mxu1 %v8023_v26 }
0x1601   : > { %v4207_v24 = vmul.f32 1.442695, %v4204_v22 }
0x1602   : > { %v4220_v28 = vpop.permute.xlu1 %4219 }
0x1603   : > { %7063 = vpow2.f32 %v4207_v24  ;;  %6566 = vmatpush3.msra.mxu0 %v4220_v28 }
0x1604   : > { %6575 = vmatprep.subr.mxu0 %v8023_v26 }
0x1606   : > { %v4384_v37 = vpop.permute.xlu1 %4383 }
0x1609   : > { %v7062_v25 = vpop.eup %7061 }
0x160a   : > { %v4209_v23 = vsel %vm1970_vm8, %v7062_v25, 0.0  ;;  %v4462_v42 = vpop.permute.xlu1 %4461 }
0x160b   : > { %4210 = vadd.xlane.f32.xlu0 %v4209_v23 }
0x160d   : > { %v7064_v29 = vpop.eup %7063 }
0x160e   : > { %v4212_v32 = vsel %vm1970_vm8, %v7064_v29, 0.0  ;;  %v4460_v44 = vpop.permute.xlu1 %4459 }
0x160f   : > { %4213 = vadd.xlane.f32.xlu0 %v4212_v32 }
0x1625   : > { %4381 = vrot.lane.b32.xlu0 %v9309_v6, %s8031_s13  ;;  %s9783_s13 = scalar_lea.vmem [#allocation29], %s9021_s2 }
0x1698   : > { %v4211_v33 = vpop.xlane.xlu0 %4210 }
0x1699   : > { %7065 = vrcp.f32 %v4211_v33 }
0x169c   : > { %v4214_v36 = vpop.xlane.xlu0 %4213 }
0x169d   : > { %7067 = vrcp.f32 %v4214_v36 }
0x16a0   : > { %v4382_v43 = vpop.permute.xlu0 %4381 }
0x16a3   : > { %v7066_v39 = vpop.eup %7065 }
0x16a4   : > { %v4217_v40 = vmul.f32 %v7066_v39, %v7062_v25 }
0x16a6   : > { %6568 = vmatmul.mubr.msk.f32.vlgmr.msra.gmra.mrb[20].mxu0 %vm1970_vm8, %v4217_v40 }
0x16a7   : > { %v7068_v41 = vpop.eup %7067  ;;  %6576 = vmatpush3.xpose.msk.msra.mxu0 %vm1970_vm8, %v4384_v37  ;;  %6577 = vmatprep.mubr.msk.f32.mxu0 %vm8024_vm7, %v8023_v26 }
0x16a8   : > { %v4218_v38 = vmul.f32 %v7068_v41, %v7064_v29  ;;  %6585 = vmatprep.subr.mxu0 %v8023_v26 }
0x16aa   : > { %6573 = vmatmul.mubr.msk.f32.vlgmr.msra.gmra.mrb[32].mxu1 %vm1970_vm8, %v4218_v38  ;;  %6578 = vmatmul.mubr.msk.f32.vlgmr.msra.gmra.mrb[22].mxu0 %vm1970_vm8, %v4382_v43 }
0x16ab   : > { %6581 = vmatpush3.xpose.msk.msra.mxu1 %vm1970_vm8, %v4462_v42  ;;  %6582 = vmatprep.mubr.msk.f32.mxu1 %vm8024_vm7, %v8023_v26 }
0x16ac   : > { %6590 = vmatprep.subr.mxu1 %v8023_v26  ;;  %6587 = vmatprep.mubr.msk.f32.mxu0 %vm8024_vm7, %v8023_v26 }
0x16ae   : > { %6583 = vmatmul.mubr.msk.f32.vlgmr.msra.gmra.mrb[34].mxu1 %vm1970_vm8, %v4460_v44 }
0x16af   : > { %6592 = vmatprep.mubr.msk.f32.mxu1 %vm8024_vm7, %v8023_v26 }
0x1779   : > { %v9416_v45 = vpop.f32.mrb[20].mxu0 }
0x177a   : > { %v6569_v46 = vpop.f32.mrb[21].mxu0 }
0x177d   : > { %v9418_v47 = vpop.f32.mrb[32].mxu1  ;;  %v4455_v30 = vpop.f32.mrb[22].mxu0 }
0x177e   : > { %v4537_v48 = vmul.f32 0.35355338, %v4455_v30  ;;  %v6574_v49 = vpop.f32.mrb[33].mxu1  ;;  %v6579_v50 = vpop.f32.mrb[23].mxu0 }
0x1780   : > { %v4539_v51 = vsel %vm9329_vm0, -inf, %v4537_v48 }
0x1781   : > { %v4533_v52 = vpop.f32.mrb[34].mxu1  ;;  %v4541_v53 = vsel %vm1970_vm8, %v4539_v51, -inf }
0x1782   : > { %v4538_v54 = vmul.f32 0.35355338, %v4533_v52  ;;  %4542 = vmax.xlane.f32.xlu0 %v4541_v53  ;;  %v6584_v55 = vpop.f32.mrb[35].mxu1 }
0x1784   : > { %v4540_v56 = vsel %vm9337_vm1, -inf, %v4538_v54 }
0x1785   : > { %v4544_v57 = vsel %vm1970_vm8, %v4540_v56, -inf }
0x1786   : > { %4545 = vmax.xlane.f32.xlu1 %v4544_v57  ;;  %v3689_v57 = vld [vmem:[%s9043_s29 + $0x8] sm:$0xff] }
0x1797   : > { %4563 = vrot.lane.b32.xlu1 %v9302_v2, %s8030_s5 }
0x1798   : > { %4639 = vrot.lane.b32.xlu0 %v9300_v0, %s8030_s5 }
0x179b   : > { %4727 = vrot.lane.b32.xlu1 %v9302_v2, %s8034_s6 }
0x179f   : > { %4805 = vrot.lane.b32.xlu1 %v9300_v0, %s8034_s6 }
0x17a3   : > { %4803 = vrot.lane.b32.xlu1 %v9317_v7, %s8034_s6 }
0x180f   : > { %v4543_v58 = vpop.xlane.xlu0 %4542 }
0x1810   : > { %v4547_v59 = vsub.f32 %v4539_v51, %v4543_v58 }
0x1812   : > { %v4549_v60 = vmul.f32 1.442695, %v4547_v59  ;;  %v3690_v59 = vld [vmem:[%s9043_s29 + $0x10] sm:$0xff] }
0x1813   : > { %v4640_v62 = vpop.permute.xlu0 %4639  ;;  %v4546_v63 = vpop.xlane.xlu1 %4545 }
0x1814   : > { %7069 = vpow2.f32 %v4549_v60  ;;  %v4548_v1 = vsub.f32 %v4540_v56, %v4546_v63  ;;  %6591 = vmatpush3.msra.mxu1 %v4640_v62  ;;  %v3688_v56 = vld [vmem:[%s9043_s29] sm:$0xff]  ;;  %v3691_v60 = vld [vmem:[%s9043_s29 + $0x18] sm:$0xff] }
0x1815   : > { %6600 = vmatprep.subr.mxu1 %v8023_v26  ;;  %v6752_v58 = vpack.c.bf16 %v3689_v57, %v3688_v56  ;;  %v6756_v62 = vpack.c.bf16 %v3691_v60, %v3690_v59  ;;  %v5319_v56 = vld [vmem:[%s9051_s11 + $0x28] sm:$0xff]  ;;  %v5321_v59 = vld [vmem:[%s9051_s11 + $0x38] sm:$0xff] }
0x1816   : > { %v4551_v3 = vmul.f32 1.442695, %v4548_v1 }
0x1817   : > { %v4564_v4 = vpop.permute.xlu1 %4563 }
0x1818   : > { %7071 = vpow2.f32 %v4551_v3  ;;  %6586 = vmatpush3.msra.mxu0 %v4564_v4 }
0x1819   : > { %6595 = vmatprep.subr.mxu0 %v8023_v26 }
0x181b   : > { %v4728_v12 = vpop.permute.xlu1 %4727 }
0x181e   : > { %v7070_v5 = vpop.eup %7069 }
0x181f   : > { %v4553_v8 = vsel %vm1970_vm8, %v7070_v5, 0.0  ;;  %v4806_v16 = vpop.permute.xlu1 %4805 }
0x1820   : > { %4554 = vadd.xlane.f32.xlu0 %v4553_v8 }
0x1822   : > { %v7072_v7 = vpop.eup %7071 }
0x1823   : > { %v4556_v9 = vsel %vm1970_vm8, %v7072_v7, 0.0  ;;  %v4804_v18 = vpop.permute.xlu1 %4803 }
0x1824   : > { %4557 = vadd.xlane.f32.xlu0 %v4556_v9 }
0x183a   : > { %4725 = vrot.lane.b32.xlu0 %v9309_v6, %s8034_s6  ;;  %s9786_s6 = scalar_lea.vmem [#allocation34], %s9021_s2 }
0x18ad   : > { %v4555_v10 = vpop.xlane.xlu0 %4554 }
0x18ae   : > { %7073 = vrcp.f32 %v4555_v10  ;;  %v6201_v10 = vld [vmem:[%s1400_s24] ss:$0 sm:$0xff] }
0x18b1   : > { %v4558_v11 = vpop.xlane.xlu0 %4557 }
0x18b2   : > { %7075 = vrcp.f32 %v4558_v11 }
0x18b5   : > { %v4726_v6 = vpop.permute.xlu0 %4725 }
0x18b8   : > { %v7074_v13 = vpop.eup %7073 }
0x18b9   : > { %v4561_v14 = vmul.f32 %v7074_v13, %v7070_v5 }
0x18bb   : > { %6588 = vmatmul.mubr.msk.f32.vlgmr.msra.gmra.mrb[24].mxu0 %vm1970_vm8, %v4561_v14 }
0x18bc   : > { %v7076_v15 = vpop.eup %7075  ;;  %6596 = vmatpush3.xpose.msk.msra.mxu0 %vm1970_vm8, %v4728_v12  ;;  %6597 = vmatprep.mubr.msk.f32.mxu0 %vm8024_vm7, %v8023_v26 }
0x18bd   : > { %v4562_v17 = vmul.f32 %v7076_v15, %v7072_v7  ;;  %6605 = vmatprep.subr.mxu0 %v8023_v26 }
0x18bf   : > { %6593 = vmatmul.mubr.msk.f32.vlgmr.msra.gmra.mrb[36].mxu1 %vm1970_vm8, %v4562_v17  ;;  %6598 = vmatmul.mubr.msk.f32.vlgmr.msra.gmra.mrb[26].mxu0 %vm1970_vm8, %v4726_v6 }
0x18c0   : > { %6601 = vmatpush3.xpose.msk.msra.mxu1 %vm1970_vm8, %v4806_v16  ;;  %6602 = vmatprep.mubr.msk.f32.mxu1 %vm8024_vm7, %v8023_v26 }
0x18c1   : > { %6610 = vmatprep.subr.mxu1 %v8023_v26  ;;  %6607 = vmatprep.mubr.msk.f32.mxu0 %vm8024_vm7, %v8023_v26 }
0x18c3   : > { %6603 = vmatmul.mubr.msk.f32.vlgmr.msra.gmra.mrb[38].mxu1 %vm1970_vm8, %v4804_v18 }
0x18c4   : > { %6612 = vmatprep.mubr.msk.f32.mxu1 %vm8024_vm7, %v8023_v26 }
0x198e   : > { %v4635_v20 = vpop.f32.mrb[24].mxu0 }
0x198f   : > { %v6589_v21 = vpop.f32.mrb[25].mxu0 }
0x1992   : > { %v4711_v22 = vpop.f32.mrb[36].mxu1  ;;  %v4799_v24 = vpop.f32.mrb[26].mxu0 }
0x1993   : > { %v4881_v28 = vmul.f32 0.35355338, %v4799_v24  ;;  %v6594_v25 = vpop.f32.mrb[37].mxu1  ;;  %v6599_v23 = vpop.f32.mrb[27].mxu0 }
0x1995   : > { %v4883_v29 = vsel %vm9329_vm0, -inf, %v4881_v28 }
0x1996   : > { %v4877_v32 = vpop.f32.mrb[38].mxu1  ;;  %v4885_v33 = vsel %vm1970_vm8, %v4883_v29, -inf }
0x1997   : > { %v4882_v36 = vmul.f32 0.35355338, %v4877_v32  ;;  %4886 = vmax.xlane.f32.xlu0 %v4885_v33  ;;  %v6604_v37 = vpop.f32.mrb[39].mxu1  ;;  %v5205_v32 = vld [vmem:[%s9048_s30 + $0x8] sm:$0xff] }
0x1998   : > { %v5207_v37 = vld [vmem:[%s9048_s30 + $0x18] sm:$0xff] }
0x1999   : > { %v4884_v39 = vsel %vm9337_vm1, -inf, %v4882_v36  ;;  %v5206_v36 = vld [vmem:[%s9048_s30 + $0x10] sm:$0xff] }
0x199a   : > { %v4888_v26 = vsel %vm1970_vm8, %v4884_v39, -inf }
0x199b   : > { %4889 = vmax.xlane.f32.xlu1 %v4888_v26  ;;  %v5314_v26 = vld [vmem:[%s9051_s11] sm:$0xff] }
0x19ac   : > { %4907 = vrot.lane.b32.xlu1 %v9302_v2, %s8033_s27 }
0x19b0   : > { %4373 = vrot.lane.b32.xlu1 %v9416_v45, %s8036_s10 }
0x19b4   : > { %4375 = vrot.lane.b32.xlu1 %v9418_v47, %s8036_s10  ;;  %s9782_s10 = scalar_lea.vmem [#allocation28], %s9021_s2 }
0x19b8   : > { %4719 = vrot.lane.b32.xlu1 %v4711_v22, %s8037_s1 }
0x1a24   : > { %v4887_v27 = vpop.xlane.xlu0 %4886 }
0x1a25   : > { %v4891_v40 = vsub.f32 %v4883_v29, %v4887_v27  ;;  %v5204_v29 = vld [vmem:[%s9048_s30] sm:$0xff]  ;;  %v5315_v27 = vld [vmem:[%s9051_s11 + $0x8] sm:$0xff]  ;;  %s9784_s30 = scalar_lea.vmem [#allocation31], %s9021_s2 }
0x1a26   : > { %v6760_v33 = vpack.c.bf16 %v5205_v32, %v5204_v29 }
0x1a27   : > { %v4893_v41 = vmul.f32 1.442695, %v4891_v40  ;;  %v6768_v40 = vpack.c.bf16 %v5315_v27, %v5314_v26 }
0x1a28   : > { %v4890_v42 = vpop.xlane.xlu1 %4889 }
0x1a29   : > { %7077 = vpow2.f32 %v4893_v41  ;;  %v4892_v34 = vsub.f32 %v4884_v39, %v4890_v42  ;;  %v6764_v39 = vpack.c.bf16 %v5207_v37, %v5206_v36 }
0x1a2b   : > { %v4895_v38 = vmul.f32 1.442695, %v4892_v34 }
0x1a2c   : > { %v4908_v43 = vpop.permute.xlu1 %4907 }
0x1a2d   : > { %7079 = vpow2.f32 %v4895_v38  ;;  %6606 = vmatpush3.msra.mxu0 %v4908_v43 }
0x1a2e   : > { %6753 = vmatprep.subr.bf16.mxu0 %v6752_v58 }
0x1a30   : > { %v4374_v44 = vpop.permute.xlu1 %4373 }
0x1a31   : > { %4379 = vst.msk [vmem:[#allocation4] sm:$0xff] %vm2646_vm10, %v4374_v44 }
0x1a33   : > { %v7078_v2 = vpop.eup %7077 }
0x1a34   : > { %v4376_v45 = vpop.permute.xlu1 %4375  ;;  %v4897_v46 = vsel %vm1970_vm8, %v7078_v2, 0.0 }
0x1a35   : > { %4380 = vst.msk [vmem:[#allocation4 + $0x8] sm:$0xff] %vm2646_vm10, %v4376_v45  ;;  %4898 = vadd.xlane.f32.xlu0 %v4897_v46  ;;  %v6204_v45 = vld [vmem:[%s9782_s10] ss:$0 sm:$0xff] }
0x1a37   : > { %v7080_v47 = vpop.eup %7079 }
0x1a38   : > { %v4720_v30 = vpop.permute.xlu1 %4719  ;;  %v4900_v48 = vsel %vm1970_vm8, %v7080_v47, 0.0 }
0x1a39   : > { %4724 = vst.msk [vmem:[#allocation4 + $0x8] sm:$0xff] %vm2991_vm11, %v4720_v30  ;;  %4901 = vadd.xlane.f32.xlu0 %v4900_v48 }
0x1a4f   : > { %4983 = vrot.lane.b32.xlu0 %v9300_v0, %s8033_s27  ;;  %s9787_s27 = scalar_lea.vmem [#allocation35], %s9021_s2 }
0x1a53   : > { %4717 = vrot.lane.b32.xlu0 %v4635_v20, %s8037_s1 }
0x1ac2   : > { %v4899_v49 = vpop.xlane.xlu0 %4898 }
0x1ac3   : > { %7081 = vrcp.f32 %v4899_v49 }
0x1ac6   : > { %v4902_v50 = vpop.xlane.xlu0 %4901 }
0x1ac7   : > { %7083 = vrcp.f32 %v4902_v50 }
0x1aca   : > { %v4984_v51 = vpop.permute.xlu0 %4983 }
0x1acb   : > { %6611 = vmatpush3.msra.mxu1 %v4984_v51 }
0x1acc   : > { %6761 = vmatprep.subr.bf16.mxu1 %v6760_v33 }
0x1acd   : > { %v7082_v52 = vpop.eup %7081 }
0x1ace   : > { %v4905_v53 = vmul.f32 %v7082_v52, %v7078_v2  ;;  %v4718_v54 = vpop.permute.xlu0 %4717 }
0x1acf   : > { %4723 = vst.msk [vmem:[#allocation4] sm:$0xff] %vm2991_vm11, %v4718_v54  ;;  %v5317_v54 = vld [vmem:[%s9051_s11 + $0x18] sm:$0xff] }
0x1ad0   : > { %6608 = vmatmul.mubr.msk.f32.vlgmr.msra.gmra.mrb[28].mxu0 %vm1970_vm8, %v4905_v53  ;;  %v5316_v53 = vld [vmem:[%s9051_s11 + $0x10] sm:$0xff] }
0x1ad1   : > { %v7084_v0 = vpop.eup %7083  ;;  %6755 = vmatpush3.bf16.msra.mxu0 %v6752_v58  ;;  %v5320_v58 = vld [vmem:[%s9051_s11 + $0x30] sm:$0xff] }
0x1ad2   : > { %v4906_v55 = vmul.f32 %v7084_v0, %v7080_v47  ;;  %6757 = vmatprep.subr.bf16.mxu0 %v6756_v62  ;;  %v6205_v47 = vld [vmem:[%s9783_s13] ss:$0 sm:$0xff]  ;;  %v6772_v0 = vpack.c.bf16 %v5317_v54, %v5316_v53  ;;  %v6780_v60 = vpack.c.bf16 %v5321_v59, %v5320_v58 }
0x1ad4   : > { %6613 = vmatmul.mubr.msk.f32.vlgmr.msra.gmra.mrb[40].mxu1 %vm1970_vm8, %v4906_v55  ;;  %v5318_v55 = vld [vmem:[%s9051_s11 + $0x20] sm:$0xff] }
0x1ad5   : > { %6759 = vmatpush3.bf16.msra.mxu0 %v6756_v62  ;;  %6763 = vmatpush3.bf16.msra.mxu1 %v6760_v33  ;;  %v6776_v57 = vpack.c.bf16 %v5319_v56, %v5318_v55  ;;  %v5322_v62 = vld [vmem:[%s9051_s11 + $0x40] sm:$0xff] }
0x1ad6   : > { %6765 = vmatprep.subr.bf16.mxu1 %v6764_v39  ;;  %6769 = vmatprep.subr.bf16.mxu0 %v6768_v40 }
0x1ad9   : > { %6767 = vmatpush3.bf16.msra.mxu1 %v6764_v39 }
0x1ba3   : > { %v4979_v63 = vpop.f32.mrb[28].mxu0 }
0x1ba4   : > { %5061 = vrot.lane.b32.xlu0 %v4979_v63, %s8038_s22  ;;  %v6609_v1 = vpop.f32.mrb[29].mxu0  ;;  %v5323_v63 = vld [vmem:[%s9051_s11 + $0x48] sm:$0xff] }
0x1ba5   : > { %v6784_v1 = vpack.c.bf16 %v5323_v63, %v5322_v62 }
0x1ba7   : > { %v5055_v3 = vpop.f32.mrb[40].mxu1 }
0x1ba8   : > { %5063 = vrot.lane.b32.xlu1 %v5055_v3, %s8038_s22  ;;  %v6614_v4 = vpop.f32.mrb[41].mxu1  ;;  %v5324_v3 = vld [vmem:[%s9051_s11 + $0x50] sm:$0xff] }
0x1ba9   : > { %v5325_v4 = vld [vmem:[%s9051_s11 + $0x58] sm:$0xff] }
0x1c16   : > { %v5062_v5 = vpop.permute.xlu0 %5061 }
0x1c17   : > { %5067 = vst.msk [vmem:[#allocation4] sm:$0xff] %vm3336_vm12, %v5062_v5  ;;  %v6788_v5 = vpack.c.bf16 %v5325_v4, %v5324_v3 }
0x1c1a   : > { %v5064_v8 = vpop.permute.xlu1 %5063 }
0x1c1b   : > { %5068 = vst.msk [vmem:[#allocation4 + $0x8] sm:$0xff] %vm3336_vm12, %v5064_v8  ;;  %v5326_v8 = vld [vmem:[%s9051_s11 + $0x60] sm:$0xff] }
0x1c1e   : > { %v5069_v7 = vld [vmem:[#allocation4] sm:$0xff] }
0x1c1f   : > { %6623 = vmatprep.mubr.msk.f32.mxu0 %vm1875_vm6, %v5069_v7  ;;  %v5327_v7 = vld [vmem:[%s9051_s11 + $0x68] sm:$0xff] }
0x1c22   : > { %v5070_v9 = vld [vmem:[#allocation4 + $0x8] sm:$0xff] }
0x1c23   : > { %6624 = vmatmul.mubr.msk.f32.vlgmr.msra.gmra.mrb[30].mxu0 %vm1875_vm6, %v5070_v9  ;;  %v6792_v9 = vpack.c.bf16 %v5327_v7, %v5326_v8 }
0x1c24   : > { %6771 = vmatpush3.bf16.msra.mxu0 %v6768_v40 }
0x1c25   : > { %6773 = vmatprep.subr.bf16.mxu0 %v6772_v0 }
0x1c28   : > { %6775 = vmatpush3.bf16.msra.mxu0 %v6772_v0 }
0x1c29   : > { %6777 = vmatprep.subr.bf16.mxu0 %v6776_v57 }
0x1c2c   : > { %6779 = vmatpush3.bf16.msra.mxu0 %v6776_v57 }
0x1c2d   : > { %6781 = vmatprep.subr.bf16.mxu0 %v6780_v60 }
0x1c30   : > { %6783 = vmatpush3.bf16.msra.mxu0 %v6780_v60  ;;  %v6210_v60 = vld [vmem:[%s9786_s6] ss:$0 sm:$0xff] }
0x1c31   : > { %6785 = vmatprep.subr.bf16.mxu0 %v6784_v1 }
0x1c34   : > { %6787 = vmatpush3.bf16.msra.mxu0 %v6784_v1  ;;  %v6211_v1 = vld [vmem:[%s9787_s27] ss:$0 sm:$0xff] }
0x1c35   : > { %6789 = vmatprep.subr.bf16.mxu0 %v6788_v5 }
0x1c38   : > { %6791 = vmatpush3.bf16.msra.mxu0 %v6788_v5 }
0x1c39   : > { %6793 = vmatprep.subr.bf16.mxu0 %v6792_v9 }
0x1c3c   : > { %6795 = vmatpush3.bf16.msra.mxu0 %v6792_v9  ;;  %v5465_v9 = vld [vmem:[#allocation36 + $0x8] sm:$0xff] (!%p6212_p4) }
0x1cf6   : > { %v6625_v11 = vpop.f32.mrb[30].mxu0 }
0x1cf7   : > { %v5155_v12 = vadd.f32 %v6625_v11, %v6201_v10  ;;  %v5149_v13 = vpop.f32.mrb[31].mxu0  ;;  %v5329_v11 = vld [vmem:[%s9051_s11 + $0x78] sm:$0xff] }
0x1cf8   : > { %v5150_v14 = vadd.f32 %v6201_v10, %v5149_v13  ;;  %v5328_v10 = vld [vmem:[%s9051_s11 + $0x70] sm:$0xff]  ;;  %v6206_v13 = vld [vmem:[%s9784_s30] ss:$0 sm:$0xff]  ;;  %s9785_s11 = scalar_lea.vmem [#allocation33], %s9021_s2 }
0x1cf9   : > { %v5159_v15 = vadd.f32 %v5155_v12, %v9292_v61  ;;  %v6796_v12 = vpack.c.bf16 %v5329_v11, %v5328_v10  ;;  %v6209_v27 = vld [vmem:[%s9785_s11] ss:$0 sm:$0xff]  ;;  %v5467_v10 = vld [vmem:[#allocation36 + $0x18] sm:$0xff] (!%p6212_p4)  ;;  %v5464_v11 = vld [vmem:[#allocation36] sm:$0xff] (!%p6212_p4) }
0x1cfa   : > { %v5158_v16 = vadd.f32 %v5150_v14, %v9288_v31 }
0x1cfb   : > { %v5163_v17 = vsel %vm1875_vm6, %v5159_v15, 0.0  ;;  %6797 = vmatprep.subr.bf16.mxu0 %v6796_v12 }
0x1cfc   : > { %5164 = vadd.xlane.f32.xlu1 %v5163_v17  ;;  %v5160_v6 = vsel %vm1875_vm6, %v5158_v16, 0.0  ;;  %6799 = vmatpush3.bf16.msra.mxu0 %v6796_v12  ;;  %v6800_v12 = vpack.c.bf16 (!%p6212_p4), %v5467_v10, %v5465_v9 }
0x1cfd   : > { %5161 = vadd.xlane.f32.xlu0 %v5160_v6 }
0x1cfe   : > { %6801 = vmatprep.subr.bf16.mxu0 (!%p6212_p4), %v6800_v12  ;;  %6808 = vmatprep.subr.bf16.mxu1 (!%p6212_p4), %v6800_v12 }
0x1d89   : > { %v5165_v18 = vpop.xlane.xlu1 %5164 }
0x1d8a   : > { %v5167_v20 = vmul.f32 0.03125, %v5165_v18  ;;  %v5162_v21 = vpop.xlane.xlu0 %5161 }
0x1d8b   : > { %v5166_v22 = vmul.f32 0.03125, %v5162_v21 }
0x1d8c   : > { %v5169_v24 = vsub.f32 %v5159_v15, %v5167_v20 }
0x1d8d   : > { %v5168_v28 = vsub.f32 %v5158_v16, %v5166_v22 }
0x1d8e   : > { %v5171_v61 = vmul.f32 %v5169_v24, %v5169_v24 }
0x1d8f   : > { %v5170_v25 = vmul.f32 %v5168_v28, %v5168_v28 }
0x1d90   : > { %v5175_v23 = vsel %vm1875_vm6, %v5171_v61, 0.0 }
0x1d91   : > { %v5172_v31 = vsel %vm1875_vm6, %v5170_v25, 0.0 }
0x1d92   : > { %5173 = vadd.xlane.f32.xlu0 %v5172_v31 }
0x1d96   : > { %5176 = vadd.xlane.f32.xlu0 %v5175_v23 }
0x1e1f   : > { %v5174_v41 = vpop.xlane.xlu0 %5173 }
0x1e20   : > { %v5178_v42 = vmul.f32 0.03125, %v5174_v41 }
0x1e22   : > { %v5180_v34 = vadd.f32 1e-05, %v5178_v42 }
0x1e23   : > { %v5177_v38 = vpop.xlane.xlu0 %5176 }
0x1e24   : > { %7085 = vrsqrt.f32 %v5180_v34  ;;  %v5179_v43 = vmul.f32 0.03125, %v5177_v38 }
0x1e26   : > { %v5181_v44 = vadd.f32 1e-05, %v5179_v43 }
0x1e28   : > { %7087 = vrsqrt.f32 %v5181_v44 }
0x1e2e   : > { %v7086_v2 = vpop.eup %7085 }
0x1e2f   : > { %v5184_v46 = vmul.f32 %v7086_v2, %v5168_v28 }
0x1e31   : > { %v5193_v30 = vmul.f32 %v6204_v45, %v5184_v46 }
0x1e32   : > { %v7088_v48 = vpop.eup %7087 }
0x1e33   : > { %v5185_v49 = vmul.f32 %v7088_v48, %v5169_v24  ;;  %v9510_v50 = vadd.f32 %v6205_v47, %v5193_v30 }
0x1e35   : > { %v5194_v51 = vmul.f32 %v6204_v45, %v5185_v49  ;;  %6634 = vmatprep.mubr.msk.f32.mxu1 %vm1875_vm6, %v9510_v50 }
0x1e37   : > { %v9514_v52 = vadd.f32 %v6205_v47, %v5194_v51 }
0x1e39   : > { %6635 = vmatmul.mubr.msk.f32.vlgmr.msra.gmra.mrb[42].mxu1 %vm1875_vm6, %v9514_v52 }
0x1f0c   : > { %v6636_v14 = vpop.f32.mrb[42].mxu1 }
0x1f0d   : > { %v5293_v15 = vadd.f32 %v6636_v14, %v6206_v13  ;;  %v5287_v16 = vpop.f32.mrb[43].mxu1  ;;  %v5469_v14 = vld [vmem:[#allocation36 + $0x28] sm:$0xff] (!%p6212_p4) }
0x1f0e   : > { %v5288_v17 = vadd.f32 %v6206_v13, %v5287_v16  ;;  %v5466_v13 = vld [vmem:[#allocation36 + $0x10] sm:$0xff] (!%p6212_p4)  ;;  %v8041_v16 = vmov (!%p6212_p4), 0.0  }
0x1f0f   : > { %v5299_v6 = vmul.f32 0.044715, %v5293_v15  ;;  %v5297_v37 = vmul.f32 0.5, %v5293_v15  ;;  %5560 = vmatprep.mubr.f32.mxu1 (!%p6212_p4), %v8041_v16 }
0x1f10   : > { %v5298_v18 = vmul.f32 0.044715, %v5288_v17  ;;  %v5296_v33 = vmul.f32 0.5, %v5288_v17 }
0x1f11   : > { %v5301_v20 = vmul.f32 %v5299_v6, %v5293_v15 }
0x1f12   : > { %v5300_v21 = vmul.f32 %v5298_v18, %v5288_v17  ;;  %v5468_v18 = vld [vmem:[#allocation36 + $0x20] sm:$0xff] (!%p6212_p4) }
0x1f13   : > { %v5303_v22 = vmul.f32 %v5301_v20, %v5293_v15  ;;  %v5470_v20 = vld [vmem:[#allocation36 + $0x30] sm:$0xff] (!%p6212_p4) }
0x1f14   : > { %v5302_v24 = vmul.f32 %v5300_v21, %v5288_v17  ;;  %v6806_v21 = vpack.c.bf16 (!%p6212_p4), %v5470_v20, %v5468_v18 }
0x1f15   : > { %v5305_v28 = vadd.f32 %v5303_v22, %v5293_v15  ;;  %v5471_v15 = vld [vmem:[#allocation36 + $0x38] sm:$0xff] (!%p6212_p4)  ;;  %v5472_v22 = vld [vmem:[#allocation37] sm:$0x3] (!%p6212_p4) }
0x1f16   : > { %v5304_v25 = vadd.f32 %v5302_v24, %v5288_v17  ;;  %v6802_v17 = vpack.c.bf16 (!%p6212_p4), %v5466_v13, %v5464_v11  ;;  %v6804_v6 = vpack.c.bf16 (!%p6212_p4), %v5471_v15, %v5469_v14  ;;  %v5480_v24 = vsub.s32 (!%p6212_p4), 1, %v9107_v35 }
0x1f17   : > { %v5307_v31 = vmul.f32 0.7978846, %v5305_v28  ;;  %v5477_v28 = vrot.slane (!%p6212_p4), %v5472_v22, %v9326_v19 }
0x1f18   : > { %v5306_v61 = vmul.f32 0.7978846, %v5304_v25  ;;  %6810 = vmatpush1.bf16.msra.mxu1 (!%p6212_p4), %v6802_v17  ;;  %v5481_v25 = vrot.slane (!%p6212_p4), %v5472_v22, %v5480_v24 }
0x1f19   : > { %7089 = vtanh.f32 %v5307_v31  ;;  %6809 = vmatprep.subr.bf16.mxu1 (!%p6212_p4), %v6804_v6 }
0x1f1a   : > { %7091 = vtanh.f32 %v5306_v61 }
0x1f1c   : > { %6811 = vmatpush1.bf16.msra.mxu1 (!%p6212_p4), %v6806_v21 }
0x1f23   : > { %v7090_v23 = vpop.eup %7089 }
0x1f24   : > { %v7092_v29 = vpop.eup %7091  ;;  %v5311_v32 = vadd.f32 1.0, %v7090_v23 }
0x1f25   : > { %v5310_v36 = vadd.f32 1.0, %v7092_v29 }
0x1f26   : > { %v5313_v26 = vmul.f32 %v5311_v32, %v5297_v37 }
0x1f27   : > { %v5312_v39 = vmul.f32 %v5310_v36, %v5296_v33 }
0x1f29   : > { %6669 = vmatprep.mubr.f32.mxu0 %v5312_v39 }
0x1f2a   : > { %6670 = vmatmul.mubr.f32.vlgmr.msra.gmra.mrb[32].mxu0 %v5313_v26 }
0x1f2b   : > { %5554 = vmatprep.mubr.f32.mxu0 (!%p6212_p4), %v8041_v16  ;;  %6803 = vmatpush1.bf16.msra.mxu0 (!%p6212_p4), %v6802_v17 }
0x1f2c   : > { %6805 = vmatprep.subr.bf16.mxu0 (!%p6212_p4), %v6804_v6 }
0x1f2f   : > { %6807 = vmatpush1.bf16.msra.mxu0 (!%p6212_p4), %v6806_v21 }
0x1ffd   : > { %v6671_v40 = vpop.f32.mrb[32].mxu0 }
0x1ffe   : > { %v5409_v41 = vadd.f32 %v6671_v40, %v6209_v27  ;;  %v5403_v42 = vpop.f32.mrb[33].mxu0 }
0x1fff   : > { %v5404_v34 = vadd.f32 %v6209_v27, %v5403_v42 }
0x2000   : > { %v5413_v38 = vadd.f32 %v5409_v41, %v9514_v52 }
0x2001   : > { %v5412_v43 = vadd.f32 %v5404_v34, %v9510_v50 }
0x2002   : > { %v5417_v44 = vsel %vm1875_vm6, %v5413_v38, 0.0 }
0x2003   : > { %5418 = vadd.xlane.f32.xlu0 %v5417_v44  ;;  %v5414_v2 = vsel %vm1875_vm6, %v5412_v43, 0.0 }
0x2004   : > { %5415 = vadd.xlane.f32.xlu1 %v5414_v2 }
0x2090   : > { %v5419_v45 = vpop.xlane.xlu0 %5418 }
0x2091   : > { %v5421_v46 = vmul.f32 0.03125, %v5419_v45  ;;  %v5416_v47 = vpop.xlane.xlu1 %5415 }
0x2092   : > { %v5420_v30 = vmul.f32 0.03125, %v5416_v47 }
0x2093   : > { %v5423_v48 = vsub.f32 %v5413_v38, %v5421_v46 }
0x2094   : > { %v5422_v49 = vsub.f32 %v5412_v43, %v5420_v30 }
0x2095   : > { %v5425_v51 = vmul.f32 %v5423_v48, %v5423_v48 }
0x2096   : > { %v5424_v53 = vmul.f32 %v5422_v49, %v5422_v49 }
0x2097   : > { %v5429_v54 = vsel %vm1875_vm6, %v5425_v51, 0.0 }
0x2098   : > { %5430 = vadd.xlane.f32.xlu0 %v5429_v54  ;;  %v5426_v50 = vsel %vm1875_vm6, %v5424_v53, 0.0 }
0x2099   : > { %5427 = vadd.xlane.f32.xlu1 %v5426_v50 }
0x2125   : > { %v5431_v52 = vpop.xlane.xlu0 %5430 }
0x2126   : > { %v5433_v0 = vmul.f32 0.03125, %v5431_v52  ;;  %v5428_v55 = vpop.xlane.xlu1 %5427 }
0x2127   : > { %v5432_v56 = vmul.f32 0.03125, %v5428_v55 }
0x2128   : > { %v5435_v57 = vadd.f32 1e-05, %v5433_v0 }
0x2129   : > { %v5434_v58 = vadd.f32 1e-05, %v5432_v56 }
0x212a   : > { %7093 = vrsqrt.f32 %v5435_v57 }
0x212b   : > { %7095 = vrsqrt.f32 %v5434_v58 }
0x2134   : > { %v7094_v59 = vpop.eup %7093 }
0x2135   : > { %v7096_v62 = vpop.eup %7095  ;;  %v5439_v63 = vmul.f32 %v7094_v59, %v5423_v48 }
0x2136   : > { %v5438_v3 = vmul.f32 %v7096_v62, %v5422_v49  ;;  %5463 = sbr.rel (%p6212_p4) target bundleno = 8724 (0x2214), region = 252 }
0x2137   : > { %v5448_v4 = vmul.f32 %v6210_v60, %v5439_v63 }
0x2138   : > { %v5447_v5 = vmul.f32 %v6210_v60, %v5438_v3 }
0x2139   : > { %v5457_v8 = vadd.f32 %v6211_v1, %v5448_v4 }
0x213a   : > { %v5456_v7 = vadd.f32 %v6211_v1, %v5447_v5 }
0x213b   : > { %5459 = vst.msk [vmem:[#allocation2 + $0x8] sm:$0xff] %vm1875_vm6, %v5457_v8  ;;  %6214 = vmatmul.mubr.msk.f32.vlgmr.msra.gmra.mrb[0].mxu1 (!%p6212_p4), %vm1875_vm6, %v5457_v8 }
0x213c   : > { %5458 = vst.msk [vmem:[#allocation2] sm:$0xff] %vm1875_vm6, %v5456_v7  ;;  %6213 = vmatmul.mubr.msk.f32.vlgmr.msra.gmra.mrb[0].mxu0 (!%p6212_p4), %vm1875_vm6, %v5456_v7 }
0x220e   : > { %v5562_v61 = vpop.f32.mrb[0].mxu1 }
0x220f   : > { %v5556_v31 = vpop.f32.mrb[0].mxu0  ;;  %v5563_v29 = vadd.f32 %v5562_v61, %v5477_v28  ;;  %v5564_v33 = vpop.f32.mrb[1].mxu1 }
0x2210   : > { %v5557_v23 = vadd.f32 %v5556_v31, %v5477_v28  ;;  %v5558_v32 = vpop.f32.mrb[1].mxu0  ;;  %v5565_v37 = vadd.f32 %v5564_v33, %v5481_v25 }
0x2211   : > { %v5559_v36 = vadd.f32 %v5558_v32, %v5481_v25  ;;  %5569 = vst [vmem:[#allocation38 + $0x10] sm:$0xff] %v5563_v29 }
0x2212   : > { %5567 = vst [vmem:[#allocation38] sm:$0xff] %v5557_v23  ;;  %5570 = vst [vmem:[#allocation38 + $0x18] sm:$0xff] %v5565_v37 }
0x2213   : > { %5568 = vst [vmem:[#allocation38 + $0x8] sm:$0xff] %v5559_v36 }
0x2214 PF: > { %s9789_s2 = sld [smem:[#allocation51_spill]]  ;;  %s8042_s8 = smov [#allocation38]  }
0x2215   : > { %s5580_s0 = sshll.u32 %s8042_s8, 4  ;;  %s5581_s0 = int_to_ptr.vmem [resolvable:$true] %s5580_s0 }
0x2216   : > { %s7881_s7 = scalar_lea.vmem %s5581_s0, 512  ;;  %p7888_p0 = scmp.lt.s32.totalorder %s5581_s0, %s5581_s0 }
0x2217   : > { %p7882_p8 = scmp.ne.s32.totalorder %s5581_s0, %s7881_s7  ;;  %p7889_p1 = scmp.lt.s32.totalorder %s7881_s7, %s7881_s7 }
0x2219   : > { %p7890_p12 = por %p7889_p1, %p7888_p0 }
0x221a   : > { %p6929_p6 = scmp.eq.s32.totalorder %s9789_s2, 1 }
0x221c   : > { %p7883_p9 = pnand %p7882_p8, %p6929_p6 }
0x221e   : > { %p7884_p11 = pneg %p7883_p9 }
0x2220   : > { %p7891_p5 = pnand %p7890_p12, %p7884_p11 }
0x2222   : > { %7894 = shalt.err (!%p7891_p5)
}
0x2223   : > { %s9790_s4 = sld [smem:[#allocation81_spill]] }
0x2229   : > { %s7895_s23 = scalar_lea.hbm %s9790_s4, 512 }
0x222a   : > { %p7896_p7 = scmp.ne.s32.totalorder %s9790_s4, %s7895_s23  ;;  %p7901_p3 = scmp.lt.u32.totalorder %s7895_s23, %s9790_s4 }
0x222c   : > { %p7897_p10 = pnand %p7896_p7, %p6929_p6 }
0x222e   : > { %p7898_p13 = pneg %p7897_p10 }
0x2230   : > { %p7903_p2 = pnand %p7901_p3, %p7898_p13 }
0x2232   : > { %7906 = shalt.err (!%p7903_p2)
}
0x2233   : > { %s8043_s14 = smov 256  }
0x2234   : > { %6885 = dma.vmem_to_hbm [thread:$0]  (%p6929_p6), %s5581_s0, 512, %s9790_s4, [#allocation7], %s8043_s14, %s8043_s14, %s8037_s1  }
0x2235   : > { %7960 = dma.done.wait (%p6929_p6), [#allocation7], 512  }
0x2236   : > { %7962 = vsyncadd (%p6929_p6), [#allocation7], 4294966784 }
0x2237 PF: > { %s9791_s30 = sld [smem:[#allocation50_spill]]  ;;  %s9792_s8 = sld [smem:[#allocation47_spill]] }
0x2238   : > { %s9793_s5 = sld [smem:[#allocation48_spill]]  ;;  %s9794_s9 = sld [smem:[#allocation54_spill]] }
0x2239   : > { %s9795_s11 = sld [smem:[#allocation52_spill]] }
0x223d   : > { %s43_s6 = sadd.s32 1, %s9791_s30   ;;  %s9796_s30 = smov %s7981_s3 }
0x223e   : > { %p40_p4 = scmp.ge.s32.totalorder %s43_s6, 4  }
0x223f   : > { %s9797_s3 = smov %s9795_s11 }
0x2240   :  { %42 = sbr.rel (!%p40_p4) target bundleno = 34 (0x22), region = 421 }
0x2247   :  { %5596 = vsyncpa [#allocation6], 1 }
0x2248   :  { %5598 = vsyncpa [#allocation6 + $0x1], 1 }
0x2249   :  { %5599 = vsyncpa [#allocation9], 1 }
0x224a   :  { %5600 = vsyncpa [#allocation12], 1 }
0x224b   :  { %5601 = vsyncpa [#allocation15], 1 }
0x224c   :  { %5602 = vsyncpa [#allocation7], 1 }
0x224d   :  { %5604 = vsyncpa [#allocation7 + $0x1], 1 }

</bundles_post_ra>
